<compile_context>
chip_gen: v6e
topology: v6e:2x2x1
jax: 0.10.0
libtpu: 0.0.40
codegen_flags: <defaults>
</compile_context>

<pallas_src>
import functools

import jax
import jax.numpy as jnp
from jax.experimental import pallas as pl
from jax.experimental.pallas import tpu as pltpu

# ----------------------------- configuration --------------------------------
N_GRAPHS = 4           # graphs in the batch
GRAPHS_PER_BLOCK = 2   # graphs per grid step -> grid=(2,): one step per v7x TC
N_NODES = 16           # nodes per graph
DIM_IN = 8             # raw node feature dim
EMBED_DIM = 32         # cfg.graphormer.embed_dim == cfg.gnn.dim_inner
NUM_HEADS = 4          # cfg.graphormer.num_heads
NUM_LAYERS = 2         # cfg.graphormer.num_layers
DIM_OUT = 4            # task output dim
LN_EPS = 1e-5
HEAD_DIM = EMBED_DIM // NUM_HEADS
MXU_DTYPE = jnp.bfloat16   # matmul operand dtype (f32 accumulation everywhere)
# NOTE: for real workloads, EMBED_DIM multiples of 128 and node counts that are
# multiples of 8 map much better onto the (8,128) vreg / MXU geometry.


# ------------------------------ kernel helpers --------------------------------
def _layernorm(x, g, b):
    mu = jnp.mean(x, axis=-1, keepdims=True)
    var = jnp.mean((x - mu) ** 2, axis=-1, keepdims=True)
    return (x - mu) * jax.lax.rsqrt(var + LN_EPS) * g + b


def _erf_approx(x):
    # Abramowitz & Stegun 7.1.26, |abs err| <= 1.5e-7 (exp + polynomial only,
    # guaranteed to lower in Mosaic; lax.erf is not).
    p = 0.3275911
    a1, a2, a3, a4, a5 = (0.254829592, -0.284496736, 1.421413741,
                          -1.453152027, 1.061405429)
    ax = jnp.abs(x)
    t = 1.0 / (1.0 + p * ax)
    poly = ((((a5 * t + a4) * t + a3) * t + a2) * t + a1) * t
    y = 1.0 - poly * jnp.exp(-ax * ax)
    return jnp.where(x >= 0, y, -y)


def _gelu_exact(x):
    # torch.nn.GELU default (erf form).
    return 0.5 * x * (1.0 + _erf_approx(x * (2.0 ** -0.5)))


# ------------------------------ kernel body ----------------------------------
def graphormer_kernel(x_ref, wpre_ref, bpre_ref,
                      ln1g_ref, ln1b_ref, wqkv_ref, bqkv_ref, wo_ref, bo_ref,
                      ln2g_ref, ln2b_ref, w1_ref, b1_ref, w2_ref, b2_ref,
                      whead_ref, bhead_ref,
                      o_ref, *, num_layers, num_heads, n_nodes, graphs_per_block):
    """Forward for GRAPHS_PER_BLOCK graphs: pre-MP -> L Graphormer layers -> head."""
    g, n = graphs_per_block, n_nodes
    x = x_ref[...].astype(jnp.float32).reshape(g * n, -1)       # (R, DIM_IN)

    # --- GNNPreMP: Linear + ReLU (bf16 MXU operands, f32 accumulate) ---
    h = jnp.dot(x.astype(MXU_DTYPE), wpre_ref[...],
                preferred_element_type=jnp.float32) + bpre_ref[...]
    h = jnp.maximum(h, 0.0)                                      # (R, D)

    r, d = h.shape
    hd = d // num_heads
    scale = 1.0 / (hd ** 0.5)

    # NUM_LAYERS is small -> static unroll. Switch to lax.fori_loop with
    # ref[li] dynamic indexing if the layer count grows past ~4 (vreg pressure).
    for li in range(num_layers):
        # ---------------- multi-head self-attention (pre-LN) ----------------
        z = _layernorm(h, ln1g_ref[li], ln1b_ref[li])            # (R, D)

        # Fused QKV: one lane-dense (R, 3D) matmul per layer.
        qkv = jnp.dot(z.astype(MXU_DTYPE), wqkv_ref[li],
                      preferred_element_type=jnp.float32) + bqkv_ref[li]
        q3 = qkv[:, :d].reshape(g, n, d).astype(MXU_DTYPE)       # (G, N, D)
        k3 = qkv[:, d:2 * d].reshape(g, n, d).astype(MXU_DTYPE)
        v3 = qkv[:, 2 * d:].reshape(g, n, d).astype(MXU_DTYPE)

        # Per-head attention, batched over the graphs in this block.
        # (score/context matmuls are inherently per-head; no transposes used.)
        ctx_heads = []
        for hi in range(num_heads):
            sl = slice(hi * hd, (hi + 1) * hd)
            s = jnp.einsum('gnc,gmc->gnm', q3[..., sl], k3[..., sl],
                           preferred_element_type=jnp.float32) * scale  # (G,N,N)
            s = s - jnp.max(s, axis=-1, keepdims=True)
            p = jnp.exp(s)
            p = p * pl.reciprocal(jnp.sum(p, axis=-1, keepdims=True), approx=True)
            ctx_heads.append(
                jnp.einsum('gnm,gmc->gnc', p.astype(MXU_DTYPE), v3[..., sl],
                           preferred_element_type=jnp.float32))         # (G,N,hd)
        ctx = jnp.concatenate(ctx_heads, axis=-1).reshape(r, d)  # head-concat (R,D)

        # Single (R, D) @ (D, D) output projection (original W_O layout).
        h = jnp.dot(ctx.astype(MXU_DTYPE), wo_ref[li],
                    preferred_element_type=jnp.float32) + bo_ref[li] + h  # residual

        # ---------------------- feed-forward (pre-LN) -----------------------
        z2 = _layernorm(h, ln2g_ref[li], ln2b_ref[li])
        z2 = jnp.dot(z2.astype(MXU_DTYPE), w1_ref[li],
                     preferred_element_type=jnp.float32) + b1_ref[li]
        z2 = _gelu_exact(z2)                                     # erf GELU, f32
        z2 = jnp.dot(z2.astype(MXU_DTYPE), w2_ref[li],
                     preferred_element_type=jnp.float32) + b2_ref[li]
        h = z2 + h                                               # residual

    # --- GNNGraphHead: per-graph mean pool over nodes + Linear ---
    pooled = jnp.mean(h.reshape(g, n, d), axis=1)                # (G, D)
    y = jnp.dot(pooled.astype(MXU_DTYPE), whead_ref[...],
                preferred_element_type=jnp.float32) + bhead_ref[...]
    o_ref[...] = y.astype(o_ref.dtype)                           # (G, DIM_OUT)


# ------------------------------ pallas wrapper --------------------------------
def _shared_spec(shape):
    """Full-array block, same block every step (fetched once, VMEM-resident)."""
    zeros = (0,) * len(shape)
    return pl.BlockSpec(shape, lambda b, _z=zeros: _z)


def graphormer_forward(x, kp):
    """x: (B, N, DIM_IN) node features for B dense graphs -> (B, DIM_OUT)."""
    bsz = x.shape[0]
    assert bsz % GRAPHS_PER_BLOCK == 0
    n_blocks = bsz // GRAPHS_PER_BLOCK

    args = (x, kp["w_pre"], kp["b_pre"],
            kp["ln1_g"], kp["ln1_b"], kp["wqkv"], kp["bqkv"], kp["wo"], kp["bo"],
            kp["ln2_g"], kp["ln2_b"], kp["w1"], kp["b1"], kp["w2"], kp["b2"],
            kp["w_head"], kp["b_head"])
    in_specs = [pl.BlockSpec((GRAPHS_PER_BLOCK, N_NODES, DIM_IN),
                             lambda b: (b, 0, 0))]
    in_specs += [_shared_spec(a.shape) for a in args[1:]]

    out = pl.pallas_call(
        functools.partial(graphormer_kernel,
                          num_layers=NUM_LAYERS, num_heads=NUM_HEADS,
                          n_nodes=N_NODES, graphs_per_block=GRAPHS_PER_BLOCK),
        out_shape=jax.ShapeDtypeStruct((n_blocks, GRAPHS_PER_BLOCK, DIM_OUT),
                                       jnp.float32),
        grid=(n_blocks,),
        in_specs=in_specs,
        out_specs=pl.BlockSpec((None, GRAPHS_PER_BLOCK, DIM_OUT),
                               lambda b: (b, 0, 0)),
        compiler_params=pltpu.CompilerParams(
            dimension_semantics=("parallel",),     # both v7x TCs take one step each
            vmem_limit_bytes=16 * 1024 * 1024),    # resident buffers are ~50 KB
    )(*args)
    return out.reshape(bsz, DIM_OUT)


# ------------------------------ parameter init --------------------------------
def _glorot(key, shape):
    fan_in, fan_out = shape[0], shape[1]
    lim = (6.0 / (fan_in + fan_out)) ** 0.5
    return jax.random.uniform(key, shape, jnp.float32, -lim, lim)


def init_params(key):
    """Flat per-layer parameters, (in, out) weight layout (y = x @ W + b)."""
    keys = iter(jax.random.split(key, 64))
    params = {
        "pre_mp": {"w": _glorot(next(keys), (DIM_IN, EMBED_DIM)),
                   "b": jnp.zeros((1, EMBED_DIM), jnp.float32)},
        "layers": [],
        "head": {"w": _glorot(next(keys), (EMBED_DIM, DIM_OUT)),
                 "b": jnp.zeros((1, DIM_OUT), jnp.float32)},
    }
    for _ in range(NUM_LAYERS):
        lp = {
            "ln1_g": jnp.ones((1, EMBED_DIM), jnp.float32),
            "ln1_b": jnp.zeros((1, EMBED_DIM), jnp.float32),
            "wq": _glorot(next(keys), (EMBED_DIM, EMBED_DIM)),
            "bq": jnp.zeros((1, EMBED_DIM), jnp.float32),
            "wk": _glorot(next(keys), (EMBED_DIM, EMBED_DIM)),
            "bk": jnp.zeros((1, EMBED_DIM), jnp.float32),
            "wv": _glorot(next(keys), (EMBED_DIM, EMBED_DIM)),
            "bv": jnp.zeros((1, EMBED_DIM), jnp.float32),
            "wo": _glorot(next(keys), (EMBED_DIM, EMBED_DIM)),
            "bo": jnp.zeros((1, EMBED_DIM), jnp.float32),
            "ln2_g": jnp.ones((1, EMBED_DIM), jnp.float32),
            "ln2_b": jnp.zeros((1, EMBED_DIM), jnp.float32),
            "w1": _glorot(next(keys), (EMBED_DIM, EMBED_DIM)),
            "b1": jnp.zeros((1, EMBED_DIM), jnp.float32),
            "w2": _glorot(next(keys), (EMBED_DIM, EMBED_DIM)),
            "b2": jnp.zeros((1, EMBED_DIM), jnp.float32),
        }
        params["layers"].append(lp)
    return params


def pack_params(params):
    """Stack per-layer weights, fuse QKV along the output axis and cast weight
    matrices (not biases / LN params) to bf16 MXU-operand dtype — all on host."""
    layers = params["layers"]
    stack = lambda key: jnp.stack([lp[key] for lp in layers])

    wqkv = jnp.stack([jnp.concatenate([lp["wq"], lp["wk"], lp["wv"]], axis=1)
                      for lp in layers]).astype(MXU_DTYPE)          # (L, D, 3D)
    bqkv = jnp.stack([jnp.concatenate([lp["bq"], lp["bk"], lp["bv"]], axis=1)
                      for lp in layers])                            # (L, 1, 3D) f32

    return {
        "w_pre": params["pre_mp"]["w"].astype(MXU_DTYPE),
        "b_pre": params["pre_mp"]["b"],
        "ln1_g": stack("ln1_g"), "ln1_b": stack("ln1_b"),
        "wqkv": wqkv, "bqkv": bqkv,
        "wo": stack("wo").astype(MXU_DTYPE), "bo": stack("bo"),
        "ln2_g": stack("ln2_g"), "ln2_b": stack("ln2_b"),
        "w1": stack("w1").astype(MXU_DTYPE), "b1": stack("b1"),
        "w2": stack("w2").astype(MXU_DTYPE), "b2": stack("b2"),
        "w_head": params["head"]["w"].astype(MXU_DTYPE),
        "b_head": params["head"]["b"],
    }


# ------------------------------ pure-JAX reference ----------------------------
def _ref_single(x, params):
    """f32 reference forward for one graph using the flat (unpacked) parameters."""
    h = jnp.maximum(x @ params["pre_mp"]["w"] + params["pre_mp"]["b"], 0.0)
    hd = HEAD_DIM
    for p in params["layers"]:
        z = _layernorm(h, p["ln1_g"], p["ln1_b"])
        q = z @ p["wq"] + p["bq"]
        k = z @ p["wk"] + p["bk"]
        v = z @ p["wv"] + p["bv"]
        outs = []
        for hi in range(NUM_HEADS):
            sl = slice(hi * hd, (hi + 1) * hd)
            s = (q[:, sl] / (hd ** 0.5)) @ k[:, sl].T
            outs.append(jax.nn.softmax(s, axis=-1) @ v[:, sl])
        attn = jnp.concatenate(outs, axis=-1) @ p["wo"] + p["bo"]
        h = attn + h
        z2 = _layernorm(h, p["ln2_g"], p["ln2_b"])
        z2 = jax.nn.gelu(z2 @ p["w1"] + p["b1"], approximate=False) @ p["w2"] + p["b2"]
        h = z2 + h
    pooled = jnp.mean(h, axis=0, keepdims=True)
    return pooled @ params["head"]["w"] + params["head"]["b"]   # (1, DIM_OUT)


# ------------------------------------ main ------------------------------------
if __name__ == "__main__":
    key = jax.random.PRNGKey(0)
    k_x, k_p = jax.random.split(key)
    x = jax.random.normal(k_x, (N_GRAPHS, N_NODES, DIM_IN), jnp.float32)

    params = init_params(k_p)
    kp = pack_params(params)

    out = jax.block_until_ready(graphormer_forward(x, kp))

    ref = jnp.stack([_ref_single(x[b], params)[0] for b in range(N_GRAPHS)])
    assert out.shape == (N_GRAPHS, DIM_OUT), out.shape
    # Relaxed tolerance: bf16 MXU operands (f32 accumulation) plus the EUP
    # approximate reciprocal in the softmax denominator dominate the error.
    assert jnp.allclose(out, ref, rtol=5e-2, atol=5e-2), (out, ref)

    print("KERNEL_OK")
</pallas_src>

<mosaic_0001>
module attributes {stable_mosaic.version = 11 : i64} {
  func.func @graphormer_kernel(%arg0: i32, %arg1: memref<2x16x8xf32, #tpu.memory_space<vmem>>, %arg2: memref<8x32xbf16, #tpu.memory_space<vmem>>, %arg3: memref<1x32xf32, #tpu.memory_space<vmem>>, %arg4: memref<2x1x32xf32, #tpu.memory_space<vmem>>, %arg5: memref<2x1x32xf32, #tpu.memory_space<vmem>>, %arg6: memref<2x32x96xbf16, #tpu.memory_space<vmem>>, %arg7: memref<2x1x96xf32, #tpu.memory_space<vmem>>, %arg8: memref<2x32x32xbf16, #tpu.memory_space<vmem>>, %arg9: memref<2x1x32xf32, #tpu.memory_space<vmem>>, %arg10: memref<2x1x32xf32, #tpu.memory_space<vmem>>, %arg11: memref<2x1x32xf32, #tpu.memory_space<vmem>>, %arg12: memref<2x32x32xbf16, #tpu.memory_space<vmem>>, %arg13: memref<2x1x32xf32, #tpu.memory_space<vmem>>, %arg14: memref<2x32x32xbf16, #tpu.memory_space<vmem>>, %arg15: memref<2x1x32xf32, #tpu.memory_space<vmem>>, %arg16: memref<32x4xbf16, #tpu.memory_space<vmem>>, %arg17: memref<1x4xf32, #tpu.memory_space<vmem>>, %arg18: memref<1x2x4xf32, #tpu.memory_space<vmem>>) attributes {dimension_semantics = [#tpu.dimension_semantics<parallel>], iteration_bounds = array<i64: 2>, scalar_prefetch = 0 : i64, scratch_operands = 0 : i64, tpu.core_type = #tpu.core_type<tc>, window_params = [{transform_indices = @transform_0, window_bounds = array<i64: 2, 16, 8>}, {pipeline_mode = #tpu.pipeline_mode<synchronous>, transform_indices = @transform_1, window_bounds = array<i64: 8, 32>}, {pipeline_mode = #tpu.pipeline_mode<synchronous>, transform_indices = @transform_2, window_bounds = array<i64: 1, 32>}, {pipeline_mode = #tpu.pipeline_mode<synchronous>, transform_indices = @transform_3, window_bounds = array<i64: 2, 1, 32>}, {pipeline_mode = #tpu.pipeline_mode<synchronous>, transform_indices = @transform_4, window_bounds = array<i64: 2, 1, 32>}, {pipeline_mode = #tpu.pipeline_mode<synchronous>, transform_indices = @transform_5, window_bounds = array<i64: 2, 32, 96>}, {pipeline_mode = #tpu.pipeline_mode<synchronous>, transform_indices = @transform_6, window_bounds = array<i64: 2, 1, 96>}, {pipeline_mode = #tpu.pipeline_mode<synchronous>, transform_indices = @transform_7, window_bounds = array<i64: 2, 32, 32>}, {pipeline_mode = #tpu.pipeline_mode<synchronous>, transform_indices = @transform_8, window_bounds = array<i64: 2, 1, 32>}, {pipeline_mode = #tpu.pipeline_mode<synchronous>, transform_indices = @transform_9, window_bounds = array<i64: 2, 1, 32>}, {pipeline_mode = #tpu.pipeline_mode<synchronous>, transform_indices = @transform_10, window_bounds = array<i64: 2, 1, 32>}, {pipeline_mode = #tpu.pipeline_mode<synchronous>, transform_indices = @transform_11, window_bounds = array<i64: 2, 32, 32>}, {pipeline_mode = #tpu.pipeline_mode<synchronous>, transform_indices = @transform_12, window_bounds = array<i64: 2, 1, 32>}, {pipeline_mode = #tpu.pipeline_mode<synchronous>, transform_indices = @transform_13, window_bounds = array<i64: 2, 32, 32>}, {pipeline_mode = #tpu.pipeline_mode<synchronous>, transform_indices = @transform_14, window_bounds = array<i64: 2, 1, 32>}, {pipeline_mode = #tpu.pipeline_mode<synchronous>, transform_indices = @transform_15, window_bounds = array<i64: 32, 4>}, {pipeline_mode = #tpu.pipeline_mode<synchronous>, transform_indices = @transform_16, window_bounds = array<i64: 1, 4>}, {transform_indices = @transform_17, window_bounds = array<i64: 1, 2, 4>}]} {
    %c0 = arith.constant 0 : index
    %c0_0 = arith.constant 0 : index
    %c0_1 = arith.constant 0 : index
    %0 = vector.load %arg1[%c0, %c0_0, %c0_1] : memref<2x16x8xf32, #tpu.memory_space<vmem>>, vector<2x16x8xf32>
    %1 = vector.shape_cast %0 : vector<2x16x8xf32> to vector<32x8xf32>
    %2 = arith.truncf %1 : vector<32x8xf32> to vector<32x8xbf16>
    %c0_2 = arith.constant 0 : index
    %c0_3 = arith.constant 0 : index
    %3 = vector.load %arg2[%c0_2, %c0_3] : memref<8x32xbf16, #tpu.memory_space<vmem>>, vector<8x32xbf16>
    %cst = arith.constant dense<0.000000e+00> : vector<32x32xf32>
    %4 = tpu.matmul %2, %3, %cst {dimension_numbers = #tpu.dot_dimension_numbers<[1], [0], [0], [1], [0, 0, 1, 1], [], []>} : vector<32x8xbf16>, vector<8x32xbf16>, vector<32x32xf32> -> vector<32x32xf32>
    %c0_4 = arith.constant 0 : index
    %c0_5 = arith.constant 0 : index
    %5 = vector.load %arg3[%c0_4, %c0_5] : memref<1x32xf32, #tpu.memory_space<vmem>>, vector<1x32xf32>
    %6 = vector.broadcast %5 : vector<1x32xf32> to vector<32x32xf32>
    %7 = arith.addf %4, %6 : vector<32x32xf32>
    %cst_6 = arith.constant 0.000000e+00 : f32
    %8 = vector.broadcast %cst_6 : f32 to vector<32x32xf32>
    %9 = arith.maximumf %7, %8 : vector<32x32xf32>
    %c0_7 = arith.constant 0 : index
    %c0_8 = arith.constant 0 : index
    %c0_9 = arith.constant 0 : index
    %10 = vector.load %arg4[%c0_7, %c0_8, %c0_9] : memref<2x1x32xf32, #tpu.memory_space<vmem>>, vector<1x1x32xf32>
    %11 = vector.shape_cast %10 : vector<1x1x32xf32> to vector<1x32xf32>
    %c0_10 = arith.constant 0 : index
    %c0_11 = arith.constant 0 : index
    %c0_12 = arith.constant 0 : index
    %12 = vector.load %arg5[%c0_10, %c0_11, %c0_12] : memref<2x1x32xf32, #tpu.memory_space<vmem>>, vector<1x1x32xf32>
    %13 = vector.shape_cast %12 : vector<1x1x32xf32> to vector<1x32xf32>
    %cst_13 = arith.constant dense<0.000000e+00> : vector<32xf32>
    %14 = vector.multi_reduction <add>, %9, %cst_13 [1] : vector<32x32xf32> to vector<32xf32>
    %15 = vector.shape_cast %14 : vector<32xf32> to vector<32x1xf32>
    %cst_14 = arith.constant 3.200000e+01 : f32
    %16 = vector.broadcast %cst_14 : f32 to vector<32x1xf32>
    %17 = arith.divf %15, %16 : vector<32x1xf32>
    %18 = vector.broadcast %17 : vector<32x1xf32> to vector<32x32xf32>
    %19 = arith.subf %9, %18 : vector<32x32xf32>
    %20 = arith.mulf %19, %19 : vector<32x32xf32>
    %cst_15 = arith.constant dense<0.000000e+00> : vector<32xf32>
    %21 = vector.multi_reduction <add>, %20, %cst_15 [1] : vector<32x32xf32> to vector<32xf32>
    %22 = vector.shape_cast %21 : vector<32xf32> to vector<32x1xf32>
    %cst_16 = arith.constant 3.200000e+01 : f32
    %23 = vector.broadcast %cst_16 : f32 to vector<32x1xf32>
    %24 = arith.divf %22, %23 : vector<32x1xf32>
    %25 = vector.broadcast %17 : vector<32x1xf32> to vector<32x32xf32>
    %26 = arith.subf %9, %25 : vector<32x32xf32>
    %cst_17 = arith.constant 9.99999974E-6 : f32
    %27 = vector.broadcast %cst_17 : f32 to vector<32x1xf32>
    %28 = arith.addf %24, %27 : vector<32x1xf32>
    %29 = math.rsqrt %28 : vector<32x1xf32>
    %30 = vector.broadcast %29 : vector<32x1xf32> to vector<32x32xf32>
    %31 = arith.mulf %26, %30 : vector<32x32xf32>
    %32 = vector.broadcast %11 : vector<1x32xf32> to vector<32x32xf32>
    %33 = arith.mulf %31, %32 : vector<32x32xf32>
    %34 = vector.broadcast %13 : vector<1x32xf32> to vector<32x32xf32>
    %35 = arith.addf %33, %34 : vector<32x32xf32>
    %36 = arith.truncf %35 : vector<32x32xf32> to vector<32x32xbf16>
    %c0_18 = arith.constant 0 : index
    %c0_19 = arith.constant 0 : index
    %c0_20 = arith.constant 0 : index
    %37 = vector.load %arg6[%c0_18, %c0_19, %c0_20] : memref<2x32x96xbf16, #tpu.memory_space<vmem>>, vector<1x32x96xbf16>
    %38 = vector.shape_cast %37 : vector<1x32x96xbf16> to vector<32x96xbf16>
    %cst_21 = arith.constant dense<0.000000e+00> : vector<32x96xf32>
    %39 = tpu.matmul %36, %38, %cst_21 {dimension_numbers = #tpu.dot_dimension_numbers<[1], [0], [0], [1], [0, 0, 1, 1], [], []>} : vector<32x32xbf16>, vector<32x96xbf16>, vector<32x96xf32> -> vector<32x96xf32>
    %c0_22 = arith.constant 0 : index
    %c0_23 = arith.constant 0 : index
    %c0_24 = arith.constant 0 : index
    %40 = vector.load %arg7[%c0_22, %c0_23, %c0_24] : memref<2x1x96xf32, #tpu.memory_space<vmem>>, vector<1x1x96xf32>
    %41 = vector.shape_cast %40 : vector<1x1x96xf32> to vector<1x96xf32>
    %42 = vector.broadcast %41 : vector<1x96xf32> to vector<32x96xf32>
    %43 = arith.addf %39, %42 : vector<32x96xf32>
    %44 = vector.extract_strided_slice %43 {offsets = [0, 0], sizes = [32, 32], strides = [1, 1]} : vector<32x96xf32> to vector<32x32xf32>
    %45 = vector.shape_cast %44 : vector<32x32xf32> to vector<2x16x32xf32>
    %46 = arith.truncf %45 : vector<2x16x32xf32> to vector<2x16x32xbf16>
    %47 = vector.extract_strided_slice %43 {offsets = [0, 32], sizes = [32, 32], strides = [1, 1]} : vector<32x96xf32> to vector<32x32xf32>
    %48 = vector.shape_cast %47 : vector<32x32xf32> to vector<2x16x32xf32>
    %49 = arith.truncf %48 : vector<2x16x32xf32> to vector<2x16x32xbf16>
    %50 = vector.extract_strided_slice %43 {offsets = [0, 64], sizes = [32, 32], strides = [1, 1]} : vector<32x96xf32> to vector<32x32xf32>
    %51 = vector.shape_cast %50 : vector<32x32xf32> to vector<2x16x32xf32>
    %52 = arith.truncf %51 : vector<2x16x32xf32> to vector<2x16x32xbf16>
    %53 = vector.extract_strided_slice %46 {offsets = [0, 0, 0], sizes = [2, 16, 8], strides = [1, 1, 1]} : vector<2x16x32xbf16> to vector<2x16x8xbf16>
    %54 = vector.extract_strided_slice %49 {offsets = [0, 0, 0], sizes = [2, 16, 8], strides = [1, 1, 1]} : vector<2x16x32xbf16> to vector<2x16x8xbf16>
    "tpu.trace_start"() <{level = 10 : i32, message = "gnc,gmc->gnm"}> : () -> ()
    %cst_25 = arith.constant dense<0.000000e+00> : vector<2x16x16xf32>
    %55 = tpu.matmul %53, %54, %cst_25 {dimension_numbers = #tpu.dot_dimension_numbers<[2], [2], [1], [1], [0, 0, 0, 1, 1, 1], [0], [0]>} : vector<2x16x8xbf16>, vector<2x16x8xbf16>, vector<2x16x16xf32> -> vector<2x16x16xf32>
    "tpu.trace_stop"() : () -> ()
    %cst_26 = arith.constant 0.353553385 : f32
    %56 = vector.broadcast %cst_26 : f32 to vector<2x16x16xf32>
    %57 = arith.mulf %55, %56 : vector<2x16x16xf32>
    %cst_27 = arith.constant dense<0xFF800000> : vector<2x16xf32>
    %58 = vector.multi_reduction <maximumf>, %57, %cst_27 [2] : vector<2x16x16xf32> to vector<2x16xf32>
    %59 = vector.shape_cast %58 : vector<2x16xf32> to vector<2x16x1xf32>
    %60 = vector.broadcast %59 : vector<2x16x1xf32> to vector<2x16x16xf32>
    %61 = arith.subf %57, %60 : vector<2x16x16xf32>
    %62 = math.exp %61 : vector<2x16x16xf32>
    %cst_28 = arith.constant dense<0.000000e+00> : vector<2x16xf32>
    %63 = vector.multi_reduction <add>, %62, %cst_28 [2] : vector<2x16x16xf32> to vector<2x16xf32>
    %64 = vector.shape_cast %63 : vector<2x16xf32> to vector<2x16x1xf32>
    %65 = tpu.reciprocal %64 {approx = true} : vector<2x16x1xf32> -> vector<2x16x1xf32>
    %66 = vector.broadcast %65 : vector<2x16x1xf32> to vector<2x16x16xf32>
    %67 = arith.mulf %62, %66 : vector<2x16x16xf32>
    %68 = arith.truncf %67 : vector<2x16x16xf32> to vector<2x16x16xbf16>
    %69 = vector.extract_strided_slice %52 {offsets = [0, 0, 0], sizes = [2, 16, 8], strides = [1, 1, 1]} : vector<2x16x32xbf16> to vector<2x16x8xbf16>
    "tpu.trace_start"() <{level = 10 : i32, message = "gnm,gmc->gnc"}> : () -> ()
    %cst_29 = arith.constant dense<0.000000e+00> : vector<2x16x8xf32>
    %70 = tpu.matmul %68, %69, %cst_29 {dimension_numbers = #tpu.dot_dimension_numbers<[2], [1], [1], [2], [0, 0, 0, 1, 1, 2], [0], [0]>} : vector<2x16x16xbf16>, vector<2x16x8xbf16>, vector<2x16x8xf32> -> vector<2x16x8xf32>
    "tpu.trace_stop"() : () -> ()
    %71 = vector.extract_strided_slice %46 {offsets = [0, 0, 8], sizes = [2, 16, 8], strides = [1, 1, 1]} : vector<2x16x32xbf16> to vector<2x16x8xbf16>
    %72 = vector.extract_strided_slice %49 {offsets = [0, 0, 8], sizes = [2, 16, 8], strides = [1, 1, 1]} : vector<2x16x32xbf16> to vector<2x16x8xbf16>
    "tpu.trace_start"() <{level = 10 : i32, message = "gnc,gmc->gnm"}> : () -> ()
    %cst_30 = arith.constant dense<0.000000e+00> : vector<2x16x16xf32>
    %73 = tpu.matmul %71, %72, %cst_30 {dimension_numbers = #tpu.dot_dimension_numbers<[2], [2], [1], [1], [0, 0, 0, 1, 1, 1], [0], [0]>} : vector<2x16x8xbf16>, vector<2x16x8xbf16>, vector<2x16x16xf32> -> vector<2x16x16xf32>
    "tpu.trace_stop"() : () -> ()
    %cst_31 = arith.constant 0.353553385 : f32
    %74 = vector.broadcast %cst_31 : f32 to vector<2x16x16xf32>
    %75 = arith.mulf %73, %74 : vector<2x16x16xf32>
    %cst_32 = arith.constant dense<0xFF800000> : vector<2x16xf32>
    %76 = vector.multi_reduction <maximumf>, %75, %cst_32 [2] : vector<2x16x16xf32> to vector<2x16xf32>
    %77 = vector.shape_cast %76 : vector<2x16xf32> to vector<2x16x1xf32>
    %78 = vector.broadcast %77 : vector<2x16x1xf32> to vector<2x16x16xf32>
    %79 = arith.subf %75, %78 : vector<2x16x16xf32>
    %80 = math.exp %79 : vector<2x16x16xf32>
    %cst_33 = arith.constant dense<0.000000e+00> : vector<2x16xf32>
    %81 = vector.multi_reduction <add>, %80, %cst_33 [2] : vector<2x16x16xf32> to vector<2x16xf32>
    %82 = vector.shape_cast %81 : vector<2x16xf32> to vector<2x16x1xf32>
    %83 = tpu.reciprocal %82 {approx = true} : vector<2x16x1xf32> -> vector<2x16x1xf32>
    %84 = vector.broadcast %83 : vector<2x16x1xf32> to vector<2x16x16xf32>
    %85 = arith.mulf %80, %84 : vector<2x16x16xf32>
    %86 = arith.truncf %85 : vector<2x16x16xf32> to vector<2x16x16xbf16>
    %87 = vector.extract_strided_slice %52 {offsets = [0, 0, 8], sizes = [2, 16, 8], strides = [1, 1, 1]} : vector<2x16x32xbf16> to vector<2x16x8xbf16>
    "tpu.trace_start"() <{level = 10 : i32, message = "gnm,gmc->gnc"}> : () -> ()
    %cst_34 = arith.constant dense<0.000000e+00> : vector<2x16x8xf32>
    %88 = tpu.matmul %86, %87, %cst_34 {dimension_numbers = #tpu.dot_dimension_numbers<[2], [1], [1], [2], [0, 0, 0, 1, 1, 2], [0], [0]>} : vector<2x16x16xbf16>, vector<2x16x8xbf16>, vector<2x16x8xf32> -> vector<2x16x8xf32>
    "tpu.trace_stop"() : () -> ()
    %89 = vector.extract_strided_slice %46 {offsets = [0, 0, 16], sizes = [2, 16, 8], strides = [1, 1, 1]} : vector<2x16x32xbf16> to vector<2x16x8xbf16>
    %90 = vector.extract_strided_slice %49 {offsets = [0, 0, 16], sizes = [2, 16, 8], strides = [1, 1, 1]} : vector<2x16x32xbf16> to vector<2x16x8xbf16>
    "tpu.trace_start"() <{level = 10 : i32, message = "gnc,gmc->gnm"}> : () -> ()
    %cst_35 = arith.constant dense<0.000000e+00> : vector<2x16x16xf32>
    %91 = tpu.matmul %89, %90, %cst_35 {dimension_numbers = #tpu.dot_dimension_numbers<[2], [2], [1], [1], [0, 0, 0, 1, 1, 1], [0], [0]>} : vector<2x16x8xbf16>, vector<2x16x8xbf16>, vector<2x16x16xf32> -> vector<2x16x16xf32>
    "tpu.trace_stop"() : () -> ()
    %cst_36 = arith.constant 0.353553385 : f32
    %92 = vector.broadcast %cst_36 : f32 to vector<2x16x16xf32>
    %93 = arith.mulf %91, %92 : vector<2x16x16xf32>
    %cst_37 = arith.constant dense<0xFF800000> : vector<2x16xf32>
    %94 = vector.multi_reduction <maximumf>, %93, %cst_37 [2] : vector<2x16x16xf32> to vector<2x16xf32>
    %95 = vector.shape_cast %94 : vector<2x16xf32> to vector<2x16x1xf32>
    %96 = vector.broadcast %95 : vector<2x16x1xf32> to vector<2x16x16xf32>
    %97 = arith.subf %93, %96 : vector<2x16x16xf32>
    %98 = math.exp %97 : vector<2x16x16xf32>
    %cst_38 = arith.constant dense<0.000000e+00> : vector<2x16xf32>
    %99 = vector.multi_reduction <add>, %98, %cst_38 [2] : vector<2x16x16xf32> to vector<2x16xf32>
    %100 = vector.shape_cast %99 : vector<2x16xf32> to vector<2x16x1xf32>
    %101 = tpu.reciprocal %100 {approx = true} : vector<2x16x1xf32> -> vector<2x16x1xf32>
    %102 = vector.broadcast %101 : vector<2x16x1xf32> to vector<2x16x16xf32>
    %103 = arith.mulf %98, %102 : vector<2x16x16xf32>
    %104 = arith.truncf %103 : vector<2x16x16xf32> to vector<2x16x16xbf16>
    %105 = vector.extract_strided_slice %52 {offsets = [0, 0, 16], sizes = [2, 16, 8], strides = [1, 1, 1]} : vector<2x16x32xbf16> to vector<2x16x8xbf16>
    "tpu.trace_start"() <{level = 10 : i32, message = "gnm,gmc->gnc"}> : () -> ()
    %cst_39 = arith.constant dense<0.000000e+00> : vector<2x16x8xf32>
    %106 = tpu.matmul %104, %105, %cst_39 {dimension_numbers = #tpu.dot_dimension_numbers<[2], [1], [1], [2], [0, 0, 0, 1, 1, 2], [0], [0]>} : vector<2x16x16xbf16>, vector<2x16x8xbf16>, vector<2x16x8xf32> -> vector<2x16x8xf32>
    "tpu.trace_stop"() : () -> ()
    %107 = vector.extract_strided_slice %46 {offsets = [0, 0, 24], sizes = [2, 16, 8], strides = [1, 1, 1]} : vector<2x16x32xbf16> to vector<2x16x8xbf16>
    %108 = vector.extract_strided_slice %49 {offsets = [0, 0, 24], sizes = [2, 16, 8], strides = [1, 1, 1]} : vector<2x16x32xbf16> to vector<2x16x8xbf16>
    "tpu.trace_start"() <{level = 10 : i32, message = "gnc,gmc->gnm"}> : () -> ()
    %cst_40 = arith.constant dense<0.000000e+00> : vector<2x16x16xf32>
    %109 = tpu.matmul %107, %108, %cst_40 {dimension_numbers = #tpu.dot_dimension_numbers<[2], [2], [1], [1], [0, 0, 0, 1, 1, 1], [0], [0]>} : vector<2x16x8xbf16>, vector<2x16x8xbf16>, vector<2x16x16xf32> -> vector<2x16x16xf32>
    "tpu.trace_stop"() : () -> ()
    %cst_41 = arith.constant 0.353553385 : f32
    %110 = vector.broadcast %cst_41 : f32 to vector<2x16x16xf32>
    %111 = arith.mulf %109, %110 : vector<2x16x16xf32>
    %cst_42 = arith.constant dense<0xFF800000> : vector<2x16xf32>
    %112 = vector.multi_reduction <maximumf>, %111, %cst_42 [2] : vector<2x16x16xf32> to vector<2x16xf32>
    %113 = vector.shape_cast %112 : vector<2x16xf32> to vector<2x16x1xf32>
    %114 = vector.broadcast %113 : vector<2x16x1xf32> to vector<2x16x16xf32>
    %115 = arith.subf %111, %114 : vector<2x16x16xf32>
    %116 = math.exp %115 : vector<2x16x16xf32>
    %cst_43 = arith.constant dense<0.000000e+00> : vector<2x16xf32>
    %117 = vector.multi_reduction <add>, %116, %cst_43 [2] : vector<2x16x16xf32> to vector<2x16xf32>
    %118 = vector.shape_cast %117 : vector<2x16xf32> to vector<2x16x1xf32>
    %119 = tpu.reciprocal %118 {approx = true} : vector<2x16x1xf32> -> vector<2x16x1xf32>
    %120 = vector.broadcast %119 : vector<2x16x1xf32> to vector<2x16x16xf32>
    %121 = arith.mulf %116, %120 : vector<2x16x16xf32>
    %122 = arith.truncf %121 : vector<2x16x16xf32> to vector<2x16x16xbf16>
    %123 = vector.extract_strided_slice %52 {offsets = [0, 0, 24], sizes = [2, 16, 8], strides = [1, 1, 1]} : vector<2x16x32xbf16> to vector<2x16x8xbf16>
    "tpu.trace_start"() <{level = 10 : i32, message = "gnm,gmc->gnc"}> : () -> ()
    %cst_44 = arith.constant dense<0.000000e+00> : vector<2x16x8xf32>
    %124 = tpu.matmul %122, %123, %cst_44 {dimension_numbers = #tpu.dot_dimension_numbers<[2], [1], [1], [2], [0, 0, 0, 1, 1, 2], [0], [0]>} : vector<2x16x16xbf16>, vector<2x16x8xbf16>, vector<2x16x8xf32> -> vector<2x16x8xf32>
    "tpu.trace_stop"() : () -> ()
    %125 = tpu.concatenate %70, %88, %106, %124 in 2 : vector<2x16x8xf32>, vector<2x16x8xf32>, vector<2x16x8xf32>, vector<2x16x8xf32> -> vector<2x16x32xf32>
    %126 = vector.shape_cast %125 : vector<2x16x32xf32> to vector<32x32xf32>
    %127 = arith.truncf %126 : vector<32x32xf32> to vector<32x32xbf16>
    %c0_45 = arith.constant 0 : index
    %c0_46 = arith.constant 0 : index
    %c0_47 = arith.constant 0 : index
    %128 = vector.load %arg8[%c0_45, %c0_46, %c0_47] : memref<2x32x32xbf16, #tpu.memory_space<vmem>>, vector<1x32x32xbf16>
    %129 = vector.shape_cast %128 : vector<1x32x32xbf16> to vector<32x32xbf16>
    %cst_48 = arith.constant dense<0.000000e+00> : vector<32x32xf32>
    %130 = tpu.matmul %127, %129, %cst_48 {dimension_numbers = #tpu.dot_dimension_numbers<[1], [0], [0], [1], [0, 0, 1, 1], [], []>} : vector<32x32xbf16>, vector<32x32xbf16>, vector<32x32xf32> -> vector<32x32xf32>
    %c0_49 = arith.constant 0 : index
    %c0_50 = arith.constant 0 : index
    %c0_51 = arith.constant 0 : index
    %131 = vector.load %arg9[%c0_49, %c0_50, %c0_51] : memref<2x1x32xf32, #tpu.memory_space<vmem>>, vector<1x1x32xf32>
    %132 = vector.shape_cast %131 : vector<1x1x32xf32> to vector<1x32xf32>
    %133 = vector.broadcast %132 : vector<1x32xf32> to vector<32x32xf32>
    %134 = arith.addf %130, %133 : vector<32x32xf32>
    %135 = arith.addf %134, %9 : vector<32x32xf32>
    %c0_52 = arith.constant 0 : index
    %c0_53 = arith.constant 0 : index
    %c0_54 = arith.constant 0 : index
    %136 = vector.load %arg10[%c0_52, %c0_53, %c0_54] : memref<2x1x32xf32, #tpu.memory_space<vmem>>, vector<1x1x32xf32>
    %137 = vector.shape_cast %136 : vector<1x1x32xf32> to vector<1x32xf32>
    %c0_55 = arith.constant 0 : index
    %c0_56 = arith.constant 0 : index
    %c0_57 = arith.constant 0 : index
    %138 = vector.load %arg11[%c0_55, %c0_56, %c0_57] : memref<2x1x32xf32, #tpu.memory_space<vmem>>, vector<1x1x32xf32>
    %139 = vector.shape_cast %138 : vector<1x1x32xf32> to vector<1x32xf32>
    %cst_58 = arith.constant dense<0.000000e+00> : vector<32xf32>
    %140 = vector.multi_reduction <add>, %135, %cst_58 [1] : vector<32x32xf32> to vector<32xf32>
    %141 = vector.shape_cast %140 : vector<32xf32> to vector<32x1xf32>
    %cst_59 = arith.constant 3.200000e+01 : f32
    %142 = vector.broadcast %cst_59 : f32 to vector<32x1xf32>
    %143 = arith.divf %141, %142 : vector<32x1xf32>
    %144 = vector.broadcast %143 : vector<32x1xf32> to vector<32x32xf32>
    %145 = arith.subf %135, %144 : vector<32x32xf32>
    %146 = arith.mulf %145, %145 : vector<32x32xf32>
    %cst_60 = arith.constant dense<0.000000e+00> : vector<32xf32>
    %147 = vector.multi_reduction <add>, %146, %cst_60 [1] : vector<32x32xf32> to vector<32xf32>
    %148 = vector.shape_cast %147 : vector<32xf32> to vector<32x1xf32>
    %cst_61 = arith.constant 3.200000e+01 : f32
    %149 = vector.broadcast %cst_61 : f32 to vector<32x1xf32>
    %150 = arith.divf %148, %149 : vector<32x1xf32>
    %151 = vector.broadcast %143 : vector<32x1xf32> to vector<32x32xf32>
    %152 = arith.subf %135, %151 : vector<32x32xf32>
    %cst_62 = arith.constant 9.99999974E-6 : f32
    %153 = vector.broadcast %cst_62 : f32 to vector<32x1xf32>
    %154 = arith.addf %150, %153 : vector<32x1xf32>
    %155 = math.rsqrt %154 : vector<32x1xf32>
    %156 = vector.broadcast %155 : vector<32x1xf32> to vector<32x32xf32>
    %157 = arith.mulf %152, %156 : vector<32x32xf32>
    %158 = vector.broadcast %137 : vector<1x32xf32> to vector<32x32xf32>
    %159 = arith.mulf %157, %158 : vector<32x32xf32>
    %160 = vector.broadcast %139 : vector<1x32xf32> to vector<32x32xf32>
    %161 = arith.addf %159, %160 : vector<32x32xf32>
    %162 = arith.truncf %161 : vector<32x32xf32> to vector<32x32xbf16>
    %c0_63 = arith.constant 0 : index
    %c0_64 = arith.constant 0 : index
    %c0_65 = arith.constant 0 : index
    %163 = vector.load %arg12[%c0_63, %c0_64, %c0_65] : memref<2x32x32xbf16, #tpu.memory_space<vmem>>, vector<1x32x32xbf16>
    %164 = vector.shape_cast %163 : vector<1x32x32xbf16> to vector<32x32xbf16>
    %cst_66 = arith.constant dense<0.000000e+00> : vector<32x32xf32>
    %165 = tpu.matmul %162, %164, %cst_66 {dimension_numbers = #tpu.dot_dimension_numbers<[1], [0], [0], [1], [0, 0, 1, 1], [], []>} : vector<32x32xbf16>, vector<32x32xbf16>, vector<32x32xf32> -> vector<32x32xf32>
    %c0_67 = arith.constant 0 : index
    %c0_68 = arith.constant 0 : index
    %c0_69 = arith.constant 0 : index
    %166 = vector.load %arg13[%c0_67, %c0_68, %c0_69] : memref<2x1x32xf32, #tpu.memory_space<vmem>>, vector<1x1x32xf32>
    %167 = vector.shape_cast %166 : vector<1x1x32xf32> to vector<1x32xf32>
    %168 = vector.broadcast %167 : vector<1x32xf32> to vector<32x32xf32>
    %169 = arith.addf %165, %168 : vector<32x32xf32>
    %cst_70 = arith.constant 5.000000e-01 : f32
    %170 = vector.broadcast %cst_70 : f32 to vector<32x32xf32>
    %171 = arith.mulf %170, %169 : vector<32x32xf32>
    %cst_71 = arith.constant 0.707106769 : f32
    %172 = vector.broadcast %cst_71 : f32 to vector<32x32xf32>
    %173 = arith.mulf %169, %172 : vector<32x32xf32>
    %174 = math.absf %173 : vector<32x32xf32>
    %cst_72 = arith.constant 0.327591091 : f32
    %175 = vector.broadcast %cst_72 : f32 to vector<32x32xf32>
    %176 = arith.mulf %175, %174 : vector<32x32xf32>
    %cst_73 = arith.constant 1.000000e+00 : f32
    %177 = vector.broadcast %cst_73 : f32 to vector<32x32xf32>
    %178 = arith.addf %177, %176 : vector<32x32xf32>
    %cst_74 = arith.constant 1.000000e+00 : f32
    %179 = vector.broadcast %cst_74 : f32 to vector<32x32xf32>
    %180 = arith.divf %179, %178 : vector<32x32xf32>
    %cst_75 = arith.constant 1.06140542 : f32
    %181 = vector.broadcast %cst_75 : f32 to vector<32x32xf32>
    %182 = arith.mulf %181, %180 : vector<32x32xf32>
    %cst_76 = arith.constant -1.45315206 : f32
    %183 = vector.broadcast %cst_76 : f32 to vector<32x32xf32>
    %184 = arith.addf %182, %183 : vector<32x32xf32>
    %185 = arith.mulf %184, %180 : vector<32x32xf32>
    %cst_77 = arith.constant 1.42141378 : f32
    %186 = vector.broadcast %cst_77 : f32 to vector<32x32xf32>
    %187 = arith.addf %185, %186 : vector<32x32xf32>
    %188 = arith.mulf %187, %180 : vector<32x32xf32>
    %cst_78 = arith.constant -0.284496725 : f32
    %189 = vector.broadcast %cst_78 : f32 to vector<32x32xf32>
    %190 = arith.addf %188, %189 : vector<32x32xf32>
    %191 = arith.mulf %190, %180 : vector<32x32xf32>
    %cst_79 = arith.constant 0.254829586 : f32
    %192 = vector.broadcast %cst_79 : f32 to vector<32x32xf32>
    %193 = arith.addf %191, %192 : vector<32x32xf32>
    %194 = arith.mulf %193, %180 : vector<32x32xf32>
    %cst_80 = arith.constant 0.000000e+00 : f32
    %195 = vector.broadcast %cst_80 : f32 to vector<32x32xf32>
    %196 = arith.subf %195, %174 : vector<32x32xf32>
    %197 = arith.mulf %196, %174 : vector<32x32xf32>
    %198 = math.exp %197 : vector<32x32xf32>
    %199 = arith.mulf %194, %198 : vector<32x32xf32>
    %cst_81 = arith.constant 1.000000e+00 : f32
    %200 = vector.broadcast %cst_81 : f32 to vector<32x32xf32>
    %201 = arith.subf %200, %199 : vector<32x32xf32>
    %cst_82 = arith.constant 0.000000e+00 : f32
    %202 = vector.broadcast %cst_82 : f32 to vector<32x32xf32>
    %203 = arith.cmpf oge, %173, %202 : vector<32x32xf32>
    %cst_83 = arith.constant 0.000000e+00 : f32
    %204 = vector.broadcast %cst_83 : f32 to vector<32x32xf32>
    %205 = arith.subf %204, %201 : vector<32x32xf32>
    %206 = arith.select %203, %201, %205 : vector<32x32xi1>, vector<32x32xf32>
    %cst_84 = arith.constant 1.000000e+00 : f32
    %207 = vector.broadcast %cst_84 : f32 to vector<32x32xf32>
    %208 = arith.addf %207, %206 : vector<32x32xf32>
    %209 = arith.mulf %171, %208 : vector<32x32xf32>
    %210 = arith.truncf %209 : vector<32x32xf32> to vector<32x32xbf16>
    %c0_85 = arith.constant 0 : index
    %c0_86 = arith.constant 0 : index
    %c0_87 = arith.constant 0 : index
    %211 = vector.load %arg14[%c0_85, %c0_86, %c0_87] : memref<2x32x32xbf16, #tpu.memory_space<vmem>>, vector<1x32x32xbf16>
    %212 = vector.shape_cast %211 : vector<1x32x32xbf16> to vector<32x32xbf16>
    %cst_88 = arith.constant dense<0.000000e+00> : vector<32x32xf32>
    %213 = tpu.matmul %210, %212, %cst_88 {dimension_numbers = #tpu.dot_dimension_numbers<[1], [0], [0], [1], [0, 0, 1, 1], [], []>} : vector<32x32xbf16>, vector<32x32xbf16>, vector<32x32xf32> -> vector<32x32xf32>
    %c0_89 = arith.constant 0 : index
    %c0_90 = arith.constant 0 : index
    %c0_91 = arith.constant 0 : index
    %214 = vector.load %arg15[%c0_89, %c0_90, %c0_91] : memref<2x1x32xf32, #tpu.memory_space<vmem>>, vector<1x1x32xf32>
    %215 = vector.shape_cast %214 : vector<1x1x32xf32> to vector<1x32xf32>
    %216 = vector.broadcast %215 : vector<1x32xf32> to vector<32x32xf32>
    %217 = arith.addf %213, %216 : vector<32x32xf32>
    %218 = arith.addf %217, %135 : vector<32x32xf32>
    %c1 = arith.constant 1 : index
    %c0_92 = arith.constant 0 : index
    %c0_93 = arith.constant 0 : index
    %219 = vector.load %arg4[%c1, %c0_92, %c0_93] : memref<2x1x32xf32, #tpu.memory_space<vmem>>, vector<1x1x32xf32>
    %220 = vector.shape_cast %219 : vector<1x1x32xf32> to vector<1x32xf32>
    %c1_94 = arith.constant 1 : index
    %c0_95 = arith.constant 0 : index
    %c0_96 = arith.constant 0 : index
    %221 = vector.load %arg5[%c1_94, %c0_95, %c0_96] : memref<2x1x32xf32, #tpu.memory_space<vmem>>, vector<1x1x32xf32>
    %222 = vector.shape_cast %221 : vector<1x1x32xf32> to vector<1x32xf32>
    %cst_97 = arith.constant dense<0.000000e+00> : vector<32xf32>
    %223 = vector.multi_reduction <add>, %218, %cst_97 [1] : vector<32x32xf32> to vector<32xf32>
    %224 = vector.shape_cast %223 : vector<32xf32> to vector<32x1xf32>
    %cst_98 = arith.constant 3.200000e+01 : f32
    %225 = vector.broadcast %cst_98 : f32 to vector<32x1xf32>
    %226 = arith.divf %224, %225 : vector<32x1xf32>
    %227 = vector.broadcast %226 : vector<32x1xf32> to vector<32x32xf32>
    %228 = arith.subf %218, %227 : vector<32x32xf32>
    %229 = arith.mulf %228, %228 : vector<32x32xf32>
    %cst_99 = arith.constant dense<0.000000e+00> : vector<32xf32>
    %230 = vector.multi_reduction <add>, %229, %cst_99 [1] : vector<32x32xf32> to vector<32xf32>
    %231 = vector.shape_cast %230 : vector<32xf32> to vector<32x1xf32>
    %cst_100 = arith.constant 3.200000e+01 : f32
    %232 = vector.broadcast %cst_100 : f32 to vector<32x1xf32>
    %233 = arith.divf %231, %232 : vector<32x1xf32>
    %234 = vector.broadcast %226 : vector<32x1xf32> to vector<32x32xf32>
    %235 = arith.subf %218, %234 : vector<32x32xf32>
    %cst_101 = arith.constant 9.99999974E-6 : f32
    %236 = vector.broadcast %cst_101 : f32 to vector<32x1xf32>
    %237 = arith.addf %233, %236 : vector<32x1xf32>
    %238 = math.rsqrt %237 : vector<32x1xf32>
    %239 = vector.broadcast %238 : vector<32x1xf32> to vector<32x32xf32>
    %240 = arith.mulf %235, %239 : vector<32x32xf32>
    %241 = vector.broadcast %220 : vector<1x32xf32> to vector<32x32xf32>
    %242 = arith.mulf %240, %241 : vector<32x32xf32>
    %243 = vector.broadcast %222 : vector<1x32xf32> to vector<32x32xf32>
    %244 = arith.addf %242, %243 : vector<32x32xf32>
    %245 = arith.truncf %244 : vector<32x32xf32> to vector<32x32xbf16>
    %c1_102 = arith.constant 1 : index
    %c0_103 = arith.constant 0 : index
    %c0_104 = arith.constant 0 : index
    %246 = vector.load %arg6[%c1_102, %c0_103, %c0_104] : memref<2x32x96xbf16, #tpu.memory_space<vmem>>, vector<1x32x96xbf16>
    %247 = vector.shape_cast %246 : vector<1x32x96xbf16> to vector<32x96xbf16>
    %cst_105 = arith.constant dense<0.000000e+00> : vector<32x96xf32>
    %248 = tpu.matmul %245, %247, %cst_105 {dimension_numbers = #tpu.dot_dimension_numbers<[1], [0], [0], [1], [0, 0, 1, 1], [], []>} : vector<32x32xbf16>, vector<32x96xbf16>, vector<32x96xf32> -> vector<32x96xf32>
    %c1_106 = arith.constant 1 : index
    %c0_107 = arith.constant 0 : index
    %c0_108 = arith.constant 0 : index
    %249 = vector.load %arg7[%c1_106, %c0_107, %c0_108] : memref<2x1x96xf32, #tpu.memory_space<vmem>>, vector<1x1x96xf32>
    %250 = vector.shape_cast %249 : vector<1x1x96xf32> to vector<1x96xf32>
    %251 = vector.broadcast %250 : vector<1x96xf32> to vector<32x96xf32>
    %252 = arith.addf %248, %251 : vector<32x96xf32>
    %253 = vector.extract_strided_slice %252 {offsets = [0, 0], sizes = [32, 32], strides = [1, 1]} : vector<32x96xf32> to vector<32x32xf32>
    %254 = vector.shape_cast %253 : vector<32x32xf32> to vector<2x16x32xf32>
    %255 = arith.truncf %254 : vector<2x16x32xf32> to vector<2x16x32xbf16>
    %256 = vector.extract_strided_slice %252 {offsets = [0, 32], sizes = [32, 32], strides = [1, 1]} : vector<32x96xf32> to vector<32x32xf32>
    %257 = vector.shape_cast %256 : vector<32x32xf32> to vector<2x16x32xf32>
    %258 = arith.truncf %257 : vector<2x16x32xf32> to vector<2x16x32xbf16>
    %259 = vector.extract_strided_slice %252 {offsets = [0, 64], sizes = [32, 32], strides = [1, 1]} : vector<32x96xf32> to vector<32x32xf32>
    %260 = vector.shape_cast %259 : vector<32x32xf32> to vector<2x16x32xf32>
    %261 = arith.truncf %260 : vector<2x16x32xf32> to vector<2x16x32xbf16>
    %262 = vector.extract_strided_slice %255 {offsets = [0, 0, 0], sizes = [2, 16, 8], strides = [1, 1, 1]} : vector<2x16x32xbf16> to vector<2x16x8xbf16>
    %263 = vector.extract_strided_slice %258 {offsets = [0, 0, 0], sizes = [2, 16, 8], strides = [1, 1, 1]} : vector<2x16x32xbf16> to vector<2x16x8xbf16>
    "tpu.trace_start"() <{level = 10 : i32, message = "gnc,gmc->gnm"}> : () -> ()
    %cst_109 = arith.constant dense<0.000000e+00> : vector<2x16x16xf32>
    %264 = tpu.matmul %262, %263, %cst_109 {dimension_numbers = #tpu.dot_dimension_numbers<[2], [2], [1], [1], [0, 0, 0, 1, 1, 1], [0], [0]>} : vector<2x16x8xbf16>, vector<2x16x8xbf16>, vector<2x16x16xf32> -> vector<2x16x16xf32>
    "tpu.trace_stop"() : () -> ()
    %cst_110 = arith.constant 0.353553385 : f32
    %265 = vector.broadcast %cst_110 : f32 to vector<2x16x16xf32>
    %266 = arith.mulf %264, %265 : vector<2x16x16xf32>
    %cst_111 = arith.constant dense<0xFF800000> : vector<2x16xf32>
    %267 = vector.multi_reduction <maximumf>, %266, %cst_111 [2] : vector<2x16x16xf32> to vector<2x16xf32>
    %268 = vector.shape_cast %267 : vector<2x16xf32> to vector<2x16x1xf32>
    %269 = vector.broadcast %268 : vector<2x16x1xf32> to vector<2x16x16xf32>
    %270 = arith.subf %266, %269 : vector<2x16x16xf32>
    %271 = math.exp %270 : vector<2x16x16xf32>
    %cst_112 = arith.constant dense<0.000000e+00> : vector<2x16xf32>
    %272 = vector.multi_reduction <add>, %271, %cst_112 [2] : vector<2x16x16xf32> to vector<2x16xf32>
    %273 = vector.shape_cast %272 : vector<2x16xf32> to vector<2x16x1xf32>
    %274 = tpu.reciprocal %273 {approx = true} : vector<2x16x1xf32> -> vector<2x16x1xf32>
    %275 = vector.broadcast %274 : vector<2x16x1xf32> to vector<2x16x16xf32>
    %276 = arith.mulf %271, %275 : vector<2x16x16xf32>
    %277 = arith.truncf %276 : vector<2x16x16xf32> to vector<2x16x16xbf16>
    %278 = vector.extract_strided_slice %261 {offsets = [0, 0, 0], sizes = [2, 16, 8], strides = [1, 1, 1]} : vector<2x16x32xbf16> to vector<2x16x8xbf16>
    "tpu.trace_start"() <{level = 10 : i32, message = "gnm,gmc->gnc"}> : () -> ()
    %cst_113 = arith.constant dense<0.000000e+00> : vector<2x16x8xf32>
    %279 = tpu.matmul %277, %278, %cst_113 {dimension_numbers = #tpu.dot_dimension_numbers<[2], [1], [1], [2], [0, 0, 0, 1, 1, 2], [0], [0]>} : vector<2x16x16xbf16>, vector<2x16x8xbf16>, vector<2x16x8xf32> -> vector<2x16x8xf32>
    "tpu.trace_stop"() : () -> ()
    %280 = vector.extract_strided_slice %255 {offsets = [0, 0, 8], sizes = [2, 16, 8], strides = [1, 1, 1]} : vector<2x16x32xbf16> to vector<2x16x8xbf16>
    %281 = vector.extract_strided_slice %258 {offsets = [0, 0, 8], sizes = [2, 16, 8], strides = [1, 1, 1]} : vector<2x16x32xbf16> to vector<2x16x8xbf16>
    "tpu.trace_start"() <{level = 10 : i32, message = "gnc,gmc->gnm"}> : () -> ()
    %cst_114 = arith.constant dense<0.000000e+00> : vector<2x16x16xf32>
    %282 = tpu.matmul %280, %281, %cst_114 {dimension_numbers = #tpu.dot_dimension_numbers<[2], [2], [1], [1], [0, 0, 0, 1, 1, 1], [0], [0]>} : vector<2x16x8xbf16>, vector<2x16x8xbf16>, vector<2x16x16xf32> -> vector<2x16x16xf32>
    "tpu.trace_stop"() : () -> ()
    %cst_115 = arith.constant 0.353553385 : f32
    %283 = vector.broadcast %cst_115 : f32 to vector<2x16x16xf32>
    %284 = arith.mulf %282, %283 : vector<2x16x16xf32>
    %cst_116 = arith.constant dense<0xFF800000> : vector<2x16xf32>
    %285 = vector.multi_reduction <maximumf>, %284, %cst_116 [2] : vector<2x16x16xf32> to vector<2x16xf32>
    %286 = vector.shape_cast %285 : vector<2x16xf32> to vector<2x16x1xf32>
    %287 = vector.broadcast %286 : vector<2x16x1xf32> to vector<2x16x16xf32>
    %288 = arith.subf %284, %287 : vector<2x16x16xf32>
    %289 = math.exp %288 : vector<2x16x16xf32>
    %cst_117 = arith.constant dense<0.000000e+00> : vector<2x16xf32>
    %290 = vector.multi_reduction <add>, %289, %cst_117 [2] : vector<2x16x16xf32> to vector<2x16xf32>
    %291 = vector.shape_cast %290 : vector<2x16xf32> to vector<2x16x1xf32>
    %292 = tpu.reciprocal %291 {approx = true} : vector<2x16x1xf32> -> vector<2x16x1xf32>
    %293 = vector.broadcast %292 : vector<2x16x1xf32> to vector<2x16x16xf32>
    %294 = arith.mulf %289, %293 : vector<2x16x16xf32>
    %295 = arith.truncf %294 : vector<2x16x16xf32> to vector<2x16x16xbf16>
    %296 = vector.extract_strided_slice %261 {offsets = [0, 0, 8], sizes = [2, 16, 8], strides = [1, 1, 1]} : vector<2x16x32xbf16> to vector<2x16x8xbf16>
    "tpu.trace_start"() <{level = 10 : i32, message = "gnm,gmc->gnc"}> : () -> ()
    %cst_118 = arith.constant dense<0.000000e+00> : vector<2x16x8xf32>
    %297 = tpu.matmul %295, %296, %cst_118 {dimension_numbers = #tpu.dot_dimension_numbers<[2], [1], [1], [2], [0, 0, 0, 1, 1, 2], [0], [0]>} : vector<2x16x16xbf16>, vector<2x16x8xbf16>, vector<2x16x8xf32> -> vector<2x16x8xf32>
    "tpu.trace_stop"() : () -> ()
    %298 = vector.extract_strided_slice %255 {offsets = [0, 0, 16], sizes = [2, 16, 8], strides = [1, 1, 1]} : vector<2x16x32xbf16> to vector<2x16x8xbf16>
    %299 = vector.extract_strided_slice %258 {offsets = [0, 0, 16], sizes = [2, 16, 8], strides = [1, 1, 1]} : vector<2x16x32xbf16> to vector<2x16x8xbf16>
    "tpu.trace_start"() <{level = 10 : i32, message = "gnc,gmc->gnm"}> : () -> ()
    %cst_119 = arith.constant dense<0.000000e+00> : vector<2x16x16xf32>
    %300 = tpu.matmul %298, %299, %cst_119 {dimension_numbers = #tpu.dot_dimension_numbers<[2], [2], [1], [1], [0, 0, 0, 1, 1, 1], [0], [0]>} : vector<2x16x8xbf16>, vector<2x16x8xbf16>, vector<2x16x16xf32> -> vector<2x16x16xf32>
    "tpu.trace_stop"() : () -> ()
    %cst_120 = arith.constant 0.353553385 : f32
    %301 = vector.broadcast %cst_120 : f32 to vector<2x16x16xf32>
    %302 = arith.mulf %300, %301 : vector<2x16x16xf32>
    %cst_121 = arith.constant dense<0xFF800000> : vector<2x16xf32>
    %303 = vector.multi_reduction <maximumf>, %302, %cst_121 [2] : vector<2x16x16xf32> to vector<2x16xf32>
    %304 = vector.shape_cast %303 : vector<2x16xf32> to vector<2x16x1xf32>
    %305 = vector.broadcast %304 : vector<2x16x1xf32> to vector<2x16x16xf32>
    %306 = arith.subf %302, %305 : vector<2x16x16xf32>
    %307 = math.exp %306 : vector<2x16x16xf32>
    %cst_122 = arith.constant dense<0.000000e+00> : vector<2x16xf32>
    %308 = vector.multi_reduction <add>, %307, %cst_122 [2] : vector<2x16x16xf32> to vector<2x16xf32>
    %309 = vector.shape_cast %308 : vector<2x16xf32> to vector<2x16x1xf32>
    %310 = tpu.reciprocal %309 {approx = true} : vector<2x16x1xf32> -> vector<2x16x1xf32>
    %311 = vector.broadcast %310 : vector<2x16x1xf32> to vector<2x16x16xf32>
    %312 = arith.mulf %307, %311 : vector<2x16x16xf32>
    %313 = arith.truncf %312 : vector<2x16x16xf32> to vector<2x16x16xbf16>
    %314 = vector.extract_strided_slice %261 {offsets = [0, 0, 16], sizes = [2, 16, 8], strides = [1, 1, 1]} : vector<2x16x32xbf16> to vector<2x16x8xbf16>
    "tpu.trace_start"() <{level = 10 : i32, message = "gnm,gmc->gnc"}> : () -> ()
    %cst_123 = arith.constant dense<0.000000e+00> : vector<2x16x8xf32>
    %315 = tpu.matmul %313, %314, %cst_123 {dimension_numbers = #tpu.dot_dimension_numbers<[2], [1], [1], [2], [0, 0, 0, 1, 1, 2], [0], [0]>} : vector<2x16x16xbf16>, vector<2x16x8xbf16>, vector<2x16x8xf32> -> vector<2x16x8xf32>
    "tpu.trace_stop"() : () -> ()
    %316 = vector.extract_strided_slice %255 {offsets = [0, 0, 24], sizes = [2, 16, 8], strides = [1, 1, 1]} : vector<2x16x32xbf16> to vector<2x16x8xbf16>
    %317 = vector.extract_strided_slice %258 {offsets = [0, 0, 24], sizes = [2, 16, 8], strides = [1, 1, 1]} : vector<2x16x32xbf16> to vector<2x16x8xbf16>
    "tpu.trace_start"() <{level = 10 : i32, message = "gnc,gmc->gnm"}> : () -> ()
    %cst_124 = arith.constant dense<0.000000e+00> : vector<2x16x16xf32>
    %318 = tpu.matmul %316, %317, %cst_124 {dimension_numbers = #tpu.dot_dimension_numbers<[2], [2], [1], [1], [0, 0, 0, 1, 1, 1], [0], [0]>} : vector<2x16x8xbf16>, vector<2x16x8xbf16>, vector<2x16x16xf32> -> vector<2x16x16xf32>
    "tpu.trace_stop"() : () -> ()
    %cst_125 = arith.constant 0.353553385 : f32
    %319 = vector.broadcast %cst_125 : f32 to vector<2x16x16xf32>
    %320 = arith.mulf %318, %319 : vector<2x16x16xf32>
    %cst_126 = arith.constant dense<0xFF800000> : vector<2x16xf32>
    %321 = vector.multi_reduction <maximumf>, %320, %cst_126 [2] : vector<2x16x16xf32> to vector<2x16xf32>
    %322 = vector.shape_cast %321 : vector<2x16xf32> to vector<2x16x1xf32>
    %323 = vector.broadcast %322 : vector<2x16x1xf32> to vector<2x16x16xf32>
    %324 = arith.subf %320, %323 : vector<2x16x16xf32>
    %325 = math.exp %324 : vector<2x16x16xf32>
    %cst_127 = arith.constant dense<0.000000e+00> : vector<2x16xf32>
    %326 = vector.multi_reduction <add>, %325, %cst_127 [2] : vector<2x16x16xf32> to vector<2x16xf32>
    %327 = vector.shape_cast %326 : vector<2x16xf32> to vector<2x16x1xf32>
    %328 = tpu.reciprocal %327 {approx = true} : vector<2x16x1xf32> -> vector<2x16x1xf32>
    %329 = vector.broadcast %328 : vector<2x16x1xf32> to vector<2x16x16xf32>
    %330 = arith.mulf %325, %329 : vector<2x16x16xf32>
    %331 = arith.truncf %330 : vector<2x16x16xf32> to vector<2x16x16xbf16>
    %332 = vector.extract_strided_slice %261 {offsets = [0, 0, 24], sizes = [2, 16, 8], strides = [1, 1, 1]} : vector<2x16x32xbf16> to vector<2x16x8xbf16>
    "tpu.trace_start"() <{level = 10 : i32, message = "gnm,gmc->gnc"}> : () -> ()
    %cst_128 = arith.constant dense<0.000000e+00> : vector<2x16x8xf32>
    %333 = tpu.matmul %331, %332, %cst_128 {dimension_numbers = #tpu.dot_dimension_numbers<[2], [1], [1], [2], [0, 0, 0, 1, 1, 2], [0], [0]>} : vector<2x16x16xbf16>, vector<2x16x8xbf16>, vector<2x16x8xf32> -> vector<2x16x8xf32>
    "tpu.trace_stop"() : () -> ()
    %334 = tpu.concatenate %279, %297, %315, %333 in 2 : vector<2x16x8xf32>, vector<2x16x8xf32>, vector<2x16x8xf32>, vector<2x16x8xf32> -> vector<2x16x32xf32>
    %335 = vector.shape_cast %334 : vector<2x16x32xf32> to vector<32x32xf32>
    %336 = arith.truncf %335 : vector<32x32xf32> to vector<32x32xbf16>
    %c1_129 = arith.constant 1 : index
    %c0_130 = arith.constant 0 : index
    %c0_131 = arith.constant 0 : index
    %337 = vector.load %arg8[%c1_129, %c0_130, %c0_131] : memref<2x32x32xbf16, #tpu.memory_space<vmem>>, vector<1x32x32xbf16>
    %338 = vector.shape_cast %337 : vector<1x32x32xbf16> to vector<32x32xbf16>
    %cst_132 = arith.constant dense<0.000000e+00> : vector<32x32xf32>
    %339 = tpu.matmul %336, %338, %cst_132 {dimension_numbers = #tpu.dot_dimension_numbers<[1], [0], [0], [1], [0, 0, 1, 1], [], []>} : vector<32x32xbf16>, vector<32x32xbf16>, vector<32x32xf32> -> vector<32x32xf32>
    %c1_133 = arith.constant 1 : index
    %c0_134 = arith.constant 0 : index
    %c0_135 = arith.constant 0 : index
    %340 = vector.load %arg9[%c1_133, %c0_134, %c0_135] : memref<2x1x32xf32, #tpu.memory_space<vmem>>, vector<1x1x32xf32>
    %341 = vector.shape_cast %340 : vector<1x1x32xf32> to vector<1x32xf32>
    %342 = vector.broadcast %341 : vector<1x32xf32> to vector<32x32xf32>
    %343 = arith.addf %339, %342 : vector<32x32xf32>
    %344 = arith.addf %343, %218 : vector<32x32xf32>
    %c1_136 = arith.constant 1 : index
    %c0_137 = arith.constant 0 : index
    %c0_138 = arith.constant 0 : index
    %345 = vector.load %arg10[%c1_136, %c0_137, %c0_138] : memref<2x1x32xf32, #tpu.memory_space<vmem>>, vector<1x1x32xf32>
    %346 = vector.shape_cast %345 : vector<1x1x32xf32> to vector<1x32xf32>
    %c1_139 = arith.constant 1 : index
    %c0_140 = arith.constant 0 : index
    %c0_141 = arith.constant 0 : index
    %347 = vector.load %arg11[%c1_139, %c0_140, %c0_141] : memref<2x1x32xf32, #tpu.memory_space<vmem>>, vector<1x1x32xf32>
    %348 = vector.shape_cast %347 : vector<1x1x32xf32> to vector<1x32xf32>
    %cst_142 = arith.constant dense<0.000000e+00> : vector<32xf32>
    %349 = vector.multi_reduction <add>, %344, %cst_142 [1] : vector<32x32xf32> to vector<32xf32>
    %350 = vector.shape_cast %349 : vector<32xf32> to vector<32x1xf32>
    %cst_143 = arith.constant 3.200000e+01 : f32
    %351 = vector.broadcast %cst_143 : f32 to vector<32x1xf32>
    %352 = arith.divf %350, %351 : vector<32x1xf32>
    %353 = vector.broadcast %352 : vector<32x1xf32> to vector<32x32xf32>
    %354 = arith.subf %344, %353 : vector<32x32xf32>
    %355 = arith.mulf %354, %354 : vector<32x32xf32>
    %cst_144 = arith.constant dense<0.000000e+00> : vector<32xf32>
    %356 = vector.multi_reduction <add>, %355, %cst_144 [1] : vector<32x32xf32> to vector<32xf32>
    %357 = vector.shape_cast %356 : vector<32xf32> to vector<32x1xf32>
    %cst_145 = arith.constant 3.200000e+01 : f32
    %358 = vector.broadcast %cst_145 : f32 to vector<32x1xf32>
    %359 = arith.divf %357, %358 : vector<32x1xf32>
    %360 = vector.broadcast %352 : vector<32x1xf32> to vector<32x32xf32>
    %361 = arith.subf %344, %360 : vector<32x32xf32>
    %cst_146 = arith.constant 9.99999974E-6 : f32
    %362 = vector.broadcast %cst_146 : f32 to vector<32x1xf32>
    %363 = arith.addf %359, %362 : vector<32x1xf32>
    %364 = math.rsqrt %363 : vector<32x1xf32>
    %365 = vector.broadcast %364 : vector<32x1xf32> to vector<32x32xf32>
    %366 = arith.mulf %361, %365 : vector<32x32xf32>
    %367 = vector.broadcast %346 : vector<1x32xf32> to vector<32x32xf32>
    %368 = arith.mulf %366, %367 : vector<32x32xf32>
    %369 = vector.broadcast %348 : vector<1x32xf32> to vector<32x32xf32>
    %370 = arith.addf %368, %369 : vector<32x32xf32>
    %371 = arith.truncf %370 : vector<32x32xf32> to vector<32x32xbf16>
    %c1_147 = arith.constant 1 : index
    %c0_148 = arith.constant 0 : index
    %c0_149 = arith.constant 0 : index
    %372 = vector.load %arg12[%c1_147, %c0_148, %c0_149] : memref<2x32x32xbf16, #tpu.memory_space<vmem>>, vector<1x32x32xbf16>
    %373 = vector.shape_cast %372 : vector<1x32x32xbf16> to vector<32x32xbf16>
    %cst_150 = arith.constant dense<0.000000e+00> : vector<32x32xf32>
    %374 = tpu.matmul %371, %373, %cst_150 {dimension_numbers = #tpu.dot_dimension_numbers<[1], [0], [0], [1], [0, 0, 1, 1], [], []>} : vector<32x32xbf16>, vector<32x32xbf16>, vector<32x32xf32> -> vector<32x32xf32>
    %c1_151 = arith.constant 1 : index
    %c0_152 = arith.constant 0 : index
    %c0_153 = arith.constant 0 : index
    %375 = vector.load %arg13[%c1_151, %c0_152, %c0_153] : memref<2x1x32xf32, #tpu.memory_space<vmem>>, vector<1x1x32xf32>
    %376 = vector.shape_cast %375 : vector<1x1x32xf32> to vector<1x32xf32>
    %377 = vector.broadcast %376 : vector<1x32xf32> to vector<32x32xf32>
    %378 = arith.addf %374, %377 : vector<32x32xf32>
    %cst_154 = arith.constant 5.000000e-01 : f32
    %379 = vector.broadcast %cst_154 : f32 to vector<32x32xf32>
    %380 = arith.mulf %379, %378 : vector<32x32xf32>
    %cst_155 = arith.constant 0.707106769 : f32
    %381 = vector.broadcast %cst_155 : f32 to vector<32x32xf32>
    %382 = arith.mulf %378, %381 : vector<32x32xf32>
    %383 = math.absf %382 : vector<32x32xf32>
    %cst_156 = arith.constant 0.327591091 : f32
    %384 = vector.broadcast %cst_156 : f32 to vector<32x32xf32>
    %385 = arith.mulf %384, %383 : vector<32x32xf32>
    %cst_157 = arith.constant 1.000000e+00 : f32
    %386 = vector.broadcast %cst_157 : f32 to vector<32x32xf32>
    %387 = arith.addf %386, %385 : vector<32x32xf32>
    %cst_158 = arith.constant 1.000000e+00 : f32
    %388 = vector.broadcast %cst_158 : f32 to vector<32x32xf32>
    %389 = arith.divf %388, %387 : vector<32x32xf32>
    %cst_159 = arith.constant 1.06140542 : f32
    %390 = vector.broadcast %cst_159 : f32 to vector<32x32xf32>
    %391 = arith.mulf %390, %389 : vector<32x32xf32>
    %cst_160 = arith.constant -1.45315206 : f32
    %392 = vector.broadcast %cst_160 : f32 to vector<32x32xf32>
    %393 = arith.addf %391, %392 : vector<32x32xf32>
    %394 = arith.mulf %393, %389 : vector<32x32xf32>
    %cst_161 = arith.constant 1.42141378 : f32
    %395 = vector.broadcast %cst_161 : f32 to vector<32x32xf32>
    %396 = arith.addf %394, %395 : vector<32x32xf32>
    %397 = arith.mulf %396, %389 : vector<32x32xf32>
    %cst_162 = arith.constant -0.284496725 : f32
    %398 = vector.broadcast %cst_162 : f32 to vector<32x32xf32>
    %399 = arith.addf %397, %398 : vector<32x32xf32>
    %400 = arith.mulf %399, %389 : vector<32x32xf32>
    %cst_163 = arith.constant 0.254829586 : f32
    %401 = vector.broadcast %cst_163 : f32 to vector<32x32xf32>
    %402 = arith.addf %400, %401 : vector<32x32xf32>
    %403 = arith.mulf %402, %389 : vector<32x32xf32>
    %cst_164 = arith.constant 0.000000e+00 : f32
    %404 = vector.broadcast %cst_164 : f32 to vector<32x32xf32>
    %405 = arith.subf %404, %383 : vector<32x32xf32>
    %406 = arith.mulf %405, %383 : vector<32x32xf32>
    %407 = math.exp %406 : vector<32x32xf32>
    %408 = arith.mulf %403, %407 : vector<32x32xf32>
    %cst_165 = arith.constant 1.000000e+00 : f32
    %409 = vector.broadcast %cst_165 : f32 to vector<32x32xf32>
    %410 = arith.subf %409, %408 : vector<32x32xf32>
    %cst_166 = arith.constant 0.000000e+00 : f32
    %411 = vector.broadcast %cst_166 : f32 to vector<32x32xf32>
    %412 = arith.cmpf oge, %382, %411 : vector<32x32xf32>
    %cst_167 = arith.constant 0.000000e+00 : f32
    %413 = vector.broadcast %cst_167 : f32 to vector<32x32xf32>
    %414 = arith.subf %413, %410 : vector<32x32xf32>
    %415 = arith.select %412, %410, %414 : vector<32x32xi1>, vector<32x32xf32>
    %cst_168 = arith.constant 1.000000e+00 : f32
    %416 = vector.broadcast %cst_168 : f32 to vector<32x32xf32>
    %417 = arith.addf %416, %415 : vector<32x32xf32>
    %418 = arith.mulf %380, %417 : vector<32x32xf32>
    %419 = arith.truncf %418 : vector<32x32xf32> to vector<32x32xbf16>
    %c1_169 = arith.constant 1 : index
    %c0_170 = arith.constant 0 : index
    %c0_171 = arith.constant 0 : index
    %420 = vector.load %arg14[%c1_169, %c0_170, %c0_171] : memref<2x32x32xbf16, #tpu.memory_space<vmem>>, vector<1x32x32xbf16>
    %421 = vector.shape_cast %420 : vector<1x32x32xbf16> to vector<32x32xbf16>
    %cst_172 = arith.constant dense<0.000000e+00> : vector<32x32xf32>
    %422 = tpu.matmul %419, %421, %cst_172 {dimension_numbers = #tpu.dot_dimension_numbers<[1], [0], [0], [1], [0, 0, 1, 1], [], []>} : vector<32x32xbf16>, vector<32x32xbf16>, vector<32x32xf32> -> vector<32x32xf32>
    %c1_173 = arith.constant 1 : index
    %c0_174 = arith.constant 0 : index
    %c0_175 = arith.constant 0 : index
    %423 = vector.load %arg15[%c1_173, %c0_174, %c0_175] : memref<2x1x32xf32, #tpu.memory_space<vmem>>, vector<1x1x32xf32>
    %424 = vector.shape_cast %423 : vector<1x1x32xf32> to vector<1x32xf32>
    %425 = vector.broadcast %424 : vector<1x32xf32> to vector<32x32xf32>
    %426 = arith.addf %422, %425 : vector<32x32xf32>
    %427 = arith.addf %426, %344 : vector<32x32xf32>
    %428 = vector.shape_cast %427 : vector<32x32xf32> to vector<2x16x32xf32>
    %cst_176 = arith.constant dense<0.000000e+00> : vector<2x32xf32>
    %429 = vector.multi_reduction <add>, %428, %cst_176 [1] : vector<2x16x32xf32> to vector<2x32xf32>
    %cst_177 = arith.constant 1.600000e+01 : f32
    %430 = vector.broadcast %cst_177 : f32 to vector<2x32xf32>
    %431 = arith.divf %429, %430 : vector<2x32xf32>
    %432 = arith.truncf %431 : vector<2x32xf32> to vector<2x32xbf16>
    %c0_178 = arith.constant 0 : index
    %c0_179 = arith.constant 0 : index
    %433 = vector.load %arg16[%c0_178, %c0_179] : memref<32x4xbf16, #tpu.memory_space<vmem>>, vector<32x4xbf16>
    %cst_180 = arith.constant dense<0.000000e+00> : vector<2x4xf32>
    %434 = tpu.matmul %432, %433, %cst_180 {dimension_numbers = #tpu.dot_dimension_numbers<[1], [0], [0], [1], [0, 0, 1, 1], [], []>} : vector<2x32xbf16>, vector<32x4xbf16>, vector<2x4xf32> -> vector<2x4xf32>
    %c0_181 = arith.constant 0 : index
    %c0_182 = arith.constant 0 : index
    %435 = vector.load %arg17[%c0_181, %c0_182] : memref<1x4xf32, #tpu.memory_space<vmem>>, vector<1x4xf32>
    %436 = vector.broadcast %435 : vector<1x4xf32> to vector<2x4xf32>
    %437 = arith.addf %434, %436 : vector<2x4xf32>
    %c0_183 = arith.constant 0 : index
    %c0_184 = arith.constant 0 : index
    %c0_185 = arith.constant 0 : index
    %438 = vector.load %arg18[%c0_183, %c0_184, %c0_185] : memref<1x2x4xf32, #tpu.memory_space<vmem>>, vector<1x2x4xf32>
    %439 = vector.shape_cast %438 : vector<1x2x4xf32> to vector<2x4xf32>
    %440 = vector.shape_cast %437 : vector<2x4xf32> to vector<1x2x4xf32>
    tpu.vector_store %arg18[%c0_183, %c0_184, %c0_185], %440 {strides = array<i32>} : memref<1x2x4xf32, #tpu.memory_space<vmem>>, vector<1x2x4xf32>,
    return
  }
  func.func @transform_0(%arg0: i32) -> (i32, i32, i32) {
    %c0_i32 = arith.constant 0 : i32
    %c0_i32_0 = arith.constant 0 : i32
    %c0_i32_1 = arith.constant 0 : i32
    return %arg0, %c0_i32, %c0_i32_0 : i32, i32, i32
  }
  func.func @transform_1(%arg0: i32) -> (i32, i32) {
    %c0_i32 = arith.constant 0 : i32
    %c0_i32_0 = arith.constant 0 : i32
    %c0_i32_1 = arith.constant 0 : i32
    return %c0_i32, %c0_i32_0 : i32, i32
  }
  func.func @transform_2(%arg0: i32) -> (i32, i32) {
    %c0_i32 = arith.constant 0 : i32
    %c0_i32_0 = arith.constant 0 : i32
    %c0_i32_1 = arith.constant 0 : i32
    return %c0_i32, %c0_i32_0 : i32, i32
  }
  func.func @transform_3(%arg0: i32) -> (i32, i32, i32) {
    %c0_i32 = arith.constant 0 : i32
    %c0_i32_0 = arith.constant 0 : i32
    %c0_i32_1 = arith.constant 0 : i32
    %c0_i32_2 = arith.constant 0 : i32
    return %c0_i32, %c0_i32_0, %c0_i32_1 : i32, i32, i32
  }
  func.func @transform_4(%arg0: i32) -> (i32, i32, i32) {
    %c0_i32 = arith.constant 0 : i32
    %c0_i32_0 = arith.constant 0 : i32
    %c0_i32_1 = arith.constant 0 : i32
    %c0_i32_2 = arith.constant 0 : i32
    return %c0_i32, %c0_i32_0, %c0_i32_1 : i32, i32, i32
  }
  func.func @transform_5(%arg0: i32) -> (i32, i32, i32) {
    %c0_i32 = arith.constant 0 : i32
    %c0_i32_0 = arith.constant 0 : i32
    %c0_i32_1 = arith.constant 0 : i32
    %c0_i32_2 = arith.constant 0 : i32
    return %c0_i32, %c0_i32_0, %c0_i32_1 : i32, i32, i32
  }
  func.func @transform_6(%arg0: i32) -> (i32, i32, i32) {
    %c0_i32 = arith.constant 0 : i32
    %c0_i32_0 = arith.constant 0 : i32
    %c0_i32_1 = arith.constant 0 : i32
    %c0_i32_2 = arith.constant 0 : i32
    return %c0_i32, %c0_i32_0, %c0_i32_1 : i32, i32, i32
  }
  func.func @transform_7(%arg0: i32) -> (i32, i32, i32) {
    %c0_i32 = arith.constant 0 : i32
    %c0_i32_0 = arith.constant 0 : i32
    %c0_i32_1 = arith.constant 0 : i32
    %c0_i32_2 = arith.constant 0 : i32
    return %c0_i32, %c0_i32_0, %c0_i32_1 : i32, i32, i32
  }
  func.func @transform_8(%arg0: i32) -> (i32, i32, i32) {
    %c0_i32 = arith.constant 0 : i32
    %c0_i32_0 = arith.constant 0 : i32
    %c0_i32_1 = arith.constant 0 : i32
    %c0_i32_2 = arith.constant 0 : i32
    return %c0_i32, %c0_i32_0, %c0_i32_1 : i32, i32, i32
  }
  func.func @transform_9(%arg0: i32) -> (i32, i32, i32) {
    %c0_i32 = arith.constant 0 : i32
    %c0_i32_0 = arith.constant 0 : i32
    %c0_i32_1 = arith.constant 0 : i32
    %c0_i32_2 = arith.constant 0 : i32
    return %c0_i32, %c0_i32_0, %c0_i32_1 : i32, i32, i32
  }
  func.func @transform_10(%arg0: i32) -> (i32, i32, i32) {
    %c0_i32 = arith.constant 0 : i32
    %c0_i32_0 = arith.constant 0 : i32
    %c0_i32_1 = arith.constant 0 : i32
    %c0_i32_2 = arith.constant 0 : i32
    return %c0_i32, %c0_i32_0, %c0_i32_1 : i32, i32, i32
  }
  func.func @transform_11(%arg0: i32) -> (i32, i32, i32) {
    %c0_i32 = arith.constant 0 : i32
    %c0_i32_0 = arith.constant 0 : i32
    %c0_i32_1 = arith.constant 0 : i32
    %c0_i32_2 = arith.constant 0 : i32
    return %c0_i32, %c0_i32_0, %c0_i32_1 : i32, i32, i32
  }
  func.func @transform_12(%arg0: i32) -> (i32, i32, i32) {
    %c0_i32 = arith.constant 0 : i32
    %c0_i32_0 = arith.constant 0 : i32
    %c0_i32_1 = arith.constant 0 : i32
    %c0_i32_2 = arith.constant 0 : i32
    return %c0_i32, %c0_i32_0, %c0_i32_1 : i32, i32, i32
  }
  func.func @transform_13(%arg0: i32) -> (i32, i32, i32) {
    %c0_i32 = arith.constant 0 : i32
    %c0_i32_0 = arith.constant 0 : i32
    %c0_i32_1 = arith.constant 0 : i32
    %c0_i32_2 = arith.constant 0 : i32
    return %c0_i32, %c0_i32_0, %c0_i32_1 : i32, i32, i32
  }
  func.func @transform_14(%arg0: i32) -> (i32, i32, i32) {
    %c0_i32 = arith.constant 0 : i32
    %c0_i32_0 = arith.constant 0 : i32
    %c0_i32_1 = arith.constant 0 : i32
    %c0_i32_2 = arith.constant 0 : i32
    return %c0_i32, %c0_i32_0, %c0_i32_1 : i32, i32, i32
  }
  func.func @transform_15(%arg0: i32) -> (i32, i32) {
    %c0_i32 = arith.constant 0 : i32
    %c0_i32_0 = arith.constant 0 : i32
    %c0_i32_1 = arith.constant 0 : i32
    return %c0_i32, %c0_i32_0 : i32, i32
  }
  func.func @transform_16(%arg0: i32) -> (i32, i32) {
    %c0_i32 = arith.constant 0 : i32
    %c0_i32_0 = arith.constant 0 : i32
    %c0_i32_1 = arith.constant 0 : i32
    return %c0_i32, %c0_i32_0 : i32, i32
  }
  func.func @transform_17(%arg0: i32) -> (i32, i32, i32) {
    %c0_i32 = arith.constant 0 : i32
    %c0_i32_0 = arith.constant 0 : i32
    %c0_i32_1 = arith.constant 0 : i32
    return %arg0, %c0_i32, %c0_i32_0 : i32, i32, i32
  }
}

</mosaic_0001>

<bundles_post_ra>
// kernel: tpu_custom_call.1
= control target key start
LH: loop header
LB: loop body
LE: loop exit
PB: predicated region body
PF: predicated region fallthrough
CT: control target
= control target key end

     0   :  { %s6418_s0 = inlined_call_operand.vmem [shape: f32[4,16,8], index: 0, kind: input, shape index: {}]   ;;  %s6419_s1 = inlined_call_operand.hbm [shape: bf16[8,32], index: 1, kind: input, shape index: {}]   ;;  %s6420_s2 = inlined_call_operand.hbm [shape: f32[1,32], index: 2, kind: input, shape index: {}]   ;;  %s6421_s3 = inlined_call_operand.hbm [shape: f32[2,1,32], index: 3, kind: input, shape index: {}]   ;;  %s6422_s4 = inlined_call_operand.hbm [shape: f32[2,1,32], index: 4, kind: input, shape index: {}]   ;;  %s6423_s5 = inlined_call_operand.vmem [shape: bf16[2,32,96], index: 5, kind: input, shape index: {}]   ;;  %s6424_s6 = inlined_call_operand.hbm [shape: f32[2,1,96], index: 6, kind: input, shape index: {}]   ;;  %s6425_s7 = inlined_call_operand.vmem [shape: bf16[2,32,32], index: 7, kind: input, shape index: {}]   ;;  %s6426_s8 = inlined_call_operand.hbm [shape: f32[2,1,32], index: 8, kind: input, shape index: {}]   ;;  %s6427_s9 = inlined_call_operand.hbm [shape: f32[2,1,32], index: 9, kind: input, shape index: {}]   ;;  %s6428_s10 = inlined_call_operand.vmem [shape: f32[2,1,32], index: 10, kind: input, shape index: {}]   ;;  %s6429_s11 = inlined_call_operand.vmem [shape: bf16[2,32,32], index: 11, kind: input, shape index: {}]   ;;  %s6430_s12 = inlined_call_operand.vmem [shape: f32[2,1,32], index: 12, kind: input, shape index: {}]   ;;  %s6431_s13 = inlined_call_operand.vmem [shape: bf16[2,32,32], index: 13, kind: input, shape index: {}]   ;;  %s6432_s14 = inlined_call_operand.vmem [shape: f32[2,1,32], index: 14, kind: input, shape index: {}]   ;;  %s6433_s15 = inlined_call_operand.vmem [shape: bf16[32,4], index: 15, kind: input, shape index: {}]   ;;  %s6434_s16 = inlined_call_operand.vmem [shape: f32[1,4], index: 16, kind: input, shape index: {}]   ;;  %s6435_s17 = inlined_call_operand.hbm [shape: f32[2,2,4], index: 17, kind: output, shape index: {}]  }
   0x1   :  { %6457 = sst [smem:[#allocation26_spill]] %s6418_s0 }
   0x2   :  { %6458 = sst [smem:[#allocation27_spill]] %s6419_s1 }
   0x3   :  { %6459 = sst [smem:[#allocation28_spill]] %s6420_s2 }
   0x4   :  { %6460 = sst [smem:[#allocation29_spill]] %s6422_s4 }
   0x5   :  { %22 = vsyncpa [#allocation3], 0 }
   0x6   :  { %23 = vsyncpa [#allocation6], 0 }
   0x7   :  { %24 = vsyncpa [#allocation9], 0 }
   0x8   :  { %25 = vsyncpa [#allocation12], 0 }
   0x9   :  { %26 = vsyncpa [#allocation4], 0 }
   0xa   :  { %28 = vsyncpa [#allocation4 + $0x1], 0  ;;  %s5521_s24 = smov 0   ;;  %s5523_s25 = smov 0  }
   0xb   :  { %s5525_s26 = smov 0   ;;  %s5527_s27 = smov 0  }
   0xc LB: > { %6461 = sst [smem:[#allocation20_spill]] %s5391_s24  ;;  %s5542_s28 = sadd.s32 4294967295, %s5403_s27   ;;  %s5403_s27 = sphi %s5527_s27, %s6496_s27   ;;  %s5399_s26 = sphi %s5525_s26, %s6498_s26   ;;  %s5395_s25 = sphi %s5523_s25, %s6500_s25   ;;  %s5391_s24 = sphi %s5521_s24, %s6499_s24  }
   0xd   : > { %6462 = sst [smem:[#allocation21_spill]] %s5399_s26  ;;  %s4241_s29 = sadd.s32 4294967294, %s5403_s27  }
   0xe   : > { %6463 = sst [smem:[#allocation22_spill]] %s5403_s27  ;;  %s5546_s0 = sadd.s32 1, %s5403_s27  }
   0xf   : > { %6464 = sst [smem:[#allocation23_spill]] %s5546_s0  ;;  %s403_s30 = sadd.s32 1, %s5399_s26 }
  0x10   : > { %s400_s18 = ssub.s32 %s5403_s27, %s5546_s0  ;;  %p413_p0 = scmp.ne.s32.totalorder %s5399_s26, %s5395_s25 }
  0x11   : > { %p401_p1 = scmp.eq.s32.totalorder %s400_s18, 0  ;;  %p414_p2 = scmp.eq.s32.totalorder %s5542_s28, 1 }
  0x12   : > { %p419_p3 = scmp.ne.s32.totalorder %s5395_s25, %s5391_s24  ;;  %p420_p4 = scmp.eq.s32.totalorder %s4241_s29, 1 }
  0x13   : > { %s5557_s19 = scalar_select %p401_p1, %s5399_s26, %s403_s30  }
  0x14   : > { %p5559_p5 = por %p414_p2, %p413_p0  ;;  %p5563_p6 = por %p420_p4, %p419_p3 }
  0x15   : > { %6465 = sst [smem:[#allocation24_spill]] %s5557_s19  ;;  %p4242_p7 = scmp.ge.s32.totalorder %s5403_s27, 1 }
  0x16   : > { %s6466_s1 = scalar_select %p5559_p5, 1, 0 }
  0x17   : > { %s6467_s20 = scalar_select %p5563_p6, 1, 0 }
  0x18   : > { %p427_p8 = scmp.lt.s32.totalorder %s5403_s27, 3  ;;  %p6441_p9 = scmp.eq.s32.totalorder %s5542_s28, 0 }
  0x19   : > { %6468 = sst [smem:[#allocation25_spill]] %s6467_s20  ;;  %s5405_s22 = smov [#allocation5]  }
  0x1a   : > { %p5570_p10 = pnand %p4242_p7, %p427_p8  ;;  %s451_s23 = sshll.u32 %s5405_s22, 4  ;;  %s452_s23 = int_to_ptr.vmem [resolvable:$true] %s451_s23 }
  0x1b   : > { %s5406_s30 = smov [#allocation8]   ;;  %s5407_s19 = smov [#allocation11]  }
  0x1c   : > { %s6469_s21 = scalar_select %p5570_p10, 1, 0 }
  0x1d   : > { %p4777_p11 = pneg %p5570_p10  ;;  %s474_s18 = sshll.u32 %s5406_s30, 4  ;;  %s5582_s18 = int_to_ptr.vmem [resolvable:$true] %s474_s18 }
  0x1e   : > { %s506_s26 = sshll.u32 %s5407_s19, 4  ;;  %s5156_s22 = scalar_lea.vmem %s452_s23, 16  ;;  %s507_s26 = int_to_ptr.vmem [resolvable:$true] %s506_s26 }
  0x1f   : > { %p5578_p12 = pnand %p6441_p9, %p4777_p11  ;;  %p5157_p0 = scmp.ne.s32.totalorder %s452_s23, %s5156_s22 }
  0x20   : > { %s5163_s20 = scalar_lea.vmem %s452_s23, 32  ;;  %p5164_p3 = scmp.lt.s32.totalorder %s452_s23, %s452_s23 }
  0x21   : > { %p5586_p13 = pneg %p5578_p12  ;;  %p5165_p4 = scmp.lt.s32.totalorder %s5163_s20, %s5156_s22 }
  0x23   : > { %p5159_p1 = pnand %p5157_p0, %p5586_p13  ;;  %p5166_p7 = por %p5165_p4, %p5164_p3 }
  0x25   : > { %p5160_p2 = pneg %p5159_p1 }
  0x27   : > { %p5167_p8 = pnand %p5166_p7, %p5160_p2 }
  0x29   : > { %5170 = shalt.err (!%p5167_p8)
}
  0x2a   : > { %s6472_s2 = sld [smem:[#allocation28_spill]]  ;;  %s5182_s24 = scalar_lea.vmem %s5582_s18, 32 }
  0x2b   : > { %p5183_p11 = scmp.ne.s32.totalorder %s5582_s18, %s5182_s24  ;;  %p5190_p9 = scmp.lt.s32.totalorder %s5582_s18, %s5582_s18 }
  0x2c   : > { %p5191_p3 = scmp.lt.s32.totalorder %s5182_s24, %s5182_s24 }
  0x2d   : > { %p5185_p0 = pnand %p5183_p11, %p5586_p13 }
  0x2e   : > { %p5192_p2 = por %p5191_p3, %p5190_p9 }
  0x2f   : > { %p5186_p1 = pneg %p5185_p0 }
  0x30   : > { %4783 = dma.hbm_to_vmem [thread:$0]  (!%p5578_p12), %s6472_s2, 16, %s452_s23, [#allocation6]  }
  0x31   : > { %p5193_p4 = pnand %p5192_p2, %p5186_p1 }
  0x33   : > { %5196 = shalt.err (!%p5193_p4)
}
  0x34   : > { %s5408_s20 = smov 16   ;;  %s5409_s22 = smov 1  }
  0x35   : > { %s6473_s4 = sld [smem:[#allocation29_spill]]  ;;  %s5208_s30 = scalar_lea.vmem %s507_s26, 32 }
  0x36   : > { %p5209_p7 = scmp.ne.s32.totalorder %s507_s26, %s5208_s30  ;;  %p5216_p11 = scmp.lt.s32.totalorder %s507_s26, %s507_s26 }
  0x37   : > { %p5217_p0 = scmp.lt.s32.totalorder %s5208_s30, %s5208_s30 }
  0x38   : > { %p5211_p9 = pnand %p5209_p7, %p5586_p13 }
  0x39   : > { %p5218_p1 = por %p5217_p0, %p5216_p11 }
  0x3a   : > { %p5212_p8 = pneg %p5211_p9 }
  0x3b   : > { %4789 = dma.hbm_to_vmem [thread:$0]  (!%p5578_p12), %s6473_s4, 32, %s5582_s18, [#allocation9], %s5408_s20, %s5408_s20, %s5409_s22  }
  0x3c   : > { %p5219_p3 = pnand %p5218_p1, %p5212_p8 }
  0x3e   : > { %5222 = shalt.err (!%p5219_p3)
}
  0x3f   : > { %4795 = dma.hbm_to_vmem [thread:$0]  (!%p5578_p12), %s6426_s8, 32, %s507_s26, [#allocation12], %s5408_s20, %s5408_s20, %s5409_s22  }
  0x40   : > { %s5410_s18 = smov [#allocation2]   ;;  %s5411_s19 = smov [#allocation7]  }
  0x41   : > { %s440_s23 = sshll.u32 %s5410_s18, 4  ;;  %s461_s4 = sshll.u32 %s5411_s19, 4  ;;  %s441_s23 = int_to_ptr.vmem [resolvable:$true] %s440_s23  ;;  %s462_s4 = int_to_ptr.vmem [resolvable:$true] %s461_s4 }
  0x42   : > { %s5234_s27 = scalar_lea.vmem %s441_s23, 64  ;;  %p5242_p9 = scmp.lt.s32.totalorder %s441_s23, %s441_s23 }
  0x43   : > { %p5235_p2 = scmp.ne.s32.totalorder %s441_s23, %s5234_s27  ;;  %p5243_p8 = scmp.lt.s32.totalorder %s5234_s27, %s5234_s27 }
  0x45   : > { %p5237_p4 = pnand %p5235_p2, %p5586_p13  ;;  %p5244_p11 = por %p5243_p8, %p5242_p9 }
  0x47   : > { %p5238_p7 = pneg %p5237_p4 }
  0x49   : > { %p5245_p0 = pnand %p5244_p11, %p5238_p7 }
  0x4b   : > { %5248 = shalt.err (!%p5245_p0)
}
  0x4c   : > { %s6474_s26 = sld [smem:[#allocation27_spill]]  ;;  %s5260_s24 = scalar_lea.vmem %s462_s4, 32 }
  0x4d   : > { %p5261_p1 = scmp.ne.s32.totalorder %s462_s4, %s5260_s24  ;;  %p5268_p2 = scmp.lt.s32.totalorder %s462_s4, %s462_s4 }
  0x4e   : > { %p5269_p4 = scmp.lt.s32.totalorder %s5260_s24, %s5260_s24 }
  0x4f   : > { %p5263_p3 = pnand %p5261_p1, %p5586_p13 }
  0x50   : > { %p5270_p5 = por %p5269_p4, %p5268_p2 }
  0x51   : > { %p5264_p6 = pneg %p5263_p3 }
  0x52   : > { %4780 = dma.hbm_to_vmem [thread:$0]  (!%p5578_p12), %s6474_s26, 64, %s441_s23, [#allocation3]  }
  0x53   : > { %p5271_p10 = pnand %p5270_p5, %p5264_p6 }
  0x55   : > { %5274 = shalt.err (!%p5271_p10)
}
  0x56   : > { %4786 = dma.hbm_to_vmem [thread:$0]  (!%p5578_p12), %s6421_s3, 32, %s462_s4, [#allocation6], %s5408_s20, %s5408_s20, %s5409_s22  }
  0x57   : > { %s5412_s23 = smov [#allocation10]   ;;  %s5413_s2 = smov [#allocation13]  }
  0x58   : > { %s490_s19 = sshll.u32 %s5412_s23, 4  ;;  %s519_s30 = sshll.u32 %s5413_s2, 4  ;;  %s491_s19 = int_to_ptr.vmem [resolvable:$true] %s490_s19  ;;  %s520_s30 = int_to_ptr.vmem [resolvable:$true] %s519_s30 }
  0x59   : > { %s5286_s26 = scalar_lea.vmem %s491_s19, 32  ;;  %p5294_p10 = scmp.lt.s32.totalorder %s491_s19, %s491_s19 }
  0x5a   : > { %p5287_p7 = scmp.ne.s32.totalorder %s491_s19, %s5286_s26  ;;  %p5295_p9 = scmp.lt.s32.totalorder %s5286_s26, %s5286_s26 }
  0x5c   : > { %p5289_p5 = pnand %p5287_p7, %p5586_p13  ;;  %p5296_p8 = por %p5295_p9, %p5294_p10 }
  0x5e   : > { %p5290_p6 = pneg %p5289_p5 }
  0x60   : > { %p5297_p11 = pnand %p5296_p8, %p5290_p6 }
  0x62   : > { %5300 = shalt.err (!%p5297_p11)
}
  0x63   : > { %4792 = dma.hbm_to_vmem [thread:$0]  (!%p5578_p12), %s6424_s6, 32, %s491_s19, [#allocation9], %s5408_s20, %s5408_s20, %s5409_s22  }
  0x64   : > { %s5312_s27 = scalar_lea.vmem %s520_s30, 32  ;;  %p5320_p2 = scmp.lt.s32.totalorder %s520_s30, %s520_s30 }
  0x65   : > { %p5313_p0 = scmp.ne.s32.totalorder %s520_s30, %s5312_s27  ;;  %p5321_p4 = scmp.lt.s32.totalorder %s5312_s27, %s5312_s27 }
  0x67   : > { %p5315_p1 = pnand %p5313_p0, %p5586_p13  ;;  %p5322_p7 = por %p5321_p4, %p5320_p2 }
  0x69   : > { %p5316_p3 = pneg %p5315_p1 }
  0x6b   : > { %p5323_p5 = pnand %p5322_p7, %p5316_p3 }
  0x6d   : > { %5326 = shalt.err (!%p5323_p5)
}
  0x6e   : > { %4798 = dma.hbm_to_vmem [thread:$0]  (!%p5578_p12), %s6427_s9, 32, %s520_s30, [#allocation12], %s5408_s20, %s5408_s20, %s5409_s22  }
  0x6f   : > { %p6475_p6 = scmp.ne.s32.totalorder %s6469_s21, 0 }
  0x70   : > { %p6476_p13 = scmp.eq.s32.totalorder (!%p6475_p6), %s5542_s28, 0 }
  0x71   : > { %566 = sbr.rel (%p6475_p6) target bundleno = 8665 (0x21d9), region = 88 }
  0x76   : > { %5370 = dma.done.wait (%p6476_p13), [#allocation3], 64   ;;  %p6477_p10 = pmov %p6476_p13 }
  0x78   : > { %5372 = vsyncadd (%p6477_p10), [#allocation3], 4294967232  ;;  %p6478_p9 = pmov %p6477_p10 }
  0x7a   : > { %5374 = dma.done.wait (%p6478_p9), [#allocation6], 48   ;;  %p6479_p8 = pmov %p6478_p9 }
  0x7c   : > { %5376 = vsyncadd (%p6479_p8), [#allocation6], 4294967248  ;;  %p6480_p11 = pmov %p6479_p8 }
  0x7d   : > { %p6481_p12 = pmov %p6479_p8 }
  0x7e   : > { %5378 = dma.done.wait (%p6480_p11), [#allocation9], 64  }
  0x7f   : > { %5380 = vsyncadd (%p6481_p12), [#allocation9], 4294967232  ;;  %p6482_p0 = pmov %p6479_p8 }
  0x81   : > { %5382 = dma.done.wait (%p6482_p0), [#allocation12], 64   ;;  %p6483_p1 = pmov %p6482_p0 }
  0x82   : > { %s4260_s0 = sshll.u32 %s5542_s28, 1  ;;  %vm672_vm0 = vcmask 1043456   ;;  %s6484_s22 = sld [smem:[#allocation26_spill]]  ;;  %v657_v0 = vld [vmem:[#allocation2] sm:$0xf]  ;;  %vm665_vm1 = vcmask 64512  }
  0x83   : > { %5384 = vsyncadd (%p6483_p1), [#allocation12], 4294967232  ;;  %p644_p3 = scmp.lt.s32.totalorder %s4260_s0, 3  ;;  %4746 = vmatprep.subr.msk.bf16.mxu0 %vm672_vm0, %v657_v0  ;;  %v674_v3 = vsel %vm672_vm0, %v657_v0, 0  ;;  %v4263_v8 = vld [vmem:[#allocation5] ss:$0 sm:$0xff] }
  0x84   : > { %4477 = vmatpush3.bf16.msra.mxu0 %v674_v3  ;;  %vm731_vm2 = vcmask 261120   ;;  %v4935_v45 = vld [vmem:[%s6423_s5 + $0x8] sm:$0xff]   ;;  %v4936_v46 = vld [vmem:[%s6423_s5] sm:$0xff]   ;;  %vm5415_vm3 = vmmov 0   ;;  %s5416_s24 = smov 96   ;;  %vm991_vm4 = vcmask 130048  }
  0x85   : > { %s6502_s0 = smov (!%p644_p3, %s4260_s0), 3  ;;  %4482 = vmatprep.subr.bf16.mxu1 %v4935_v45  ;;  %v4266_v61 = vld [vmem:[#allocation7] ss:$0 sm:$0xff]  ;;  %s5417_s27 = smov 64   ;;  %vm1926_vm5 = vcmask 195584   ;;  %vm4039_vm14 = vcmask 1041409  }
  0x86   : > { %s4373_s21 = sshll.u32 %s6502_s0, 4  ;;  %4483 = vmatpush3.bf16.msra.mxu1 %v4935_v45  ;;  %s5418_s18 = smov 88   ;;  %vm4097_vm15 = vcmask 25600  }
  0x87   : > { %4484 = vmatprep.subr.bf16.mxu1 %v4936_v46  ;;  %s5419_s23 = smov 120   ;;  %s5420_s0 = smov 56  }
  0x88   : > { %s648_s19 = scalar_lea.vmem %s6484_s22, %s4373_s21  ;;  %s5421_s21 = smov 80  }
  0x89   : > { %v651_v1 = vld [vmem:[%s648_s19] sm:$0xff]  ;;  %v652_v2 = vld [vmem:[%s648_s19 + $0x8] sm:$0xff]  ;;  %v653_v5 = vld [vmem:[%s648_s19 + $0x10] sm:$0xff]  ;;  %s5422_s29 = smov 112   ;;  %s5423_s20 = smov 48  }
  0x8a   : > { %v655_v4 = vpack.c.bf16 %v652_v2, %v651_v1  ;;  %v654_v6 = vld [vmem:[%s648_s19 + $0x18] sm:$0xff]  ;;  %4485 = vmatpush3.bf16.msra.mxu1 %v4936_v46  ;;  %v4267_v2 = vld [vmem:[#allocation8] ss:$0 sm:$0xff]  ;;  %s6455_s22 = smov 72   ;;  %s6451_s19 = smov 104  }
  0x8b   : > { %v656_v7 = vpack.c.bf16 %v654_v6, %v653_v5  ;;  %s6449_s2 = smov 40   ;;  %s6447_s30 = smov 8  }
  0x8c   : > { %4478 = vmatprep.mubr.msk.bf16.mxu0 %vm665_vm1, %v655_v4  ;;  %s6445_s26 = smov 16   ;;  %p6491_p4 = scmp.ne.s32.totalorder %s6466_s1, 0 }
  0x8d   : > { %4479 = vmatmul.mubr.msk.bf16.vlgmr.msra.gmra.mxu0 %vm665_vm1, %v656_v7  ;;  %s5430_s4 = smov [#allocation14]  }
 0x14d   : > { %v4480_v9 = vpop.f32.mrf.mxu0 }
 0x14e   : > { %v719_v10 = vadd.f32 %v4480_v9, %v4263_v8 }
 0x14f   : > { %v710_v11 = vpop.f32.mrf.mxu0 }
 0x150   : > { %v5683_v12 = vmax.f32 %v719_v10, 0.0  ;;  %v711_v13 = vadd.f32 %v4263_v8, %v710_v11 }
 0x151   : > { %v4481_v14 = vpop.f32.mrf.mxu0 }
 0x152   : > { %v5685_v15 = vmax.f32 %v711_v13, 0.0  ;;  %v722_v16 = vadd.f32 %v4481_v14, %v4263_v8  ;;  %v738_v17 = vsel %vm731_vm2, %v5683_v12, 0.0 }
 0x153   : > { %739 = vadd.xlane.f32.xlu1 %v738_v17  ;;  %v713_v18 = vpop.f32.mrf.mxu0  ;;  %v5414_v17 = vmov 0.0  }
 0x154   : > { %v5689_v19 = vmax.f32 %v722_v16, 0.0  ;;  %v714_v20 = vadd.f32 %v4263_v8, %v713_v18  ;;  %v732_v21 = vsel %vm731_vm2, %v5685_v15, 0.0  ;;  %4496 = vmatprep.subr.bf16.mxu1 %v5414_v17  ;;  %4490 = vmatprep.subr.bf16.mxu0 %v5414_v17 }
 0x155   : > { %733 = vadd.xlane.f32.xlu0 %v732_v21  ;;  %4492 = vmatprep.mubr.msk.bf16.mxu0 %vm5415_vm3, %v5414_v17 }
 0x156   : > { %v5693_v22 = vmax.f32 %v714_v20, 0.0  ;;  %v741_v23 = vsel %vm731_vm2, %v5689_v19, 0.0  ;;  %v4268_v20 = vld [vmem:[#allocation10] ss:$0 sm:$0xff] }
 0x157   : > { %742 = vadd.xlane.f32.xlu1 %v741_v23 }
 0x158   : > { %v735_v24 = vsel %vm731_vm2, %v5693_v22, 0.0 }
 0x159   : > { %736 = vadd.xlane.f32.xlu0 %v735_v24 }
 0x1dc   : > { %v740_v25 = vpop.xlane.xlu1 %739 }
 0x1dd   : > { %v747_v26 = vmul.f32 0.03125, %v740_v25 }
 0x1de   : > { %v734_v27 = vpop.xlane.xlu0 %733 }
 0x1df   : > { %v745_v28 = vmul.f32 0.03125, %v734_v27  ;;  %v751_v30 = vsub.f32 %v5683_v12, %v747_v26 }
 0x1e0   : > { %v743_v29 = vpop.xlane.xlu1 %742 }
 0x1e1   : > { %v749_v31 = vsub.f32 %v5685_v15, %v745_v28  ;;  %v748_v32 = vmul.f32 0.03125, %v743_v29  ;;  %v755_v39 = vmul.f32 %v751_v30, %v751_v30 }
 0x1e2   : > { %v737_v33 = vpop.xlane.xlu0 %736 }
 0x1e3   : > { %v746_v34 = vmul.f32 0.03125, %v737_v33  ;;  %v753_v35 = vmul.f32 %v749_v31, %v749_v31  ;;  %v752_v36 = vsub.f32 %v5689_v19, %v748_v32  ;;  %v763_v41 = vsel %vm731_vm2, %v755_v39, 0.0 }
 0x1e5   : > { %v750_v37 = vsub.f32 %v5693_v22, %v746_v34  ;;  %v757_v38 = vsel %vm731_vm2, %v753_v35, 0.0  ;;  %v756_v43 = vmul.f32 %v752_v36, %v752_v36 }
 0x1e6   : > { %758 = vadd.xlane.f32.xlu0 %v757_v38 }
 0x1e7   : > { %v754_v40 = vmul.f32 %v750_v37, %v750_v37  ;;  %v766_v44 = vsel %vm731_vm2, %v756_v43, 0.0 }
 0x1e9   : > { %v760_v42 = vsel %vm731_vm2, %v754_v40, 0.0 }
 0x1ea   : > { %764 = vadd.xlane.f32.xlu0 %v763_v41  ;;  %761 = vadd.xlane.f32.xlu1 %v760_v42 }
 0x1ee   : > { %767 = vadd.xlane.f32.xlu1 %v766_v44 }
 0x26f   : > { %v759_v47 = vpop.xlane.xlu0 %758 }
 0x270   : > { %v769_v48 = vmul.f32 0.03125, %v759_v47 }
 0x272   : > { %v773_v49 = vadd.f32 1e-05, %v769_v48 }
 0x273   : > { %v762_v50 = vpop.xlane.xlu1 %761  ;;  %v765_v51 = vpop.xlane.xlu0 %764 }
 0x274   : > { %4953 = vrsqrt.f32 %v773_v49  ;;  %v770_v52 = vmul.f32 0.03125, %v762_v50  ;;  %v771_v53 = vmul.f32 0.03125, %v765_v51 }
 0x276   : > { %v774_v54 = vadd.f32 1e-05, %v770_v52  ;;  %v775_v55 = vadd.f32 1e-05, %v771_v53 }
 0x277   : > { %v768_v56 = vpop.xlane.xlu1 %767 }
 0x278   : > { %4955 = vrsqrt.f32 %v774_v54  ;;  %v772_v57 = vmul.f32 0.03125, %v768_v56 }
 0x279   : > { %4957 = vrsqrt.f32 %v775_v55 }
 0x27a   : > { %v776_v58 = vadd.f32 1e-05, %v772_v57 }
 0x27c   : > { %4959 = vrsqrt.f32 %v776_v58 }
 0x281   : > { %v4954_v59 = vpop.eup %4953 }
 0x282   : > { %v781_v60 = vmul.f32 %v4954_v59, %v749_v31 }
 0x284   : > { %v791_v1 = vmul.f32 %v4266_v61, %v781_v60 }
 0x285   : > { %v4956_v62 = vpop.eup %4955 }
 0x286   : > { %v4958_v63 = vpop.eup %4957  ;;  %v782_v0 = vmul.f32 %v4956_v62, %v750_v37  ;;  %v801_v6 = vadd.f32 %v4267_v2, %v791_v1 }
 0x287   : > { %v783_v3 = vmul.f32 %v4958_v63, %v751_v30 }
 0x288   : > { %v792_v4 = vmul.f32 %v4266_v61, %v782_v0 }
 0x289   : > { %v4960_v5 = vpop.eup %4959  ;;  %v793_v9 = vmul.f32 %v4266_v61, %v783_v3 }
 0x28a   : > { %v802_v7 = vadd.f32 %v4267_v2, %v792_v4  ;;  %v784_v8 = vmul.f32 %v4960_v5, %v752_v36 }
 0x28b   : > { %v803_v13 = vadd.f32 %v4267_v2, %v793_v9 }
 0x28c   : > { %v805_v10 = vpack.c.bf16 %v802_v7, %v801_v6  ;;  %v794_v11 = vmul.f32 %v4266_v61, %v784_v8 }
 0x28e   : > { %4486 = vmatprep.mubr.msk.bf16.mxu1 %vm731_vm2, %v805_v10  ;;  %v804_v14 = vadd.f32 %v4267_v2, %v794_v11 }
 0x290   : > { %v806_v16 = vpack.c.bf16 %v804_v14, %v803_v13 }
 0x292   : > { %4487 = vmatmul.mubr.msk.bf16.vlgmr.msra.gmra.mxu1 %vm731_vm2, %v806_v16 }
 0x293   : > { %4498 = vmatprep.mubr.msk.bf16.mxu1 %vm5415_vm3, %v5414_v17 }
 0x352   : > { %v4488_v18 = vpop.f32.mrf.mxu1 }
 0x353   : > { %v879_v24 = vadd.f32 %v4488_v18, %v4268_v20 }
 0x354   : > { %v870_v21 = vpop.f32.mrf.mxu1 }
 0x355   : > { %v871_v27 = vadd.f32 %v4268_v20, %v870_v21 }
 0x356   : > { %v4489_v23 = vpop.f32.mrf.mxu1 }
 0x357   : > { %v882_v25 = vadd.f32 %v4489_v23, %v4268_v20 }
 0x358   : > { %v873_v26 = vpop.f32.mrf.mxu1 }
 0x359   : > { %v5721_v28 = vpack.c.bf16 %v882_v25, %v879_v24  ;;  %v874_v29 = vadd.f32 %v4268_v20, %v873_v26 }
 0x35b   : > { %v5723_v30 = vpack.c.bf16 %v874_v29, %v871_v27  ;;  %938 = vrot.lane.b32.xlu1 %v5721_v28, %s5416_s24 }
 0x35d   : > { %888 = vrot.lane.b32.xlu0 %v5723_v30, %s5416_s24 }
 0x3cd   : > { %v939_v31 = vpop.permute.xlu1 %938 }
 0x3ce   : > { %v944_v32 = vsel %vm665_vm1, %v939_v31, 0 }
 0x3cf   : > { %4497 = vmatpush3.bf16.xpose.msra.mxu1 %v944_v32  ;;  %v889_v33 = vpop.permute.xlu0 %888 }
 0x3d0   : > { %v894_v34 = vsel %vm665_vm1, %v889_v33, 0  ;;  %4508 = vmatprep.subr.bf16.mxu1 %v5414_v17 }
 0x3d1   : > { %4491 = vmatpush3.bf16.xpose.msra.mxu0 %v894_v34 }
 0x3d2   : > { %4502 = vmatprep.subr.bf16.mxu0 %v5414_v17 }
 0x3d6   : > { %4499 = vmatmul.mubr.msk.bf16.vlgmr.msra.gmra.mxu1 %vm665_vm1, %v5721_v28 }
 0x3d7   : > { %4510 = vmatprep.mubr.msk.bf16.mxu1 %vm5415_vm3, %v5414_v17 }
 0x3d8   : > { %4493 = vmatmul.mubr.msk.bf16.vlgmr.msra.gmra.mxu0 %vm665_vm1, %v5723_v30 }
 0x3d9   : > { %4504 = vmatprep.mubr.msk.bf16.mxu0 %vm5415_vm3, %v5414_v17 }
 0x496   : > { %v980_v35 = vpop.f32.mrf.mxu1 }
 0x497   : > { %v989_v47 = vmul.f32 0.35355338, %v980_v35 }
 0x498   : > { %v930_v36 = vpop.f32.mrf.mxu0  ;;  %v4500_v37 = vpop.f32.mrf.mxu1 }
 0x499   : > { %v987_v38 = vmul.f32 0.35355338, %v930_v36  ;;  %v998_v50 = vsel %vm991_vm4, %v989_v47, -inf }
 0x49a   : > { %v4494_v39 = vpop.f32.mrf.mxu0  ;;  %v983_v40 = vpop.f32.mrf.mxu1 }
 0x49b   : > { %v990_v41 = vmul.f32 0.35355338, %v983_v40  ;;  %v992_v42 = vsel %vm991_vm4, %v987_v38, -inf }
 0x49c   : > { %v4501_v43 = vpop.f32.mrf.mxu1  ;;  %993 = vmax.xlane.f32.xlu1 %v992_v42  ;;  %v933_v44 = vpop.f32.mrf.mxu0 }
 0x49d   : > { %v988_v45 = vmul.f32 0.35355338, %v933_v44  ;;  %v1001_v48 = vsel %vm991_vm4, %v990_v41, -inf }
 0x49e   : > { %v4495_v46 = vpop.f32.mrf.mxu0 }
 0x49f   : > { %v995_v49 = vsel %vm991_vm4, %v988_v45, -inf }
 0x4a0   : > { %1002 = vmax.xlane.f32.xlu1 %v1001_v48  ;;  %996 = vmax.xlane.f32.xlu0 %v995_v49 }
 0x4a4   : > { %999 = vmax.xlane.f32.xlu0 %v998_v50 }
 0x4b1   : > { %1085 = vrot.lane.b32.xlu1 %v5721_v28, %s5417_s27 }
 0x4b5   : > { %1134 = vrot.lane.b32.xlu1 %v5723_v30, %s5418_s18 }
 0x525   : > { %v994_v51 = vpop.xlane.xlu1 %993 }
 0x526   : > { %v1004_v56 = vsub.f32 %v987_v38, %v994_v51 }
 0x528   : > { %v1008_v62 = vmul.f32 1.442695, %v1004_v56 }
 0x529   : > { %v1003_v52 = vpop.xlane.xlu1 %1002  ;;  %v997_v53 = vpop.xlane.xlu0 %996 }
 0x52a   : > { %v1007_v54 = vsub.f32 %v990_v41, %v1003_v52  ;;  %v1005_v55 = vsub.f32 %v988_v45, %v997_v53 }
 0x52c   : > { %v1014_v57 = vmul.f32 1.442695, %v1007_v54  ;;  %v1010_v58 = vmul.f32 1.442695, %v1005_v55 }
 0x52d   : > { %v1086_v59 = vpop.permute.xlu1 %1085  ;;  %v1000_v60 = vpop.xlane.xlu0 %999 }
 0x52e   : > { %4961 = vpow2.f32 %v1014_v57  ;;  %v1006_v61 = vsub.f32 %v989_v47, %v1000_v60  ;;  %4509 = vmatpush3.bf16.msra.mxu1 %v1086_v59 }
 0x52f   : > { %4520 = vmatprep.subr.bf16.mxu1 %v5414_v17  ;;  %4963 = vpow2.f32 %v1010_v58 }
 0x530   : > { %v1012_v63 = vmul.f32 1.442695, %v1006_v61 }
 0x531   : > { %v1135_v8 = vpop.permute.xlu1 %1134 }
 0x532   : > { %4965 = vpow2.f32 %v1012_v63  ;;  %v1140_v33 = vsel %vm665_vm1, %v1135_v8, 0 }
 0x533   : > { %4967 = vpow2.f32 %v1008_v62 }
 0x53b   : > { %v4962_v0 = vpop.eup %4961 }
 0x53c   : > { %v1025_v1 = vsel %vm991_vm4, %v4962_v0, 0.0  ;;  %v4964_v2 = vpop.eup %4963 }
 0x53d   : > { %1026 = vadd.xlane.f32.xlu1 %v1025_v1  ;;  %v1019_v4 = vsel %vm991_vm4, %v4964_v2, 0.0 }
 0x53f   : > { %v4966_v3 = vpop.eup %4965 }
 0x540   : > { %v1022_v5 = vsel %vm991_vm4, %v4966_v3, 0.0  ;;  %v4968_v6 = vpop.eup %4967 }
 0x541   : > { %1020 = vadd.xlane.f32.xlu1 %v1019_v4  ;;  %1023 = vadd.xlane.f32.xlu0 %v1022_v5  ;;  %v1016_v7 = vsel %vm991_vm4, %v4968_v6, 0.0 }
 0x545   : > { %1017 = vadd.xlane.f32.xlu0 %v1016_v7 }
 0x552   : > { %1185 = vrot.lane.b32.xlu1 %v5721_v28, %s5418_s18 }
 0x556   : > { %1183 = vrot.lane.b32.xlu1 %v5721_v28, %s5419_s23 }
 0x55b   : > { %1038 = vrot.lane.b32.xlu0 %v5723_v30, %s5417_s27 }
 0x55f   : > { %1132 = vrot.lane.b32.xlu0 %v5723_v30, %s5419_s23 }
 0x5c6   : > { %v1027_v9 = vpop.xlane.xlu1 %1026 }
 0x5c7   : > { %4969 = vrcp.f32 %v1027_v9 }
 0x5ca   : > { %v1021_v10 = vpop.xlane.xlu1 %1020  ;;  %v1024_v11 = vpop.xlane.xlu0 %1023 }
 0x5cb   : > { %4971 = vrcp.f32 %v1024_v11 }
 0x5cc   : > { %4973 = vrcp.f32 %v1021_v10 }
 0x5ce   : > { %v1018_v13 = vpop.xlane.xlu0 %1017  ;;  %v1186_v24 = vpop.permute.xlu1 %1185 }
 0x5cf   : > { %4975 = vrcp.f32 %v1018_v13  ;;  %v1191_v31 = vsel %vm665_vm1, %v1186_v24, 0 }
 0x5d2   : > { %v1039_v14 = vpop.permute.xlu0 %1038  ;;  %v1184_v34 = vpop.permute.xlu1 %1183 }
 0x5d3   : > { %4503 = vmatpush3.bf16.msra.mxu0 %v1039_v14 }
 0x5d4   : > { %4514 = vmatprep.subr.bf16.mxu0 %v5414_v17  ;;  %v4970_v16 = vpop.eup %4969 }
 0x5d5   : > { %v1035_v23 = vmul.f32 %v4970_v16, %v4962_v0 }
 0x5d6   : > { %v1133_v35 = vpop.permute.xlu0 %1132 }
 0x5d8   : > { %v4972_v18 = vpop.eup %4971 }
 0x5d9   : > { %v4974_v20 = vpop.eup %4973  ;;  %v1034_v21 = vmul.f32 %v4972_v18, %v4966_v3 }
 0x5da   : > { %v1033_v29 = vmul.f32 %v4974_v20, %v4964_v2 }
 0x5db   : > { %v1037_v26 = vpack.c.bf16 %v1035_v23, %v1034_v21 }
 0x5dc   : > { %v4976_v25 = vpop.eup %4975 }
 0x5dd   : > { %v1032_v27 = vmul.f32 %v4976_v25, %v4968_v6  ;;  %4511 = vmatmul.mubr.msk.bf16.vlgmr.msra.gmra.mxu1 %vm991_vm4, %v1037_v26 }
 0x5de   : > { %4521 = vmatpush3.bf16.xpose.msra.mxu1 %v1191_v31  ;;  %4522 = vmatprep.mubr.msk.bf16.mxu1 %vm5415_vm3, %v5414_v17 }
 0x5df   : > { %v1036_v32 = vpack.c.bf16 %v1033_v29, %v1032_v27  ;;  %4532 = vmatprep.subr.bf16.mxu1 %v5414_v17 }
 0x5e1   : > { %4505 = vmatmul.mubr.msk.bf16.vlgmr.msra.gmra.mxu0 %vm991_vm4, %v1036_v32 }
 0x5e2   : > { %4515 = vmatpush3.bf16.xpose.msra.mxu0 %v1140_v33  ;;  %4516 = vmatprep.mubr.msk.bf16.mxu0 %vm5415_vm3, %v5414_v17 }
 0x5e3   : > { %4526 = vmatprep.subr.bf16.mxu0 %v5414_v17 }
 0x5e5   : > { %4523 = vmatmul.mubr.msk.bf16.vlgmr.msra.gmra.mxu1 %vm665_vm1, %v1184_v34 }
 0x5e6   : > { %4534 = vmatprep.mubr.msk.bf16.mxu1 %vm5415_vm3, %v5414_v17 }
 0x5e9   : > { %4517 = vmatmul.mubr.msk.bf16.vlgmr.msra.gmra.mxu0 %vm665_vm1, %v1133_v35 }
 0x5ea   : > { %4528 = vmatprep.mubr.msk.bf16.mxu0 %vm5415_vm3, %v5414_v17 }
 0x69d   : > { %v5779_v36 = vpop.f32.mrf.mxu1 }
 0x69f   : > { %v4512_v37 = vpop.f32.mrf.mxu1 }
 0x6a1   : > { %v5781_v38 = vpop.f32.mrf.mxu0  ;;  %v5783_v39 = vpop.f32.mrf.mxu1 }
 0x6a3   : > { %v4506_v40 = vpop.f32.mrf.mxu0  ;;  %v4513_v41 = vpop.f32.mrf.mxu1 }
 0x6a5   : > { %v5785_v42 = vpop.f32.mrf.mxu0  ;;  %v1227_v43 = vpop.f32.mrf.mxu1 }
 0x6a6   : > { %v1236_v50 = vmul.f32 0.35355338, %v1227_v43 }
 0x6a7   : > { %v4507_v44 = vpop.f32.mrf.mxu0  ;;  %v4524_v45 = vpop.f32.mrf.mxu1 }
 0x6a8   : > { %v1244_v57 = vsel %vm991_vm4, %v1236_v50, -inf }
 0x6a9   : > { %v1176_v46 = vpop.f32.mrf.mxu0  ;;  %v1230_v48 = vpop.f32.mrf.mxu1 }
 0x6aa   : > { %v1234_v47 = vmul.f32 0.35355338, %v1176_v46  ;;  %v1237_v56 = vmul.f32 0.35355338, %v1230_v48 }
 0x6ab   : > { %v4518_v49 = vpop.f32.mrf.mxu0  ;;  %v4525_v51 = vpop.f32.mrf.mxu1 }
 0x6ac   : > { %v1238_v52 = vsel %vm991_vm4, %v1234_v47, -inf  ;;  %v1247_v59 = vsel %vm991_vm4, %v1237_v56, -inf }
 0x6ad   : > { %1239 = vmax.xlane.f32.xlu0 %v1238_v52  ;;  %v1179_v53 = vpop.f32.mrf.mxu0 }
 0x6ae   : > { %v1235_v54 = vmul.f32 0.35355338, %v1179_v53 }
 0x6af   : > { %v4519_v55 = vpop.f32.mrf.mxu0 }
 0x6b0   : > { %v1241_v58 = vsel %vm991_vm4, %v1235_v54, -inf }
 0x6b1   : > { %1245 = vmax.xlane.f32.xlu0 %v1244_v57  ;;  %1242 = vmax.xlane.f32.xlu1 %v1241_v58 }
 0x6b5   : > { %1248 = vmax.xlane.f32.xlu0 %v1247_v59 }
 0x6c2   : > { %1331 = vrot.lane.b32.xlu1 %v5721_v28, %s5420_s0 }
 0x6c6   : > { %1380 = vrot.lane.b32.xlu1 %v5723_v30, %s5421_s21 }
 0x736   : > { %v1240_v60 = vpop.xlane.xlu0 %1239 }
 0x737   : > { %v1250_v61 = vsub.f32 %v1234_v47, %v1240_v60 }
 0x739   : > { %v1254_v1 = vmul.f32 1.442695, %v1250_v61 }
 0x73a   : > { %v1246_v62 = vpop.xlane.xlu0 %1245  ;;  %v1243_v63 = vpop.xlane.xlu1 %1242 }
 0x73b   : > { %v1252_v0 = vsub.f32 %v1236_v50, %v1246_v62  ;;  %v1251_v3 = vsub.f32 %v1235_v54, %v1243_v63 }
 0x73d   : > { %v1258_v2 = vmul.f32 1.442695, %v1252_v0  ;;  %v1256_v7 = vmul.f32 1.442695, %v1251_v3 }
 0x73e   : > { %v1249_v4 = vpop.xlane.xlu0 %1248  ;;  %v1332_v5 = vpop.permute.xlu1 %1331 }
 0x73f   : > { %4977 = vpow2.f32 %v1258_v2  ;;  %v1253_v6 = vsub.f32 %v1237_v56, %v1249_v4  ;;  %4533 = vmatpush3.bf16.msra.mxu1 %v1332_v5 }
 0x740   : > { %4544 = vmatprep.subr.bf16.mxu1 %v5414_v17  ;;  %4979 = vpow2.f32 %v1254_v1 }
 0x741   : > { %v1260_v8 = vmul.f32 1.442695, %v1253_v6 }
 0x742   : > { %v1381_v21 = vpop.permute.xlu1 %1380 }
 0x743   : > { %4981 = vpow2.f32 %v1260_v8  ;;  %v1386_v46 = vsel %vm665_vm1, %v1381_v21, 0 }
 0x744   : > { %4983 = vpow2.f32 %v1256_v7 }
 0x74c   : > { %v4978_v9 = vpop.eup %4977 }
 0x74d   : > { %v1268_v10 = vsel %vm991_vm4, %v4978_v9, 0.0  ;;  %v4980_v11 = vpop.eup %4979 }
 0x74e   : > { %1269 = vadd.xlane.f32.xlu0 %v1268_v10  ;;  %v1262_v14 = vsel %vm991_vm4, %v4980_v11, 0.0 }
 0x750   : > { %v4982_v13 = vpop.eup %4981 }
 0x751   : > { %v1271_v16 = vsel %vm991_vm4, %v4982_v13, 0.0  ;;  %v4984_v18 = vpop.eup %4983 }
 0x752   : > { %1263 = vadd.xlane.f32.xlu0 %v1262_v14  ;;  %1272 = vadd.xlane.f32.xlu1 %v1271_v16  ;;  %v1265_v20 = vsel %vm991_vm4, %v4984_v18, 0.0 }
 0x756   : > { %1266 = vadd.xlane.f32.xlu1 %v1265_v20 }
 0x767   : > { %1431 = vrot.lane.b32.xlu1 %v5721_v28, %s5421_s21 }
 0x768   : > { %1284 = vrot.lane.b32.xlu0 %v5723_v30, %s5420_s0 }
 0x76b   : > { %1429 = vrot.lane.b32.xlu1 %v5721_v28, %s5422_s29 }
 0x76c   : > { %1378 = vrot.lane.b32.xlu0 %v5723_v30, %s5422_s29 }
 0x7d7   : > { %v1270_v23 = vpop.xlane.xlu0 %1269 }
 0x7d8   : > { %4985 = vrcp.f32 %v1270_v23 }
 0x7db   : > { %v1264_v24 = vpop.xlane.xlu0 %1263  ;;  %v1273_v25 = vpop.xlane.xlu1 %1272 }
 0x7dc   : > { %4987 = vrcp.f32 %v1273_v25 }
 0x7dd   : > { %4989 = vrcp.f32 %v1264_v24 }
 0x7df   : > { %v1285_v26 = vpop.permute.xlu0 %1284  ;;  %v1267_v27 = vpop.xlane.xlu1 %1266 }
 0x7e0   : > { %4991 = vrcp.f32 %v1267_v27  ;;  %4527 = vmatpush3.bf16.msra.mxu0 %v1285_v26 }
 0x7e1   : > { %4538 = vmatprep.subr.bf16.mxu0 %v5414_v17 }
 0x7e3   : > { %v1432_v35 = vpop.permute.xlu1 %1431  ;;  %v1379_v48 = vpop.permute.xlu0 %1378 }
 0x7e4   : > { %v1437_v44 = vsel %vm665_vm1, %v1432_v35, 0 }
 0x7e5   : > { %v4986_v29 = vpop.eup %4985 }
 0x7e6   : > { %v1280_v33 = vmul.f32 %v4986_v29, %v4978_v9 }
 0x7e7   : > { %v1430_v47 = vpop.permute.xlu1 %1429 }
 0x7e9   : > { %v4988_v31 = vpop.eup %4987 }
 0x7ea   : > { %v4990_v32 = vpop.eup %4989  ;;  %v1281_v34 = vmul.f32 %v4988_v31, %v4982_v13 }
 0x7eb   : > { %v1278_v41 = vmul.f32 %v4990_v32, %v4980_v11 }
 0x7ec   : > { %v1283_v40 = vpack.c.bf16 %v1281_v34, %v1280_v33 }
 0x7ed   : > { %v4992_v37 = vpop.eup %4991 }
 0x7ee   : > { %v1279_v43 = vmul.f32 %v4992_v37, %v4984_v18  ;;  %4535 = vmatmul.mubr.msk.bf16.vlgmr.msra.gmra.mxu1 %vm991_vm4, %v1283_v40 }
 0x7ef   : > { %4545 = vmatpush3.bf16.xpose.msra.mxu1 %v1437_v44  ;;  %4546 = vmatprep.mubr.msk.bf16.mxu1 %vm5415_vm3, %v5414_v17 }
 0x7f0   : > { %v1282_v45 = vpack.c.bf16 %v1279_v43, %v1278_v41  ;;  %4556 = vmatprep.subr.bf16.mxu1 %v5414_v17 }
 0x7f2   : > { %4529 = vmatmul.mubr.msk.bf16.vlgmr.msra.gmra.mxu0 %vm991_vm4, %v1282_v45 }
 0x7f3   : > { %4539 = vmatpush3.bf16.xpose.msra.mxu0 %v1386_v46  ;;  %4540 = vmatprep.mubr.msk.bf16.mxu0 %vm5415_vm3, %v5414_v17 }
 0x7f4   : > { %4550 = vmatprep.subr.bf16.mxu0 %v5414_v17 }
 0x7f6   : > { %4547 = vmatmul.mubr.msk.bf16.vlgmr.msra.gmra.mxu1 %vm665_vm1, %v1430_v47 }
 0x7f7   : > { %4558 = vmatprep.mubr.msk.bf16.mxu1 %vm5415_vm3, %v5414_v17 }
 0x7fa   : > { %4541 = vmatmul.mubr.msk.bf16.vlgmr.msra.gmra.mxu0 %vm665_vm1, %v1379_v48 }
 0x7fb   : > { %4552 = vmatprep.mubr.msk.bf16.mxu0 %vm5415_vm3, %v5414_v17 }
 0x8ae   : > { %v5825_v49 = vpop.f32.mrf.mxu1 }
 0x8b0   : > { %v4536_v50 = vpop.f32.mrf.mxu1 }
 0x8b2   : > { %v5827_v51 = vpop.f32.mrf.mxu0  ;;  %v5829_v52 = vpop.f32.mrf.mxu1 }
 0x8b3   : > { %v4880_v53 = vpack.i.bf16 %v5829_v52, %v5825_v49 }
 0x8b4   : > { %v4530_v54 = vpop.f32.mrf.mxu0  ;;  %v4537_v55 = vpop.f32.mrf.mxu1 }
 0x8b6   : > { %v5833_v56 = vpop.f32.mrf.mxu0  ;;  %v1473_v58 = vpop.f32.mrf.mxu1 }
 0x8b7   : > { %v4875_v57 = vpack.i.bf16 %v5833_v56, %v5827_v51  ;;  %v1482_v1 = vmul.f32 0.35355338, %v1473_v58 }
 0x8b8   : > { %v4531_v59 = vpop.f32.mrf.mxu0  ;;  %v4548_v60 = vpop.f32.mrf.mxu1 }
 0x8b9   : > { %v1490_v8 = vsel %vm991_vm4, %v1482_v1, -inf }
 0x8ba   : > { %v1422_v61 = vpop.f32.mrf.mxu0  ;;  %v1476_v63 = vpop.f32.mrf.mxu1 }
 0x8bb   : > { %v1480_v62 = vmul.f32 0.35355338, %v1422_v61  ;;  %v1483_v7 = vmul.f32 0.35355338, %v1476_v63 }
 0x8bc   : > { %v4542_v0 = vpop.f32.mrf.mxu0  ;;  %v4549_v2 = vpop.f32.mrf.mxu1 }
 0x8bd   : > { %v1484_v3 = vsel %vm991_vm4, %v1480_v62, -inf  ;;  %v1493_v10 = vsel %vm991_vm4, %v1483_v7, -inf }
 0x8be   : > { %1485 = vmax.xlane.f32.xlu0 %v1484_v3  ;;  %v1425_v4 = vpop.f32.mrf.mxu0 }
 0x8bf   : > { %v1481_v5 = vmul.f32 0.35355338, %v1425_v4 }
 0x8c0   : > { %v4543_v6 = vpop.f32.mrf.mxu0 }
 0x8c1   : > { %v1487_v9 = vsel %vm991_vm4, %v1481_v5, -inf }
 0x8c2   : > { %1491 = vmax.xlane.f32.xlu0 %v1490_v8  ;;  %1488 = vmax.xlane.f32.xlu1 %v1487_v9 }
 0x8c6   : > { %1494 = vmax.xlane.f32.xlu0 %v1493_v10 }
 0x8d3   : > { %1577 = vrot.lane.b32.xlu1 %v5721_v28, %s5423_s20 }
 0x8d7   : > { %1626 = vrot.lane.b32.xlu1 %v5723_v30, %s6455_s22 }
 0x947   : > { %v1486_v11 = vpop.xlane.xlu0 %1485 }
 0x948   : > { %v1496_v13 = vsub.f32 %v1480_v62, %v1486_v11 }
 0x94a   : > { %v1500_v20 = vmul.f32 1.442695, %v1496_v13 }
 0x94b   : > { %v1492_v14 = vpop.xlane.xlu0 %1491  ;;  %v1489_v16 = vpop.xlane.xlu1 %1488 }
 0x94c   : > { %v1498_v18 = vsub.f32 %v1482_v1, %v1492_v14  ;;  %v1497_v23 = vsub.f32 %v1481_v5, %v1489_v16 }
 0x94e   : > { %v1504_v21 = vmul.f32 1.442695, %v1498_v18  ;;  %v1502_v27 = vmul.f32 1.442695, %v1497_v23 }
 0x94f   : > { %v1495_v24 = vpop.xlane.xlu0 %1494  ;;  %v1578_v25 = vpop.permute.xlu1 %1577 }
 0x950   : > { %4993 = vpow2.f32 %v1504_v21  ;;  %v1499_v26 = vsub.f32 %v1483_v7, %v1495_v24  ;;  %4557 = vmatpush3.bf16.msra.mxu1 %v1578_v25 }
 0x951   : > { %4568 = vmatprep.subr.bf16.mxu1 %v5414_v17  ;;  %4995 = vpow2.f32 %v1500_v20 }
 0x952   : > { %v1506_v29 = vmul.f32 1.442695, %v1499_v26 }
 0x953   : > { %v1627_v43 = vpop.permute.xlu1 %1626 }
 0x954   : > { %4997 = vpow2.f32 %v1506_v29  ;;  %v1632_v3 = vsel %vm665_vm1, %v1627_v43, 0 }
 0x955   : > { %4999 = vpow2.f32 %v1502_v27 }
 0x95d   : > { %v4994_v31 = vpop.eup %4993 }
 0x95e   : > { %v1514_v32 = vsel %vm991_vm4, %v4994_v31, 0.0  ;;  %v4996_v33 = vpop.eup %4995 }
 0x95f   : > { %1515 = vadd.xlane.f32.xlu0 %v1514_v32  ;;  %v1508_v35 = vsel %vm991_vm4, %v4996_v33, 0.0 }
 0x961   : > { %v4998_v34 = vpop.eup %4997 }
 0x962   : > { %v1517_v37 = vsel %vm991_vm4, %v4998_v34, 0.0  ;;  %v5000_v40 = vpop.eup %4999 }
 0x963   : > { %1509 = vadd.xlane.f32.xlu0 %v1508_v35  ;;  %1518 = vadd.xlane.f32.xlu1 %v1517_v37  ;;  %v1511_v41 = vsel %vm991_vm4, %v5000_v40, 0.0 }
 0x967   : > { %1512 = vadd.xlane.f32.xlu1 %v1511_v41 }
 0x978   : > { %1677 = vrot.lane.b32.xlu1 %v5721_v28, %s6455_s22 }
 0x979   : > { %1530 = vrot.lane.b32.xlu0 %v5723_v30, %s5423_s20 }
 0x97c   : > { %1675 = vrot.lane.b32.xlu1 %v5721_v28, %s6451_s19 }
 0x97d   : > { %1624 = vrot.lane.b32.xlu0 %v5723_v30, %s6451_s19  ;;  %s6453_s19 = smov 24  }
 0x9e8   : > { %v1516_v44 = vpop.xlane.xlu0 %1515 }
 0x9e9   : > { %5001 = vrcp.f32 %v1516_v44 }
 0x9ec   : > { %v1510_v45 = vpop.xlane.xlu0 %1509  ;;  %v1519_v46 = vpop.xlane.xlu1 %1518 }
 0x9ed   : > { %5003 = vrcp.f32 %v1519_v46 }
 0x9ee   : > { %5005 = vrcp.f32 %v1510_v45 }
 0x9f0   : > { %v1531_v47 = vpop.permute.xlu0 %1530  ;;  %v1513_v48 = vpop.xlane.xlu1 %1512 }
 0x9f1   : > { %5007 = vrcp.f32 %v1513_v48  ;;  %4551 = vmatpush3.bf16.msra.mxu0 %v1531_v47 }
 0x9f2   : > { %4562 = vmatprep.subr.bf16.mxu0 %v5414_v17 }
 0x9f4   : > { %v1678_v60 = vpop.permute.xlu1 %1677  ;;  %v1625_v5 = vpop.permute.xlu0 %1624 }
 0x9f5   : > { %v1683_v1 = vsel %vm665_vm1, %v1678_v60, 0 }
 0x9f6   : > { %v5002_v50 = vpop.eup %5001 }
 0x9f7   : > { %v1526_v58 = vmul.f32 %v5002_v50, %v4994_v31 }
 0x9f8   : > { %v1676_v4 = vpop.permute.xlu1 %1675 }
 0x9fa   : > { %v5004_v54 = vpop.eup %5003 }
 0x9fb   : > { %v5006_v55 = vpop.eup %5005  ;;  %v1527_v59 = vmul.f32 %v5004_v54, %v4998_v34 }
 0x9fc   : > { %v1524_v63 = vmul.f32 %v5006_v55, %v4996_v33 }
 0x9fd   : > { %v1529_v62 = vpack.c.bf16 %v1527_v59, %v1526_v58 }
 0x9fe   : > { %v5008_v61 = vpop.eup %5007 }
 0x9ff   : > { %v1525_v0 = vmul.f32 %v5008_v61, %v5000_v40  ;;  %4559 = vmatmul.mubr.msk.bf16.vlgmr.msra.gmra.mxu1 %vm991_vm4, %v1529_v62 }
 0xa00   : > { %4569 = vmatpush3.bf16.xpose.msra.mxu1 %v1683_v1  ;;  %4570 = vmatprep.mubr.msk.bf16.mxu1 %vm5415_vm3, %v5414_v17 }
 0xa01   : > { %v1528_v2 = vpack.c.bf16 %v1525_v0, %v1524_v63  ;;  %4580 = vmatprep.subr.bf16.mxu1 %v5414_v17 }
 0xa03   : > { %4553 = vmatmul.mubr.msk.bf16.vlgmr.msra.gmra.mxu0 %vm991_vm4, %v1528_v2 }
 0xa04   : > { %4563 = vmatpush3.bf16.xpose.msra.mxu0 %v1632_v3  ;;  %4564 = vmatprep.mubr.msk.bf16.mxu0 %vm5415_vm3, %v5414_v17 }
 0xa05   : > { %4574 = vmatprep.subr.bf16.mxu0 %v5414_v17 }
 0xa07   : > { %4571 = vmatmul.mubr.msk.bf16.vlgmr.msra.gmra.mxu1 %vm665_vm1, %v1676_v4 }
 0xa08   : > { %4582 = vmatprep.mubr.msk.bf16.mxu1 %vm5415_vm3, %v5414_v17 }
 0xa0b   : > { %4565 = vmatmul.mubr.msk.bf16.vlgmr.msra.gmra.mxu0 %vm665_vm1, %v1625_v5 }
 0xa0c   : > { %4576 = vmatprep.mubr.msk.bf16.mxu0 %vm5415_vm3, %v5414_v17 }
 0xabf   : > { %v5875_v6 = vpop.f32.mrf.mxu1 }
 0xac1   : > { %v4560_v7 = vpop.f32.mrf.mxu1 }
 0xac3   : > { %v1570_v8 = vpop.f32.mrf.mxu0  ;;  %v5877_v9 = vpop.f32.mrf.mxu1 }
 0xac4   : > { %v4890_v10 = vpack.i.bf16 %v5877_v9, %v5875_v6 }
 0xac5   : > { %v4554_v11 = vpop.f32.mrf.mxu0  ;;  %v4561_v13 = vpop.f32.mrf.mxu1 }
 0xac7   : > { %v1573_v14 = vpop.f32.mrf.mxu0  ;;  %v1719_v18 = vpop.f32.mrf.mxu1 }
 0xac8   : > { %v4885_v16 = vpack.i.bf16 %v1573_v14, %v1570_v8  ;;  %v1728_v27 = vmul.f32 0.35355338, %v1719_v18  ;;  %v4937_v14 = vld [vmem:[%s6425_s7 + $0x8] sm:$0xff]  }
 0xac9   : > { %v4555_v20 = vpop.f32.mrf.mxu0  ;;  %v4572_v21 = vpop.f32.mrf.mxu1 }
 0xaca   : > { %v1736_v37 = vsel %vm991_vm4, %v1728_v27, -inf }
 0xacb   : > { %v1668_v23 = vpop.f32.mrf.mxu0  ;;  %v1722_v25 = vpop.f32.mrf.mxu1 }
 0xacc   : > { %v1726_v24 = vmul.f32 0.35355338, %v1668_v23  ;;  %v1729_v35 = vmul.f32 0.35355338, %v1722_v25 }
 0xacd   : > { %v4566_v26 = vpop.f32.mrf.mxu0  ;;  %v4573_v29 = vpop.f32.mrf.mxu1 }
 0xace   : > { %v1730_v31 = vsel %vm991_vm4, %v1726_v24, -inf  ;;  %v1739_v41 = vsel %vm991_vm4, %v1729_v35, -inf }
 0xacf   : > { %1731 = vmax.xlane.f32.xlu0 %v1730_v31  ;;  %v1671_v32 = vpop.f32.mrf.mxu0 }
 0xad0   : > { %v1727_v33 = vmul.f32 0.35355338, %v1671_v32 }
 0xad1   : > { %v4567_v34 = vpop.f32.mrf.mxu0 }
 0xad2   : > { %v1733_v40 = vsel %vm991_vm4, %v1727_v33, -inf }
 0xad3   : > { %1737 = vmax.xlane.f32.xlu0 %v1736_v37  ;;  %1734 = vmax.xlane.f32.xlu1 %v1733_v40 }
 0xad7   : > { %1740 = vmax.xlane.f32.xlu0 %v1739_v41 }
 0xb58   : > { %v1732_v43 = vpop.xlane.xlu0 %1731 }
 0xb59   : > { %v1742_v44 = vsub.f32 %v1726_v24, %v1732_v43 }
 0xb5b   : > { %v1746_v48 = vmul.f32 1.442695, %v1742_v44 }
 0xb5c   : > { %v1738_v45 = vpop.xlane.xlu0 %1737  ;;  %v1735_v46 = vpop.xlane.xlu1 %1734 }
 0xb5d   : > { %v1744_v47 = vsub.f32 %v1728_v27, %v1738_v45  ;;  %v1743_v54 = vsub.f32 %v1727_v33, %v1735_v46 }
 0xb5f   : > { %v1750_v50 = vmul.f32 1.442695, %v1744_v47  ;;  %v1748_v59 = vmul.f32 1.442695, %v1743_v54 }
 0xb60   : > { %v1741_v55 = vpop.xlane.xlu0 %1740 }
 0xb61   : > { %5009 = vpow2.f32 %v1750_v50  ;;  %v1745_v58 = vsub.f32 %v1729_v35, %v1741_v55 }
 0xb62   : > { %5011 = vpow2.f32 %v1746_v48 }
 0xb63   : > { %v1752_v60 = vmul.f32 1.442695, %v1745_v58 }
 0xb65   : > { %5013 = vpow2.f32 %v1752_v60 }
 0xb66   : > { %5015 = vpow2.f32 %v1748_v59 }
 0xb6e   : > { %v5010_v61 = vpop.eup %5009 }
 0xb6f   : > { %v1760_v62 = vsel %vm991_vm4, %v5010_v61, 0.0  ;;  %v5012_v63 = vpop.eup %5011 }
 0xb70   : > { %1761 = vadd.xlane.f32.xlu0 %v1760_v62  ;;  %v1754_v1 = vsel %vm991_vm4, %v5012_v63, 0.0 }
 0xb72   : > { %v5014_v0 = vpop.eup %5013 }
 0xb73   : > { %v1763_v2 = vsel %vm991_vm4, %v5014_v0, 0.0  ;;  %v5016_v3 = vpop.eup %5015 }
 0xb74   : > { %1755 = vadd.xlane.f32.xlu0 %v1754_v1  ;;  %1764 = vadd.xlane.f32.xlu1 %v1763_v2  ;;  %v1757_v4 = vsel %vm991_vm4, %v5016_v3, 0.0 }
 0xb78   : > { %1758 = vadd.xlane.f32.xlu1 %v1757_v4 }
 0xb89   : > { %1823 = vrot.lane.b32.xlu1 %v5721_v28, %s6449_s2 }
 0xb8a   : > { %1776 = vrot.lane.b32.xlu0 %v5723_v30, %s6449_s2  ;;  %s5331_s2 = sshll.u32 %s5430_s4, 4  ;;  %s5332_s2 = int_to_ptr.vmem [resolvable:$false] %s5331_s2 }
 0xb8d   : > { %4876 = vrot.lane.b32.xlu1 %v4875_v57, %s6447_s30 }
 0xb8e   : > { %4886 = vrot.lane.b32.xlu0 %v4885_v16, %s6445_s26  ;;  %v4938_v16 = vld [vmem:[%s6425_s7] sm:$0xff]  }
 0xb91   : > { %4881 = vrot.lane.b32.xlu1 %v4880_v53, %s6447_s30  ;;  %s5333_s30 = scalar_lea.vmem %s5332_s2, 64 }
 0xb95   : > { %4891 = vrot.lane.b32.xlu1 %v4890_v10, %s6445_s26 }
 0xbf9   : > { %v1762_v28 = vpop.xlane.xlu0 %1761 }
 0xbfa   : > { %5017 = vrcp.f32 %v1762_v28 }
 0xbfd   : > { %v1756_v5 = vpop.xlane.xlu0 %1755  ;;  %v1765_v30 = vpop.xlane.xlu1 %1764 }
 0xbfe   : > { %5019 = vrcp.f32 %v1765_v30  ;;  %v4289_v30 = vld [vmem:[#allocation11] ss:$0 sm:$0xff] }
 0xbff   : > { %5021 = vrcp.f32 %v1756_v5 }
 0xc01   : > { %v1777_v6 = vpop.permute.xlu0 %1776  ;;  %v1759_v7 = vpop.xlane.xlu1 %1758 }
 0xc02   : > { %5023 = vrcp.f32 %v1759_v7  ;;  %4575 = vmatpush3.bf16.msra.mxu0 %v1777_v6 }
 0xc03   : > { %4586 = vmatprep.subr.bf16.mxu0 %v4937_v14 }
 0xc05   : > { %v1824_v51 = vpop.permute.xlu1 %1823  ;;  %v4887_v40 = vpop.permute.xlu0 %4886 }
 0xc06   : > { %4581 = vmatpush3.bf16.msra.mxu1 %v1824_v51  ;;  %v4889_v55 = vunpack.i.h.bf16 %v4887_v40  ;;  %v4888_v58 = vunpack.i.l.bf16 %v4887_v40 }
 0xc07   : > { %v5018_v56 = vpop.eup %5017 }
 0xc08   : > { %v1772_v9 = vmul.f32 %v5018_v56, %v5010_v61 }
 0xc09   : > { %v4877_v32 = vpop.permute.xlu1 %4876 }
 0xc0a   : > { %v4879_v35 = vunpack.i.h.bf16 %v4877_v32  ;;  %v4878_v37 = vunpack.i.l.bf16 %v4877_v32 }
 0xc0b   : > { %v5020_v57 = vpop.eup %5019 }
 0xc0c   : > { %v5022_v8 = vpop.eup %5021  ;;  %v1773_v49 = vmul.f32 %v5020_v57, %v5014_v0  ;;  %v1919_v50 = vsel %vm665_vm1, %v5785_v42, %v4879_v35  ;;  %v1918_v54 = vsel %vm665_vm1, %v5781_v38, %v4878_v37 }
 0xc0d   : > { %v1770_v10 = vmul.f32 %v5022_v8, %v5012_v63  ;;  %v4882_v33 = vpop.permute.xlu1 %4881  ;;  %v1922_v2 = vsel %vm991_vm4, %v1918_v54, %v4888_v58 }
 0xc0e   : > { %v1775_v53 = vpack.c.bf16 %v1773_v49, %v1772_v9  ;;  %v4884_v41 = vunpack.i.h.bf16 %v4882_v33  ;;  %v4883_v43 = vunpack.i.l.bf16 %v4882_v33 }
 0xc0f   : > { %v5024_v52 = vpop.eup %5023 }
 0xc10   : > { %v1771_v11 = vmul.f32 %v5024_v52, %v5016_v3  ;;  %4583 = vmatmul.mubr.msk.bf16.vlgmr.msra.gmra.mxu1 %vm991_vm4, %v1775_v53  ;;  %v1921_v59 = vsel %vm665_vm1, %v5783_v39, %v4884_v41  ;;  %v1920_v60 = vsel %vm665_vm1, %v5779_v36, %v4883_v43  ;;  %v1923_v3 = vsel %vm991_vm4, %v1919_v50, %v4889_v55  ;;  %v4939_v41 = vld [vmem:[%s6429_s11 + $0x8] sm:$0xff]   ;;  %v4940_v43 = vld [vmem:[%s6429_s11] sm:$0xff]  }
 0xc11   : > { %v4892_v34 = vpop.permute.xlu1 %4891  ;;  %4594 = vmatprep.subr.bf16.mxu1 %v4939_v41 }
 0xc12   : > { %v1774_v13 = vpack.c.bf16 %v1771_v11, %v1770_v10  ;;  %v4894_v44 = vunpack.i.h.bf16 %v4892_v34  ;;  %v4893_v45 = vunpack.i.l.bf16 %v4892_v34  ;;  %4595 = vmatpush3.bf16.msra.mxu1 %v4939_v41 }
 0xc13   : > { %4596 = vmatprep.subr.bf16.mxu1 %v4940_v43 }
 0xc14   : > { %4577 = vmatmul.mubr.msk.bf16.vlgmr.msra.gmra.mxu0 %vm991_vm4, %v1774_v13  ;;  %v1924_v62 = vsel %vm991_vm4, %v1920_v60, %v4893_v45  ;;  %v1925_v63 = vsel %vm991_vm4, %v1921_v59, %v4894_v44 }
 0xc15   : > { %4587 = vmatpush3.bf16.msra.mxu0 %v4937_v14 }
 0xc16   : > { %4588 = vmatprep.subr.bf16.mxu0 %v4938_v16  ;;  %4597 = vmatpush3.bf16.msra.mxu1 %v4940_v43 }
 0xc19   : > { %4589 = vmatpush3.bf16.msra.mxu0 %v4938_v16 }
 0xcd0   : > { %v1863_v18 = vpop.f32.mrf.mxu1 }
 0xcd2   : > { %v4584_v20 = vpop.f32.mrf.mxu1 }
 0xcd4   : > { %v1816_v21 = vpop.f32.mrf.mxu0  ;;  %v1866_v23 = vpop.f32.mrf.mxu1 }
 0xcd5   : > { %v4900_v24 = vpack.i.bf16 %v1866_v23, %v1863_v18 }
 0xcd6   : > { %v4578_v25 = vpop.f32.mrf.mxu0  ;;  %v4585_v26 = vpop.f32.mrf.mxu1 }
 0xcd7   : > { %4901 = vrot.lane.b32.xlu1 %v4900_v24, %s6453_s19 }
 0xcd8   : > { %v1819_v27 = vpop.f32.mrf.mxu0 }
 0xcd9   : > { %v4895_v29 = vpack.i.bf16 %v1819_v27, %v1816_v21 }
 0xcda   : > { %v4579_v31 = vpop.f32.mrf.mxu0 }
 0xcdb   : > { %4896 = vrot.lane.b32.xlu0 %v4895_v29, %s6453_s19  ;;  %s6490_s19 = smov 24  }
 0xd49   : > { %v4902_v46 = vpop.permute.xlu1 %4901 }
 0xd4a   : > { %v4904_v47 = vunpack.i.h.bf16 %v4902_v46  ;;  %v4903_v48 = vunpack.i.l.bf16 %v4902_v46 }
 0xd4c   : > { %v1929_v42 = vsel %vm1926_vm5, %v1924_v62, %v4903_v48  ;;  %v1930_v38 = vsel %vm1926_vm5, %v1925_v63, %v4904_v47 }
 0xd4d   : > { %v4897_v61 = vpop.permute.xlu0 %4896  ;;  %v1932_v28 = vpack.c.bf16 %v1930_v38, %v1929_v42 }
 0xd4e   : > { %v4899_v0 = vunpack.i.h.bf16 %v4897_v61  ;;  %v4898_v1 = vunpack.i.l.bf16 %v4897_v61 }
 0xd50   : > { %v1928_v39 = vsel %vm1926_vm5, %v1923_v3, %v4899_v0  ;;  %v1927_v4 = vsel %vm1926_vm5, %v1922_v2, %v4898_v1  ;;  %v4294_v0 = vld [vmem:[#allocation13] ss:$0 sm:$0xff] }
 0xd51   : > { %v1931_v36 = vpack.c.bf16 %v1928_v39, %v1927_v4  ;;  %v4295_v39 = vld [vmem:[%s6428_s10] ss:$0 sm:$0xff] }
 0xd53   : > { %4590 = vmatprep.mubr.msk.bf16.mxu0 %vm731_vm2, %v1931_v36 }
 0xd54   : > { %4591 = vmatmul.mubr.msk.bf16.vlgmr.msra.gmra.mxu0 %vm731_vm2, %v1932_v28 }
 0xe14   : > { %v4592_v5 = vpop.f32.mrf.mxu0 }
 0xe15   : > { %v2005_v7 = vadd.f32 %v4592_v5, %v4289_v30 }
 0xe16   : > { %v1996_v6 = vpop.f32.mrf.mxu0 }
 0xe17   : > { %v1997_v51 = vadd.f32 %v4289_v30, %v1996_v6  ;;  %v5935_v9 = vadd.f32 %v2005_v7, %v5683_v12 }
 0xe18   : > { %v4593_v56 = vpop.f32.mrf.mxu0 }
 0xe19   : > { %v5932_v57 = vadd.f32 %v1997_v51, %v5685_v15  ;;  %v2008_v49 = vadd.f32 %v4593_v56, %v4289_v30  ;;  %v2023_v13 = vsel %vm731_vm2, %v5935_v9, 0.0 }
 0xe1a   : > { %v1999_v8 = vpop.f32.mrf.mxu0 }
 0xe1b   : > { %v2000_v52 = vadd.f32 %v4289_v30, %v1999_v8  ;;  %v2017_v53 = vsel %vm731_vm2, %v5932_v57, 0.0  ;;  %v5943_v11 = vadd.f32 %v2008_v49, %v5689_v19 }
 0xe1c   : > { %2018 = vadd.xlane.f32.xlu0 %v2017_v53  ;;  %v4942_v53 = vld [vmem:[%s6431_s13] sm:$0xff]  }
 0xe1d   : > { %v5940_v10 = vadd.f32 %v2000_v52, %v5693_v22  ;;  %v2026_v12 = vsel %vm731_vm2, %v5943_v11, 0.0  ;;  %v4941_v52 = vld [vmem:[%s6431_s13 + $0x8] sm:$0xff]  }
 0xe1e   : > { %4602 = vmatprep.subr.bf16.mxu0 %v4941_v52 }
 0xe1f   : > { %v2020_v15 = vsel %vm731_vm2, %v5940_v10, 0.0  ;;  %4603 = vmatpush3.bf16.msra.mxu0 %v4941_v52 }
 0xe20   : > { %2021 = vadd.xlane.f32.xlu1 %v2020_v15  ;;  %2024 = vadd.xlane.f32.xlu0 %v2023_v13  ;;  %v4296_v15 = vld [vmem:[%s6430_s12] ss:$0 sm:$0xff] }
 0xe21   : > { %4604 = vmatprep.subr.bf16.mxu0 %v4942_v53 }
 0xe23   : > { %4605 = vmatpush3.bf16.msra.mxu0 %v4942_v53 }
 0xe24   : > { %2027 = vadd.xlane.f32.xlu0 %v2026_v12  ;;  %4618 = vmatprep.subr.bf16.mxu0 %v5414_v17 }
 0xea5   : > { %v2019_v14 = vpop.xlane.xlu0 %2018 }
 0xea6   : > { %v2029_v16 = vmul.f32 0.03125, %v2019_v14 }
 0xea8   : > { %v2033_v22 = vsub.f32 %v5932_v57, %v2029_v16 }
 0xea9   : > { %v2022_v18 = vpop.xlane.xlu1 %2021  ;;  %v2025_v20 = vpop.xlane.xlu0 %2024 }
 0xeaa   : > { %v2030_v19 = vmul.f32 0.03125, %v2022_v18  ;;  %v2031_v21 = vmul.f32 0.03125, %v2025_v20  ;;  %v2037_v23 = vmul.f32 %v2033_v22, %v2033_v22 }
 0xeac   : > { %v2034_v24 = vsub.f32 %v5940_v10, %v2030_v19  ;;  %v2035_v25 = vsub.f32 %v5935_v9, %v2031_v21  ;;  %v2041_v26 = vsel %vm731_vm2, %v2037_v23, 0.0 }
 0xead   : > { %2042 = vadd.xlane.f32.xlu0 %v2041_v26  ;;  %v2028_v27 = vpop.xlane.xlu0 %2027 }
 0xeae   : > { %v2032_v29 = vmul.f32 0.03125, %v2028_v27  ;;  %v2038_v31 = vmul.f32 %v2034_v24, %v2034_v24  ;;  %v2039_v32 = vmul.f32 %v2035_v25, %v2035_v25 }
 0xeb0   : > { %v2036_v33 = vsub.f32 %v5943_v11, %v2032_v29  ;;  %v2044_v34 = vsel %vm731_vm2, %v2038_v31, 0.0  ;;  %v2047_v35 = vsel %vm731_vm2, %v2039_v32, 0.0 }
 0xeb1   : > { %2045 = vadd.xlane.f32.xlu1 %v2044_v34  ;;  %2048 = vadd.xlane.f32.xlu0 %v2047_v35 }
 0xeb2   : > { %v2040_v37 = vmul.f32 %v2036_v33, %v2036_v33 }
 0xeb4   : > { %v2050_v40 = vsel %vm731_vm2, %v2040_v37, 0.0 }
 0xeb5   : > { %2051 = vadd.xlane.f32.xlu1 %v2050_v40 }
 0xf36   : > { %v2043_v44 = vpop.xlane.xlu0 %2042 }
 0xf37   : > { %v2053_v45 = vmul.f32 0.03125, %v2043_v44 }
 0xf39   : > { %v2057_v46 = vadd.f32 1e-05, %v2053_v45 }
 0xf3a   : > { %v2046_v47 = vpop.xlane.xlu1 %2045  ;;  %v2049_v48 = vpop.xlane.xlu0 %2048 }
 0xf3b   : > { %5025 = vrsqrt.f32 %v2057_v46  ;;  %v2054_v50 = vmul.f32 0.03125, %v2046_v47  ;;  %v2055_v54 = vmul.f32 0.03125, %v2049_v48 }
 0xf3d   : > { %v2058_v55 = vadd.f32 1e-05, %v2054_v50  ;;  %v2059_v58 = vadd.f32 1e-05, %v2055_v54 }
 0xf3e   : > { %v2052_v59 = vpop.xlane.xlu1 %2051 }
 0xf3f   : > { %5027 = vrsqrt.f32 %v2058_v55  ;;  %v2056_v60 = vmul.f32 0.03125, %v2052_v59 }
 0xf40   : > { %5029 = vrsqrt.f32 %v2059_v58 }
 0xf41   : > { %v2060_v61 = vadd.f32 1e-05, %v2056_v60 }
 0xf43   : > { %5031 = vrsqrt.f32 %v2060_v61 }
 0xf48   : > { %v5026_v62 = vpop.eup %5025 }
 0xf49   : > { %v2065_v63 = vmul.f32 %v5026_v62, %v2033_v22 }
 0xf4b   : > { %v2075_v2 = vmul.f32 %v4294_v0, %v2065_v63 }
 0xf4c   : > { %v5028_v1 = vpop.eup %5027 }
 0xf4d   : > { %v5030_v42 = vpop.eup %5029  ;;  %v2066_v38 = vmul.f32 %v5028_v1, %v2034_v24  ;;  %v2085_v5 = vadd.f32 %v4295_v39, %v2075_v2 }
 0xf4e   : > { %v2067_v3 = vmul.f32 %v5030_v42, %v2035_v25 }
 0xf4f   : > { %v2076_v4 = vmul.f32 %v4294_v0, %v2066_v38 }
 0xf50   : > { %v5032_v36 = vpop.eup %5031  ;;  %v2077_v6 = vmul.f32 %v4294_v0, %v2067_v3 }
 0xf51   : > { %v2068_v28 = vmul.f32 %v5032_v36, %v2036_v33  ;;  %v2086_v30 = vadd.f32 %v4295_v39, %v2076_v4 }
 0xf52   : > { %v2087_v56 = vadd.f32 %v4295_v39, %v2077_v6 }
 0xf53   : > { %v2089_v7 = vpack.c.bf16 %v2086_v30, %v2085_v5  ;;  %v2078_v51 = vmul.f32 %v4294_v0, %v2068_v28 }
 0xf55   : > { %4598 = vmatprep.mubr.msk.bf16.mxu1 %vm731_vm2, %v2089_v7  ;;  %v2088_v8 = vadd.f32 %v4295_v39, %v2078_v51 }
 0xf57   : > { %v2090_v49 = vpack.c.bf16 %v2088_v8, %v2087_v56 }
 0xf59   : > { %4599 = vmatmul.mubr.msk.bf16.vlgmr.msra.gmra.mxu1 %vm731_vm2, %v2090_v49 }
0x1019   : > { %v4600_v13 = vpop.f32.mrf.mxu1 }
0x101a   : > { %v5980_v12 = vadd.f32 %v4600_v13, %v4296_v15 }
0x101b   : > { %v2154_v14 = vpop.f32.mrf.mxu1 }
0x101c   : > { %v5983_v16 = vmul.f32 0.70710677, %v5980_v12  ;;  %v5985_v22 = vadd.f32 %v4296_v15, %v2154_v14 }
0x101d   : > { %v4601_v18 = vpop.f32.mrf.mxu1 }
0x101e   : > { %v2179_v20 = vand.u32 2147483647, %v5983_v16  ;;  %v5989_v19 = vmul.f32 0.70710677, %v5985_v22  ;;  %v5991_v21 = vadd.f32 %v4601_v18, %v4296_v15  ;;  %vm2259_vm7 = vcmp.ge.f32.partialorder %v5983_v16, 0.0 }
0x101f   : > { %v2157_v23 = vpop.f32.mrf.mxu1 }
0x1020   : > { %v2183_v24 = vmul.f32 0.3275911, %v2179_v20  ;;  %v2177_v25 = vand.u32 2147483647, %v5989_v19  ;;  %v5995_v26 = vmul.f32 0.70710677, %v5991_v21  ;;  %v5997_v27 = vadd.f32 %v4296_v15, %v2157_v23 }
0x1021   : > { %v2235_v44 = vsub.f32 0.0, %v2179_v20  ;;  %vm2257_vm6 = vcmp.ge.f32.partialorder %v5989_v19, 0.0  ;;  %v2169_v19 = vmul.f32 0.5, %v5985_v22  ;;  %v4301_v22 = vld [vmem:[%s6432_s14] ss:$0 sm:$0xff] }
0x1022   : > { %v2187_v29 = vadd.f32 1.0, %v2183_v24  ;;  %v2181_v31 = vmul.f32 0.3275911, %v2177_v25  ;;  %v2180_v32 = vand.u32 2147483647, %v5995_v26  ;;  %v2233_v45 = vsub.f32 0.0, %v2177_v25 }
0x1023   : > { %v6001_v33 = vmul.f32 0.70710677, %v5997_v27  ;;  %v2239_v46 = vmul.f32 %v2235_v44, %v2179_v20  ;;  %vm2260_vm8 = vcmp.ge.f32.partialorder %v5995_v26, 0.0 }
0x1024   : > { %5033 = vrcp.f32 %v2187_v29  ;;  %v2185_v34 = vadd.f32 1.0, %v2181_v31  ;;  %v2184_v35 = vmul.f32 0.3275911, %v2180_v32  ;;  %v2236_v47 = vsub.f32 0.0, %v2180_v32 }
0x1025   : > { %v2178_v37 = vand.u32 2147483647, %v6001_v33  ;;  %v2237_v50 = vmul.f32 %v2233_v45, %v2177_v25  ;;  %v2245_v55 = vmul.f32 1.442695, %v2239_v46  ;;  %vm2258_vm9 = vcmp.ge.f32.partialorder %v6001_v33, 0.0 }
0x1026   : > { %5035 = vrcp.f32 %v2185_v34  ;;  %v2188_v40 = vadd.f32 1.0, %v2184_v35  ;;  %v2240_v59 = vmul.f32 %v2236_v47, %v2180_v32 }
0x1027   : > { %v2182_v41 = vmul.f32 0.3275911, %v2178_v37  ;;  %v2234_v58 = vsub.f32 0.0, %v2178_v37  ;;  %v2241_v63 = vmul.f32 1.442695, %v2237_v50 }
0x1028   : > { %5037 = vrcp.f32 %v2188_v40  ;;  %v2247_v3 = vmul.f32 1.442695, %v2240_v59 }
0x1029   : > { %v2186_v43 = vadd.f32 1.0, %v2182_v41  ;;  %v2238_v42 = vmul.f32 %v2234_v58, %v2178_v37 }
0x102b   : > { %5039 = vrcp.f32 %v2186_v43  ;;  %v2243_v6 = vmul.f32 1.442695, %v2238_v42 }
0x102c   : > { %5041 = vpow2.f32 %v2245_v55 }
0x102d   : > { %5043 = vpow2.f32 %v2241_v63 }
0x102e   : > { %5045 = vpow2.f32 %v2247_v3 }
0x102f   : > { %5047 = vpow2.f32 %v2243_v6  ;;  %v2171_v6 = vmul.f32 0.5, %v5980_v12 }
0x1031   : > { %v5034_v48 = vpop.eup %5033 }
0x1032   : > { %v2199_v54 = vmul.f32 1.0614054, %v5034_v48 }
0x1033   : > { %v5036_v60 = vpop.eup %5035 }
0x1034   : > { %v2203_v61 = vadd.f32 -1.4531521, %v2199_v54  ;;  %v2197_v62 = vmul.f32 1.0614054, %v5036_v60 }
0x1035   : > { %v5038_v0 = vpop.eup %5037 }
0x1036   : > { %v2207_v1 = vmul.f32 %v5034_v48, %v2203_v61  ;;  %v2201_v38 = vadd.f32 -1.4531521, %v2197_v62  ;;  %v2200_v2 = vmul.f32 1.0614054, %v5038_v0 }
0x1038   : > { %v2211_v39 = vadd.f32 1.4214138, %v2207_v1  ;;  %v5040_v4 = vpop.eup %5039  ;;  %v2205_v36 = vmul.f32 %v5036_v60, %v2201_v38  ;;  %v2204_v28 = vadd.f32 -1.4531521, %v2200_v2 }
0x1039   : > { %v2198_v30 = vmul.f32 1.0614054, %v5040_v4  ;;  %v5042_v31 = vpop.eup %5041 }
0x103a   : > { %v2215_v5 = vmul.f32 %v5034_v48, %v2211_v39  ;;  %v2209_v7 = vadd.f32 1.4214138, %v2205_v36  ;;  %v2208_v51 = vmul.f32 %v5038_v0, %v2204_v28  ;;  %v5044_v43 = vpop.eup %5043  ;;  %v2172_v28 = vmul.f32 0.5, %v5991_v21 }
0x103b   : > { %v2202_v8 = vadd.f32 -1.4531521, %v2198_v30  ;;  %v5046_v50 = vpop.eup %5045  ;;  %v2170_v30 = vmul.f32 0.5, %v5997_v27 }
0x103c   : > { %v2219_v56 = vadd.f32 -0.28449672, %v2215_v5  ;;  %v2213_v49 = vmul.f32 %v5036_v60, %v2209_v7  ;;  %v2212_v52 = vadd.f32 1.4214138, %v2208_v51  ;;  %v5048_v61 = vpop.eup %5047 }
0x103d   : > { %v2206_v15 = vmul.f32 %v5040_v4, %v2202_v8 }
0x103e   : > { %v2223_v53 = vmul.f32 %v5034_v48, %v2219_v56  ;;  %v2217_v13 = vadd.f32 -0.28449672, %v2213_v49  ;;  %v2216_v14 = vmul.f32 %v5038_v0, %v2212_v52 }
0x103f   : > { %v2210_v20 = vadd.f32 1.4214138, %v2206_v15 }
0x1040   : > { %v2227_v18 = vadd.f32 0.2548296, %v2223_v53  ;;  %v2221_v23 = vmul.f32 %v5036_v60, %v2217_v13  ;;  %v2220_v24 = vadd.f32 -0.28449672, %v2216_v14 }
0x1041   : > { %v2214_v29 = vmul.f32 %v5040_v4, %v2210_v20 }
0x1042   : > { %v2231_v25 = vmul.f32 %v5034_v48, %v2227_v18  ;;  %v2225_v32 = vadd.f32 0.2548296, %v2221_v23  ;;  %v2224_v34 = vmul.f32 %v5038_v0, %v2220_v24 }
0x1043   : > { %v2218_v37 = vadd.f32 -0.28449672, %v2214_v29 }
0x1044   : > { %v2251_v35 = vmul.f32 %v5042_v31, %v2231_v25  ;;  %v2229_v40 = vmul.f32 %v5036_v60, %v2225_v32  ;;  %v2228_v41 = vadd.f32 0.2548296, %v2224_v34 }
0x1045   : > { %v2222_v44 = vmul.f32 %v5040_v4, %v2218_v37 }
0x1046   : > { %v2255_v45 = vsub.f32 1.0, %v2251_v35  ;;  %v2249_v46 = vmul.f32 %v5044_v43, %v2229_v40  ;;  %v2232_v47 = vmul.f32 %v5038_v0, %v2228_v41 }
0x1047   : > { %v2226_v54 = vadd.f32 0.2548296, %v2222_v44 }
0x1048   : > { %v2253_v55 = vsub.f32 1.0, %v2249_v46  ;;  %v2252_v58 = vmul.f32 %v5046_v50, %v2232_v47  ;;  %v2263_v48 = vsub.f32 0.0, %v2255_v45 }
0x1049   : > { %v2230_v59 = vmul.f32 %v5040_v4, %v2226_v54 }
0x104a   : > { %v2261_v62 = vsub.f32 0.0, %v2253_v55  ;;  %v2256_v63 = vsub.f32 1.0, %v2252_v58  ;;  %v2267_v0 = vsel %vm2259_vm7, %v2255_v45, %v2263_v48  ;;  %v4944_v48 = vld [vmem:[%s6423_s5 + $0x10] sm:$0xff]  }
0x104b   : > { %v2250_v1 = vmul.f32 %v5048_v61, %v2230_v59  ;;  %v2271_v4 = vadd.f32 1.0, %v2267_v0  ;;  %v4943_v61 = vld [vmem:[%s6423_s5 + $0x18] sm:$0xff]  }
0x104c   : > { %v2264_v42 = vsub.f32 0.0, %v2256_v63  ;;  %v2265_v60 = vsel %vm2257_vm6, %v2253_v55, %v2261_v62  ;;  %4610 = vmatprep.subr.bf16.mxu1 %v4943_v61 }
0x104d   : > { %v2254_v38 = vsub.f32 1.0, %v2250_v1  ;;  %v2269_v36 = vadd.f32 1.0, %v2265_v60  ;;  %v2275_v56 = vmul.f32 %v2271_v4, %v2171_v6  ;;  %4611 = vmatpush3.bf16.msra.mxu1 %v4943_v61 }
0x104e   : > { %v2268_v2 = vsel %vm2260_vm8, %v2256_v63, %v2264_v42  ;;  %4612 = vmatprep.subr.bf16.mxu1 %v4944_v48 }
0x104f   : > { %v2272_v3 = vadd.f32 1.0, %v2268_v2  ;;  %v2262_v39 = vsub.f32 0.0, %v2254_v38  ;;  %v2273_v7 = vmul.f32 %v2269_v36, %v2169_v19  ;;  %v4306_v19 = vld [vmem:[#allocation7 + $0x1] ss:$0 sm:$0xff] }
0x1051   : > { %v2266_v5 = vsel %vm2258_vm9, %v2254_v38, %v2262_v39  ;;  %v2276_v26 = vmul.f32 %v2272_v3, %v2172_v28  ;;  %4613 = vmatpush3.bf16.msra.mxu1 %v4944_v48 }
0x1052   : > { %v2270_v16 = vadd.f32 1.0, %v2266_v5  ;;  %4624 = vmatprep.subr.bf16.mxu1 %v5414_v17 }
0x1053   : > { %v2278_v49 = vpack.c.bf16 %v2276_v26, %v2275_v56 }
0x1054   : > { %v2274_v51 = vmul.f32 %v2270_v16, %v2170_v30 }
0x1056   : > { %v2277_v8 = vpack.c.bf16 %v2274_v51, %v2273_v7  ;;  %v4307_v51 = vld [vmem:[#allocation8 + $0x1] ss:$0 sm:$0xff] }
0x1058   : > { %4606 = vmatprep.mubr.msk.bf16.mxu0 %vm731_vm2, %v2277_v8 }
0x1059   : > { %4607 = vmatmul.mubr.msk.bf16.vlgmr.msra.gmra.mxu0 %vm731_vm2, %v2278_v49 }
0x105a   : > { %4620 = vmatprep.mubr.msk.bf16.mxu0 %vm5415_vm3, %v5414_v17 }
0x1119   : > { %v4608_v21 = vpop.f32.mrf.mxu0 }
0x111a   : > { %v2351_v12 = vadd.f32 %v4608_v21, %v4301_v22 }
0x111b   : > { %v2342_v27 = vpop.f32.mrf.mxu0 }
0x111c   : > { %v2343_v33 = vadd.f32 %v4301_v22, %v2342_v27  ;;  %v6023_v13 = vadd.f32 %v2351_v12, %v5935_v9 }
0x111d   : > { %v4609_v52 = vpop.f32.mrf.mxu0 }
0x111e   : > { %v6020_v53 = vadd.f32 %v2343_v33, %v5932_v57  ;;  %v2354_v14 = vadd.f32 %v4609_v52, %v4301_v22  ;;  %v2371_v25 = vsel %vm731_vm2, %v6023_v13, 0.0 }
0x111f   : > { %v2345_v15 = vpop.f32.mrf.mxu0 }
0x1120   : > { %v2346_v18 = vadd.f32 %v4301_v22, %v2345_v15  ;;  %v2365_v20 = vsel %vm731_vm2, %v6020_v53, 0.0  ;;  %v6031_v24 = vadd.f32 %v2354_v14, %v5943_v11 }
0x1121   : > { %2366 = vadd.xlane.f32.xlu0 %v2365_v20  ;;  %v4312_v20 = vld [vmem:[#allocation10 + $0x1] ss:$0 sm:$0xff] }
0x1122   : > { %v6028_v23 = vadd.f32 %v2346_v18, %v5940_v10  ;;  %v2374_v9 = vsel %vm731_vm2, %v6031_v24, 0.0 }
0x1124   : > { %v2368_v57 = vsel %vm731_vm2, %v6028_v23, 0.0 }
0x1125   : > { %2369 = vadd.xlane.f32.xlu1 %v2368_v57  ;;  %2372 = vadd.xlane.f32.xlu0 %v2371_v25 }
0x1129   : > { %2375 = vadd.xlane.f32.xlu1 %v2374_v9 }
0x11aa   : > { %v2367_v29 = vpop.xlane.xlu0 %2366 }
0x11ab   : > { %v2377_v31 = vmul.f32 0.03125, %v2367_v29 }
0x11ad   : > { %v2381_v10 = vsub.f32 %v6020_v53, %v2377_v31 }
0x11ae   : > { %v2370_v32 = vpop.xlane.xlu1 %2369  ;;  %v2373_v34 = vpop.xlane.xlu0 %2372 }
0x11af   : > { %v2378_v11 = vmul.f32 0.03125, %v2370_v32  ;;  %v2379_v35 = vmul.f32 0.03125, %v2373_v34  ;;  %v2385_v37 = vmul.f32 %v2381_v10, %v2381_v10 }
0x11b1   : > { %v2382_v40 = vsub.f32 %v6028_v23, %v2378_v11  ;;  %v2383_v41 = vsub.f32 %v6023_v13, %v2379_v35  ;;  %v2389_v43 = vsel %vm731_vm2, %v2385_v37, 0.0 }
0x11b2   : > { %v2376_v44 = vpop.xlane.xlu1 %2375  ;;  %2390 = vadd.xlane.f32.xlu0 %v2389_v43 }
0x11b3   : > { %v2380_v45 = vmul.f32 0.03125, %v2376_v44  ;;  %v2386_v46 = vmul.f32 %v2382_v40, %v2382_v40  ;;  %v2387_v47 = vmul.f32 %v2383_v41, %v2383_v41 }
0x11b5   : > { %v2384_v50 = vsub.f32 %v6031_v24, %v2380_v45  ;;  %v2392_v54 = vsel %vm731_vm2, %v2386_v46, 0.0  ;;  %v2395_v55 = vsel %vm731_vm2, %v2387_v47, 0.0 }
0x11b6   : > { %2393 = vadd.xlane.f32.xlu1 %v2392_v54  ;;  %2396 = vadd.xlane.f32.xlu0 %v2395_v55 }
0x11b7   : > { %v2388_v58 = vmul.f32 %v2384_v50, %v2384_v50 }
0x11b9   : > { %v2398_v59 = vsel %vm731_vm2, %v2388_v58, 0.0 }
0x11ba   : > { %2399 = vadd.xlane.f32.xlu1 %v2398_v59 }
0x123b   : > { %v2391_v62 = vpop.xlane.xlu0 %2390 }
0x123c   : > { %v2401_v63 = vmul.f32 0.03125, %v2391_v62 }
0x123e   : > { %v2405_v1 = vadd.f32 1e-05, %v2401_v63 }
0x123f   : > { %v2394_v42 = vpop.xlane.xlu1 %2393  ;;  %v2397_v60 = vpop.xlane.xlu0 %2396 }
0x1240   : > { %5049 = vrsqrt.f32 %v2405_v1  ;;  %v2402_v38 = vmul.f32 0.03125, %v2394_v42  ;;  %v2403_v0 = vmul.f32 0.03125, %v2397_v60 }
0x1242   : > { %v2406_v2 = vadd.f32 1e-05, %v2402_v38  ;;  %v2407_v3 = vadd.f32 1e-05, %v2403_v0 }
0x1243   : > { %v2400_v39 = vpop.xlane.xlu1 %2399 }
0x1244   : > { %5051 = vrsqrt.f32 %v2406_v2  ;;  %v2404_v36 = vmul.f32 0.03125, %v2400_v39 }
0x1245   : > { %5053 = vrsqrt.f32 %v2407_v3 }
0x1246   : > { %v2408_v4 = vadd.f32 1e-05, %v2404_v36 }
0x1248   : > { %5055 = vrsqrt.f32 %v2408_v4 }
0x124d   : > { %v5050_v28 = vpop.eup %5049 }
0x124e   : > { %v2413_v5 = vmul.f32 %v5050_v28, %v2381_v10 }
0x1250   : > { %v2423_v26 = vmul.f32 %v4306_v19, %v2413_v5 }
0x1251   : > { %v5052_v30 = vpop.eup %5051 }
0x1252   : > { %v5054_v16 = vpop.eup %5053  ;;  %v2414_v6 = vmul.f32 %v5052_v30, %v2382_v40  ;;  %v2433_v21 = vadd.f32 %v4307_v51, %v2423_v26 }
0x1253   : > { %v2415_v7 = vmul.f32 %v5054_v16, %v2383_v41 }
0x1254   : > { %v2424_v56 = vmul.f32 %v4306_v19, %v2414_v6 }
0x1255   : > { %v5056_v8 = vpop.eup %5055  ;;  %v2425_v27 = vmul.f32 %v4306_v19, %v2415_v7 }
0x1256   : > { %v2416_v49 = vmul.f32 %v5056_v8, %v2384_v50  ;;  %v2434_v22 = vadd.f32 %v4307_v51, %v2424_v56 }
0x1257   : > { %v2435_v52 = vadd.f32 %v4307_v51, %v2425_v27 }
0x1258   : > { %v2437_v12 = vpack.c.bf16 %v2434_v22, %v2433_v21  ;;  %v2426_v33 = vmul.f32 %v4306_v19, %v2416_v49 }
0x125a   : > { %4614 = vmatprep.mubr.msk.bf16.mxu1 %vm731_vm2, %v2437_v12  ;;  %v2436_v15 = vadd.f32 %v4307_v51, %v2426_v33 }
0x125c   : > { %v2438_v14 = vpack.c.bf16 %v2436_v15, %v2435_v52 }
0x125e   : > { %4615 = vmatmul.mubr.msk.bf16.vlgmr.msra.gmra.mxu1 %vm731_vm2, %v2438_v14 }
0x125f   : > { %4626 = vmatprep.mubr.msk.bf16.mxu1 %vm5415_vm3, %v5414_v17 }
0x131e   : > { %v4616_v18 = vpop.f32.mrf.mxu1 }
0x131f   : > { %v2513_v9 = vadd.f32 %v4616_v18, %v4312_v20 }
0x1320   : > { %v2504_v57 = vpop.f32.mrf.mxu1 }
0x1321   : > { %v2505_v10 = vadd.f32 %v4312_v20, %v2504_v57 }
0x1322   : > { %v4617_v25 = vpop.f32.mrf.mxu1 }
0x1323   : > { %v2516_v29 = vadd.f32 %v4617_v25, %v4312_v20 }
0x1324   : > { %v2507_v31 = vpop.f32.mrf.mxu1 }
0x1325   : > { %v6058_v32 = vpack.c.bf16 %v2516_v29, %v2513_v9  ;;  %v2508_v34 = vadd.f32 %v4312_v20, %v2507_v31 }
0x1327   : > { %v6060_v11 = vpack.c.bf16 %v2508_v34, %v2505_v10  ;;  %2572 = vrot.lane.b32.xlu1 %v6058_v32, %s5416_s24 }
0x1329   : > { %2522 = vrot.lane.b32.xlu0 %v6060_v11, %s5416_s24  ;;  %s6485_s24 = smov 72  }
0x1399   : > { %v2573_v35 = vpop.permute.xlu1 %2572 }
0x139a   : > { %v2578_v37 = vsel %vm665_vm1, %v2573_v35, 0 }
0x139b   : > { %4625 = vmatpush3.bf16.xpose.msra.mxu1 %v2578_v37  ;;  %v2523_v40 = vpop.permute.xlu0 %2522 }
0x139c   : > { %v2528_v41 = vsel %vm665_vm1, %v2523_v40, 0  ;;  %4636 = vmatprep.subr.bf16.mxu1 %v5414_v17 }
0x139d   : > { %4619 = vmatpush3.bf16.xpose.msra.mxu0 %v2528_v41 }
0x139e   : > { %4630 = vmatprep.subr.bf16.mxu0 %v5414_v17 }
0x13a2   : > { %4627 = vmatmul.mubr.msk.bf16.vlgmr.msra.gmra.mxu1 %vm665_vm1, %v6058_v32 }
0x13a3   : > { %4638 = vmatprep.mubr.msk.bf16.mxu1 %vm5415_vm3, %v5414_v17 }
0x13a4   : > { %4621 = vmatmul.mubr.msk.bf16.vlgmr.msra.gmra.mxu0 %vm665_vm1, %v6060_v11 }
0x13a5   : > { %4632 = vmatprep.mubr.msk.bf16.mxu0 %vm5415_vm3, %v5414_v17 }
0x1462   : > { %v2614_v43 = vpop.f32.mrf.mxu1 }
0x1463   : > { %v2623_v62 = vmul.f32 0.35355338, %v2614_v43 }
0x1464   : > { %v2564_v44 = vpop.f32.mrf.mxu0  ;;  %v4628_v45 = vpop.f32.mrf.mxu1 }
0x1465   : > { %v2621_v46 = vmul.f32 0.35355338, %v2564_v44  ;;  %v2631_v42 = vsel %vm991_vm4, %v2623_v62, -inf }
0x1466   : > { %v4622_v47 = vpop.f32.mrf.mxu0  ;;  %v2617_v50 = vpop.f32.mrf.mxu1 }
0x1467   : > { %v2624_v54 = vmul.f32 0.35355338, %v2617_v50  ;;  %v2625_v55 = vsel %vm991_vm4, %v2621_v46, -inf }
0x1468   : > { %v4629_v58 = vpop.f32.mrf.mxu1  ;;  %2626 = vmax.xlane.f32.xlu1 %v2625_v55  ;;  %v2567_v59 = vpop.f32.mrf.mxu0 }
0x1469   : > { %v2622_v61 = vmul.f32 0.35355338, %v2567_v59  ;;  %v2634_v63 = vsel %vm991_vm4, %v2624_v54, -inf }
0x146a   : > { %v4623_v48 = vpop.f32.mrf.mxu0 }
0x146b   : > { %v2628_v1 = vsel %vm991_vm4, %v2622_v61, -inf }
0x146c   : > { %2635 = vmax.xlane.f32.xlu1 %v2634_v63  ;;  %2629 = vmax.xlane.f32.xlu0 %v2628_v1 }
0x1470   : > { %2632 = vmax.xlane.f32.xlu0 %v2631_v42 }
0x147d   : > { %2718 = vrot.lane.b32.xlu1 %v6058_v32, %s5417_s27 }
0x1481   : > { %2767 = vrot.lane.b32.xlu1 %v6060_v11, %s5418_s18 }
0x14f1   : > { %v2627_v60 = vpop.xlane.xlu1 %2626 }
0x14f2   : > { %v2637_v39 = vsub.f32 %v2621_v46, %v2627_v60 }
0x14f4   : > { %v2641_v30 = vmul.f32 1.442695, %v2637_v39 }
0x14f5   : > { %v2636_v38 = vpop.xlane.xlu1 %2635  ;;  %v2630_v0 = vpop.xlane.xlu0 %2629 }
0x14f6   : > { %v2640_v2 = vsub.f32 %v2624_v54, %v2636_v38  ;;  %v2638_v3 = vsub.f32 %v2622_v61, %v2630_v0 }
0x14f8   : > { %v2647_v36 = vmul.f32 1.442695, %v2640_v2  ;;  %v2643_v4 = vmul.f32 1.442695, %v2638_v3 }
0x14f9   : > { %v2719_v28 = vpop.permute.xlu1 %2718  ;;  %v2633_v5 = vpop.xlane.xlu0 %2632 }
0x14fa   : > { %5057 = vpow2.f32 %v2647_v36  ;;  %v2639_v19 = vsub.f32 %v2623_v62, %v2633_v5  ;;  %4637 = vmatpush3.bf16.msra.mxu1 %v2719_v28 }
0x14fb   : > { %4648 = vmatprep.subr.bf16.mxu1 %v5414_v17  ;;  %5059 = vpow2.f32 %v2643_v4 }
0x14fc   : > { %v2645_v16 = vmul.f32 1.442695, %v2639_v19 }
0x14fd   : > { %v2768_v22 = vpop.permute.xlu1 %2767 }
0x14fe   : > { %5061 = vpow2.f32 %v2645_v16  ;;  %v2773_v40 = vsel %vm665_vm1, %v2768_v22, 0 }
0x14ff   : > { %5063 = vpow2.f32 %v2641_v30 }
0x1507   : > { %v5058_v6 = vpop.eup %5057 }
0x1508   : > { %v2658_v26 = vsel %vm991_vm4, %v5058_v6, 0.0  ;;  %v5060_v7 = vpop.eup %5059 }
0x1509   : > { %2659 = vadd.xlane.f32.xlu1 %v2658_v26  ;;  %v2652_v56 = vsel %vm991_vm4, %v5060_v7, 0.0 }
0x150b   : > { %v5062_v51 = vpop.eup %5061 }
0x150c   : > { %v2655_v8 = vsel %vm991_vm4, %v5062_v51, 0.0  ;;  %v5064_v49 = vpop.eup %5063 }
0x150d   : > { %2653 = vadd.xlane.f32.xlu1 %v2652_v56  ;;  %2656 = vadd.xlane.f32.xlu0 %v2655_v8  ;;  %v2649_v21 = vsel %vm991_vm4, %v5064_v49, 0.0 }
0x1511   : > { %2650 = vadd.xlane.f32.xlu0 %v2649_v21 }
0x151e   : > { %2818 = vrot.lane.b32.xlu1 %v6058_v32, %s5418_s18  ;;  %s6487_s18 = smov 40  }
0x1522   : > { %2816 = vrot.lane.b32.xlu1 %v6058_v32, %s5419_s23 }
0x1527   : > { %2671 = vrot.lane.b32.xlu0 %v6060_v11, %s5417_s27  ;;  %s6486_s27 = smov 104  }
0x152b   : > { %2765 = vrot.lane.b32.xlu0 %v6060_v11, %s5419_s23  ;;  %s6488_s23 = smov 8  }
0x1592   : > { %v2660_v27 = vpop.xlane.xlu1 %2659 }
0x1593   : > { %5065 = vrcp.f32 %v2660_v27 }
0x1596   : > { %v2654_v12 = vpop.xlane.xlu1 %2653  ;;  %v2657_v33 = vpop.xlane.xlu0 %2656 }
0x1597   : > { %5067 = vrcp.f32 %v2657_v33 }
0x1598   : > { %5069 = vrcp.f32 %v2654_v12 }
0x159a   : > { %v2651_v52 = vpop.xlane.xlu0 %2650  ;;  %v2819_v9 = vpop.permute.xlu1 %2818 }
0x159b   : > { %5071 = vrcp.f32 %v2651_v52  ;;  %v2824_v35 = vsel %vm665_vm1, %v2819_v9, 0 }
0x159e   : > { %v2672_v15 = vpop.permute.xlu0 %2671  ;;  %v2817_v41 = vpop.permute.xlu1 %2816 }
0x159f   : > { %4631 = vmatpush3.bf16.msra.mxu0 %v2672_v15 }
0x15a0   : > { %4642 = vmatprep.subr.bf16.mxu0 %v5414_v17  ;;  %v5066_v14 = vpop.eup %5065 }
0x15a1   : > { %v2668_v25 = vmul.f32 %v5066_v14, %v5058_v6 }
0x15a2   : > { %v2766_v43 = vpop.permute.xlu0 %2765 }
0x15a4   : > { %v5068_v18 = vpop.eup %5067 }
0x15a5   : > { %v5070_v20 = vpop.eup %5069  ;;  %v2667_v57 = vmul.f32 %v5068_v18, %v5062_v51 }
0x15a6   : > { %v2666_v34 = vmul.f32 %v5070_v20, %v5060_v7 }
0x15a7   : > { %v2670_v31 = vpack.c.bf16 %v2668_v25, %v2667_v57 }
0x15a8   : > { %v5072_v29 = vpop.eup %5071 }
0x15a9   : > { %v2665_v10 = vmul.f32 %v5072_v29, %v5064_v49  ;;  %4639 = vmatmul.mubr.msk.bf16.vlgmr.msra.gmra.mxu1 %vm991_vm4, %v2670_v31 }
0x15aa   : > { %4649 = vmatpush3.bf16.xpose.msra.mxu1 %v2824_v35  ;;  %4650 = vmatprep.mubr.msk.bf16.mxu1 %vm5415_vm3, %v5414_v17 }
0x15ab   : > { %v2669_v37 = vpack.c.bf16 %v2666_v34, %v2665_v10  ;;  %4660 = vmatprep.subr.bf16.mxu1 %v5414_v17 }
0x15ad   : > { %4633 = vmatmul.mubr.msk.bf16.vlgmr.msra.gmra.mxu0 %vm991_vm4, %v2669_v37 }
0x15ae   : > { %4643 = vmatpush3.bf16.xpose.msra.mxu0 %v2773_v40  ;;  %4644 = vmatprep.mubr.msk.bf16.mxu0 %vm5415_vm3, %v5414_v17 }
0x15af   : > { %4654 = vmatprep.subr.bf16.mxu0 %v5414_v17 }
0x15b1   : > { %4651 = vmatmul.mubr.msk.bf16.vlgmr.msra.gmra.mxu1 %vm665_vm1, %v2817_v41 }
0x15b2   : > { %4662 = vmatprep.mubr.msk.bf16.mxu1 %vm5415_vm3, %v5414_v17 }
0x15b5   : > { %4645 = vmatmul.mubr.msk.bf16.vlgmr.msra.gmra.mxu0 %vm665_vm1, %v2766_v43 }
0x15b6   : > { %4656 = vmatprep.mubr.msk.bf16.mxu0 %vm5415_vm3, %v5414_v17 }
0x1669   : > { %v6116_v44 = vpop.f32.mrf.mxu1 }
0x166b   : > { %v4640_v45 = vpop.f32.mrf.mxu1 }
0x166d   : > { %v6118_v46 = vpop.f32.mrf.mxu0  ;;  %v6120_v47 = vpop.f32.mrf.mxu1 }
0x166f   : > { %v4634_v50 = vpop.f32.mrf.mxu0  ;;  %v4641_v54 = vpop.f32.mrf.mxu1 }
0x1671   : > { %v6122_v55 = vpop.f32.mrf.mxu0  ;;  %v2860_v58 = vpop.f32.mrf.mxu1 }
0x1672   : > { %v2869_v42 = vmul.f32 0.35355338, %v2860_v58 }
0x1673   : > { %v4635_v59 = vpop.f32.mrf.mxu0  ;;  %v4652_v61 = vpop.f32.mrf.mxu1 }
0x1674   : > { %v2877_v36 = vsel %vm991_vm4, %v2869_v42, -inf }
0x1675   : > { %v2809_v48 = vpop.f32.mrf.mxu0  ;;  %v2863_v63 = vpop.f32.mrf.mxu1 }
0x1676   : > { %v2867_v62 = vmul.f32 0.35355338, %v2809_v48  ;;  %v2870_v39 = vmul.f32 0.35355338, %v2863_v63 }
0x1677   : > { %v4646_v1 = vpop.f32.mrf.mxu0  ;;  %v4653_v60 = vpop.f32.mrf.mxu1 }
0x1678   : > { %v2871_v38 = vsel %vm991_vm4, %v2867_v62, -inf  ;;  %v2880_v28 = vsel %vm991_vm4, %v2870_v39, -inf }
0x1679   : > { %2872 = vmax.xlane.f32.xlu0 %v2871_v38  ;;  %v2812_v0 = vpop.f32.mrf.mxu0 }
0x167a   : > { %v2868_v2 = vmul.f32 0.35355338, %v2812_v0 }
0x167b   : > { %v4647_v3 = vpop.f32.mrf.mxu0 }
0x167c   : > { %v2874_v4 = vsel %vm991_vm4, %v2868_v2, -inf }
0x167d   : > { %2878 = vmax.xlane.f32.xlu0 %v2877_v36  ;;  %2875 = vmax.xlane.f32.xlu1 %v2874_v4 }
0x1681   : > { %2881 = vmax.xlane.f32.xlu0 %v2880_v28 }
0x168e   : > { %2964 = vrot.lane.b32.xlu1 %v6058_v32, %s5420_s0 }
0x1692   : > { %3013 = vrot.lane.b32.xlu1 %v6060_v11, %s5421_s21 }
0x1702   : > { %v2873_v5 = vpop.xlane.xlu0 %2872 }
0x1703   : > { %v2883_v19 = vsub.f32 %v2867_v62, %v2873_v5 }
0x1705   : > { %v2887_v26 = vmul.f32 1.442695, %v2883_v19 }
0x1706   : > { %v2879_v30 = vpop.xlane.xlu0 %2878  ;;  %v2876_v16 = vpop.xlane.xlu1 %2875 }
0x1707   : > { %v2885_v6 = vsub.f32 %v2869_v42, %v2879_v30  ;;  %v2884_v51 = vsub.f32 %v2868_v2, %v2876_v16 }
0x1709   : > { %v2891_v7 = vmul.f32 1.442695, %v2885_v6  ;;  %v2889_v21 = vmul.f32 1.442695, %v2884_v51 }
0x170a   : > { %v2882_v56 = vpop.xlane.xlu0 %2881  ;;  %v2965_v8 = vpop.permute.xlu1 %2964 }
0x170b   : > { %5073 = vpow2.f32 %v2891_v7  ;;  %v2886_v49 = vsub.f32 %v2870_v39, %v2882_v56  ;;  %4661 = vmatpush3.bf16.msra.mxu1 %v2965_v8 }
0x170c   : > { %4672 = vmatprep.subr.bf16.mxu1 %v5414_v17  ;;  %5075 = vpow2.f32 %v2887_v26 }
0x170d   : > { %v2893_v22 = vmul.f32 1.442695, %v2886_v49 }
0x170e   : > { %v3014_v57 = vpop.permute.xlu1 %3013 }
0x170f   : > { %5077 = vpow2.f32 %v2893_v22  ;;  %v3019_v48 = vsel %vm665_vm1, %v3014_v57, 0 }
0x1710   : > { %5079 = vpow2.f32 %v2889_v21 }
0x1718   : > { %v5074_v27 = vpop.eup %5073 }
0x1719   : > { %v2901_v12 = vsel %vm991_vm4, %v5074_v27, 0.0  ;;  %v5076_v33 = vpop.eup %5075 }
0x171a   : > { %2902 = vadd.xlane.f32.xlu0 %v2901_v12  ;;  %v2895_v15 = vsel %vm991_vm4, %v5076_v33, 0.0 }
0x171c   : > { %v5078_v52 = vpop.eup %5077 }
0x171d   : > { %v2904_v14 = vsel %vm991_vm4, %v5078_v52, 0.0  ;;  %v5080_v18 = vpop.eup %5079 }
0x171e   : > { %2896 = vadd.xlane.f32.xlu0 %v2895_v15  ;;  %2905 = vadd.xlane.f32.xlu1 %v2904_v14  ;;  %v2898_v20 = vsel %vm991_vm4, %v5080_v18, 0.0 }
0x1722   : > { %2899 = vadd.xlane.f32.xlu1 %v2898_v20 }
0x1733   : > { %3064 = vrot.lane.b32.xlu1 %v6058_v32, %s5421_s21 }
0x1734   : > { %2917 = vrot.lane.b32.xlu0 %v6060_v11, %s5420_s0  ;;  %s6489_s0 = smov 16  }
0x1737   : > { %3062 = vrot.lane.b32.xlu1 %v6058_v32, %s5422_s29 }
0x1738   : > { %3011 = vrot.lane.b32.xlu0 %v6060_v11, %s5422_s29 }
0x17a3   : > { %v2903_v25 = vpop.xlane.xlu0 %2902 }
0x17a4   : > { %5081 = vrcp.f32 %v2903_v25 }
0x17a7   : > { %v2897_v9 = vpop.xlane.xlu0 %2896  ;;  %v2906_v29 = vpop.xlane.xlu1 %2905 }
0x17a8   : > { %5083 = vrcp.f32 %v2906_v29 }
0x17a9   : > { %5085 = vrcp.f32 %v2897_v9 }
0x17ab   : > { %v2918_v31 = vpop.permute.xlu0 %2917  ;;  %v2900_v10 = vpop.xlane.xlu1 %2899 }
0x17ac   : > { %5087 = vrcp.f32 %v2900_v10  ;;  %4655 = vmatpush3.bf16.msra.mxu0 %v2918_v31 }
0x17ad   : > { %4666 = vmatprep.subr.bf16.mxu0 %v5414_v17 }
0x17af   : > { %v3065_v43 = vpop.permute.xlu1 %3064  ;;  %v3012_v63 = vpop.permute.xlu0 %3011 }
0x17b0   : > { %v3070_v59 = vsel %vm665_vm1, %v3065_v43, 0 }
0x17b1   : > { %v5082_v34 = vpop.eup %5081 }
0x17b2   : > { %v2913_v40 = vmul.f32 %v5082_v34, %v5074_v27 }
0x17b3   : > { %v3063_v62 = vpop.permute.xlu1 %3062 }
0x17b5   : > { %v5084_v35 = vpop.eup %5083 }
0x17b6   : > { %v5086_v37 = vpop.eup %5085  ;;  %v2914_v41 = vmul.f32 %v5084_v35, %v5078_v52 }
0x17b7   : > { %v2911_v54 = vmul.f32 %v5086_v37, %v5076_v33 }
0x17b8   : > { %v2916_v50 = vpack.c.bf16 %v2914_v41, %v2913_v40 }
0x17b9   : > { %v5088_v45 = vpop.eup %5087 }
0x17ba   : > { %v2912_v58 = vmul.f32 %v5088_v45, %v5080_v18  ;;  %4663 = vmatmul.mubr.msk.bf16.vlgmr.msra.gmra.mxu1 %vm991_vm4, %v2916_v50 }
0x17bb   : > { %4673 = vmatpush3.bf16.xpose.msra.mxu1 %v3070_v59  ;;  %4674 = vmatprep.mubr.msk.bf16.mxu1 %vm5415_vm3, %v5414_v17 }
0x17bc   : > { %v2915_v61 = vpack.c.bf16 %v2912_v58, %v2911_v54  ;;  %4684 = vmatprep.subr.bf16.mxu1 %v5414_v17 }
0x17be   : > { %4657 = vmatmul.mubr.msk.bf16.vlgmr.msra.gmra.mxu0 %vm991_vm4, %v2915_v61 }
0x17bf   : > { %4667 = vmatpush3.bf16.xpose.msra.mxu0 %v3019_v48  ;;  %4668 = vmatprep.mubr.msk.bf16.mxu0 %vm5415_vm3, %v5414_v17 }
0x17c0   : > { %4678 = vmatprep.subr.bf16.mxu0 %v5414_v17 }
0x17c2   : > { %4675 = vmatmul.mubr.msk.bf16.vlgmr.msra.gmra.mxu1 %vm665_vm1, %v3063_v62 }
0x17c3   : > { %4686 = vmatprep.mubr.msk.bf16.mxu1 %vm5415_vm3, %v5414_v17 }
0x17c6   : > { %4669 = vmatmul.mubr.msk.bf16.vlgmr.msra.gmra.mxu0 %vm665_vm1, %v3012_v63 }
0x17c7   : > { %4680 = vmatprep.mubr.msk.bf16.mxu0 %vm5415_vm3, %v5414_v17 }
0x187a   : > { %v6162_v1 = vpop.f32.mrf.mxu1 }
0x187c   : > { %v4664_v42 = vpop.f32.mrf.mxu1 }
0x187e   : > { %v6164_v60 = vpop.f32.mrf.mxu0  ;;  %v6166_v38 = vpop.f32.mrf.mxu1 }
0x187f   : > { %v4910_v0 = vpack.i.bf16 %v6166_v38, %v6162_v1 }
0x1880   : > { %v4658_v2 = vpop.f32.mrf.mxu0  ;;  %v4665_v3 = vpop.f32.mrf.mxu1 }
0x1882   : > { %v6170_v39 = vpop.f32.mrf.mxu0  ;;  %v3106_v4 = vpop.f32.mrf.mxu1 }
0x1883   : > { %v4905_v36 = vpack.i.bf16 %v6170_v39, %v6164_v60  ;;  %v3115_v26 = vmul.f32 0.35355338, %v3106_v4 }
0x1884   : > { %v4659_v28 = vpop.f32.mrf.mxu0  ;;  %v4676_v5 = vpop.f32.mrf.mxu1 }
0x1885   : > { %v3123_v22 = vsel %vm991_vm4, %v3115_v26, -inf }
0x1886   : > { %v3055_v19 = vpop.f32.mrf.mxu0  ;;  %v3109_v16 = vpop.f32.mrf.mxu1 }
0x1887   : > { %v3113_v30 = vmul.f32 0.35355338, %v3055_v19  ;;  %v3116_v21 = vmul.f32 0.35355338, %v3109_v16 }
0x1888   : > { %v4670_v6 = vpop.f32.mrf.mxu0  ;;  %v4677_v7 = vpop.f32.mrf.mxu1 }
0x1889   : > { %v3117_v51 = vsel %vm991_vm4, %v3113_v30, -inf  ;;  %v3126_v12 = vsel %vm991_vm4, %v3116_v21, -inf }
0x188a   : > { %3118 = vmax.xlane.f32.xlu0 %v3117_v51  ;;  %v3058_v56 = vpop.f32.mrf.mxu0 }
0x188b   : > { %v3114_v8 = vmul.f32 0.35355338, %v3058_v56 }
0x188c   : > { %v4671_v49 = vpop.f32.mrf.mxu0 }
0x188d   : > { %v3120_v27 = vsel %vm991_vm4, %v3114_v8, -inf }
0x188e   : > { %3124 = vmax.xlane.f32.xlu0 %v3123_v22  ;;  %3121 = vmax.xlane.f32.xlu1 %v3120_v27 }
0x1892   : > { %3127 = vmax.xlane.f32.xlu0 %v3126_v12 }
0x189f   : > { %3210 = vrot.lane.b32.xlu1 %v6058_v32, %s5423_s20 }
0x18a3   : > { %3259 = vrot.lane.b32.xlu1 %v6060_v11, %s6485_s24 }
0x1913   : > { %v3119_v33 = vpop.xlane.xlu0 %3118 }
0x1914   : > { %v3129_v52 = vsub.f32 %v3113_v30, %v3119_v33 }
0x1916   : > { %v3133_v20 = vmul.f32 1.442695, %v3129_v52 }
0x1917   : > { %v3125_v15 = vpop.xlane.xlu0 %3124  ;;  %v3122_v14 = vpop.xlane.xlu1 %3121 }
0x1918   : > { %v3131_v18 = vsub.f32 %v3115_v26, %v3125_v15  ;;  %v3130_v25 = vsub.f32 %v3114_v8, %v3122_v14 }
0x191a   : > { %v3137_v57 = vmul.f32 1.442695, %v3131_v18  ;;  %v3135_v10 = vmul.f32 1.442695, %v3130_v25 }
0x191b   : > { %v3128_v9 = vpop.xlane.xlu0 %3127  ;;  %v3211_v29 = vpop.permute.xlu1 %3210 }
0x191c   : > { %5089 = vpow2.f32 %v3137_v57  ;;  %v3132_v31 = vsub.f32 %v3116_v21, %v3128_v9  ;;  %4685 = vmatpush3.bf16.msra.mxu1 %v3211_v29 }
0x191d   : > { %4696 = vmatprep.subr.bf16.mxu1 %v5414_v17  ;;  %5091 = vpow2.f32 %v3133_v20 }
0x191e   : > { %v3139_v34 = vmul.f32 1.442695, %v3132_v31 }
0x191f   : > { %v3260_v58 = vpop.permute.xlu1 %3259 }
0x1920   : > { %5093 = vpow2.f32 %v3139_v34  ;;  %v3265_v51 = vsel %vm665_vm1, %v3260_v58, 0 }
0x1921   : > { %5095 = vpow2.f32 %v3135_v10 }
0x1929   : > { %v5090_v35 = vpop.eup %5089 }
0x192a   : > { %v3147_v37 = vsel %vm991_vm4, %v5090_v35, 0.0  ;;  %v5092_v40 = vpop.eup %5091 }
0x192b   : > { %3148 = vadd.xlane.f32.xlu0 %v3147_v37  ;;  %v3141_v43 = vsel %vm991_vm4, %v5092_v40, 0.0 }
0x192d   : > { %v5094_v41 = vpop.eup %5093 }
0x192e   : > { %v3150_v45 = vsel %vm991_vm4, %v5094_v41, 0.0  ;;  %v5096_v50 = vpop.eup %5095 }
0x192f   : > { %3142 = vadd.xlane.f32.xlu0 %v3141_v43  ;;  %3151 = vadd.xlane.f32.xlu1 %v3150_v45  ;;  %v3144_v54 = vsel %vm991_vm4, %v5096_v50, 0.0 }
0x1933   : > { %3145 = vadd.xlane.f32.xlu1 %v3144_v54 }
0x1944   : > { %3310 = vrot.lane.b32.xlu1 %v6058_v32, %s6485_s24  ;;  %s640_s24 = sand.u32 1, %s5395_s25  }
0x1945   : > { %3163 = vrot.lane.b32.xlu0 %v6060_v11, %s5423_s20  ;;  %s4100_s26 = scalar_lea.sflag [#allocation4], %s640_s24 }
0x1948   : > { %3308 = vrot.lane.b32.xlu1 %v6058_v32, %s6486_s27 }
0x1949   : > { %3257 = vrot.lane.b32.xlu0 %v6060_v11, %s6486_s27  ;;  %s4259_s27 = sshll.u32 %s640_s24, 1 }
0x194a   : > { %s642_s21 = scalar_lea.vmem [#allocation14], %s4259_s27 }
0x194b   : > { %s4113_s29 = sshll.u32 %s642_s21, 4  ;;  %s6379_s29 = int_to_ptr.vmem [resolvable:$true] %s4113_s29 }
0x194c   : > { %p5334_p6 = scmp.lt.s32.totalorder %s6379_s29, %s5332_s2 }
0x19b4   : > { %v3149_v59 = vpop.xlane.xlu0 %3148 }
0x19b5   : > { %5097 = vrcp.f32 %v3149_v59 }
0x19b8   : > { %v3143_v61 = vpop.xlane.xlu0 %3142  ;;  %v3152_v48 = vpop.xlane.xlu1 %3151 }
0x19b9   : > { %5099 = vrcp.f32 %v3152_v48 }
0x19ba   : > { %5101 = vrcp.f32 %v3143_v61 }
0x19bc   : > { %v3164_v62 = vpop.permute.xlu0 %3163  ;;  %v3146_v63 = vpop.xlane.xlu1 %3145 }
0x19bd   : > { %5103 = vrcp.f32 %v3146_v63  ;;  %4679 = vmatpush3.bf16.msra.mxu0 %v3164_v62 }
0x19be   : > { %4690 = vmatprep.subr.bf16.mxu0 %v5414_v17 }
0x19c0   : > { %v3311_v5 = vpop.permute.xlu1 %3310  ;;  %v3258_v8 = vpop.permute.xlu0 %3257 }
0x19c1   : > { %v3316_v26 = vsel %vm665_vm1, %v3311_v5, 0 }
0x19c2   : > { %v5098_v42 = vpop.eup %5097 }
0x19c3   : > { %v3159_v4 = vmul.f32 %v5098_v42, %v5090_v35 }
0x19c4   : > { %v3309_v56 = vpop.permute.xlu1 %3308 }
0x19c6   : > { %v5100_v2 = vpop.eup %5099 }
0x19c7   : > { %v5102_v3 = vpop.eup %5101  ;;  %v3160_v28 = vmul.f32 %v5100_v2, %v5094_v41 }
0x19c8   : > { %v3157_v16 = vmul.f32 %v5102_v3, %v5092_v40 }
0x19c9   : > { %v3162_v30 = vpack.c.bf16 %v3160_v28, %v3159_v4 }
0x19ca   : > { %v5104_v19 = vpop.eup %5103 }
0x19cb   : > { %v3158_v6 = vmul.f32 %v5104_v19, %v5096_v50  ;;  %4687 = vmatmul.mubr.msk.bf16.vlgmr.msra.gmra.mxu1 %vm991_vm4, %v3162_v30 }
0x19cc   : > { %4697 = vmatpush3.bf16.xpose.msra.mxu1 %v3316_v26  ;;  %4698 = vmatprep.mubr.msk.bf16.mxu1 %vm5415_vm3, %v5414_v17 }
0x19cd   : > { %v3161_v7 = vpack.c.bf16 %v3158_v6, %v3157_v16  ;;  %4708 = vmatprep.subr.bf16.mxu1 %v5414_v17 }
0x19cf   : > { %4681 = vmatmul.mubr.msk.bf16.vlgmr.msra.gmra.mxu0 %vm991_vm4, %v3161_v7 }
0x19d0   : > { %4691 = vmatpush3.bf16.xpose.msra.mxu0 %v3265_v51  ;;  %4692 = vmatprep.mubr.msk.bf16.mxu0 %vm5415_vm3, %v5414_v17 }
0x19d1   : > { %4702 = vmatprep.subr.bf16.mxu0 %v5414_v17 }
0x19d3   : > { %4699 = vmatmul.mubr.msk.bf16.vlgmr.msra.gmra.mxu1 %vm665_vm1, %v3309_v56 }
0x19d4   : > { %4710 = vmatprep.mubr.msk.bf16.mxu1 %vm5415_vm3, %v5414_v17 }
0x19d7   : > { %4693 = vmatmul.mubr.msk.bf16.vlgmr.msra.gmra.mxu0 %vm665_vm1, %v3258_v8 }
0x19d8   : > { %4704 = vmatprep.mubr.msk.bf16.mxu0 %vm5415_vm3, %v5414_v17 }
0x1a8b   : > { %v6212_v49 = vpop.f32.mrf.mxu1 }
0x1a8d   : > { %v4688_v21 = vpop.f32.mrf.mxu1 }
0x1a8f   : > { %v3203_v22 = vpop.f32.mrf.mxu0  ;;  %v3253_v27 = vpop.f32.mrf.mxu1 }
0x1a90   : > { %v4920_v12 = vpack.i.bf16 %v3253_v27, %v6212_v49 }
0x1a91   : > { %v4682_v33 = vpop.f32.mrf.mxu0  ;;  %v4689_v52 = vpop.f32.mrf.mxu1 }
0x1a93   : > { %v3206_v15 = vpop.f32.mrf.mxu0  ;;  %v3352_v18 = vpop.f32.mrf.mxu1 }
0x1a94   : > { %v4915_v14 = vpack.i.bf16 %v3206_v15, %v3203_v22  ;;  %v3361_v10 = vmul.f32 0.35355338, %v3352_v18  ;;  %v4945_v15 = vld [vmem:[%s6425_s7 + $0x18] sm:$0xff]  }
0x1a95   : > { %v4683_v20 = vpop.f32.mrf.mxu0  ;;  %v4700_v57 = vpop.f32.mrf.mxu1 }
0x1a96   : > { %v3369_v45 = vsel %vm991_vm4, %v3361_v10, -inf }
0x1a97   : > { %v3301_v25 = vpop.f32.mrf.mxu0  ;;  %v3355_v29 = vpop.f32.mrf.mxu1 }
0x1a98   : > { %v3359_v9 = vmul.f32 0.35355338, %v3301_v25  ;;  %v3362_v43 = vmul.f32 0.35355338, %v3355_v29 }
0x1a99   : > { %v4694_v31 = vpop.f32.mrf.mxu0  ;;  %v4701_v34 = vpop.f32.mrf.mxu1 }
0x1a9a   : > { %v3363_v35 = vsel %vm991_vm4, %v3359_v9, -inf  ;;  %v3372_v54 = vsel %vm991_vm4, %v3362_v43, -inf }
0x1a9b   : > { %3364 = vmax.xlane.f32.xlu0 %v3363_v35  ;;  %v3304_v37 = vpop.f32.mrf.mxu0 }
0x1a9c   : > { %v3360_v40 = vmul.f32 0.35355338, %v3304_v37 }
0x1a9d   : > { %v4695_v41 = vpop.f32.mrf.mxu0 }
0x1a9e   : > { %v3366_v50 = vsel %vm991_vm4, %v3360_v40, -inf }
0x1a9f   : > { %3370 = vmax.xlane.f32.xlu0 %v3369_v45  ;;  %3367 = vmax.xlane.f32.xlu1 %v3366_v50 }
0x1aa3   : > { %3373 = vmax.xlane.f32.xlu0 %v3372_v54 }
0x1b24   : > { %v3365_v58 = vpop.xlane.xlu0 %3364 }
0x1b25   : > { %v3375_v59 = vsub.f32 %v3359_v9, %v3365_v58 }
0x1b27   : > { %v3379_v63 = vmul.f32 1.442695, %v3375_v59 }
0x1b28   : > { %v3371_v61 = vpop.xlane.xlu0 %3370  ;;  %v3368_v48 = vpop.xlane.xlu1 %3367 }
0x1b29   : > { %v3377_v62 = vsub.f32 %v3361_v10, %v3371_v61  ;;  %v3376_v2 = vsub.f32 %v3360_v40, %v3368_v48 }
0x1b2b   : > { %v3383_v42 = vmul.f32 1.442695, %v3377_v62  ;;  %v3381_v28 = vmul.f32 1.442695, %v3376_v2 }
0x1b2c   : > { %v3374_v3 = vpop.xlane.xlu0 %3373 }
0x1b2d   : > { %5105 = vpow2.f32 %v3383_v42  ;;  %v3378_v4 = vsub.f32 %v3362_v43, %v3374_v3 }
0x1b2e   : > { %5107 = vpow2.f32 %v3379_v63 }
0x1b2f   : > { %v3385_v5 = vmul.f32 1.442695, %v3378_v4 }
0x1b31   : > { %5109 = vpow2.f32 %v3385_v5 }
0x1b32   : > { %5111 = vpow2.f32 %v3381_v28 }
0x1b3a   : > { %v5106_v19 = vpop.eup %5105 }
0x1b3b   : > { %v3393_v30 = vsel %vm991_vm4, %v5106_v19, 0.0  ;;  %v5108_v16 = vpop.eup %5107 }
0x1b3c   : > { %3394 = vadd.xlane.f32.xlu0 %v3393_v30  ;;  %v3387_v26 = vsel %vm991_vm4, %v5108_v16, 0.0 }
0x1b3e   : > { %v5110_v6 = vpop.eup %5109 }
0x1b3f   : > { %v3396_v7 = vsel %vm991_vm4, %v5110_v6, 0.0  ;;  %v5112_v51 = vpop.eup %5111 }
0x1b40   : > { %3388 = vadd.xlane.f32.xlu0 %v3387_v26  ;;  %3397 = vadd.xlane.f32.xlu1 %v3396_v7  ;;  %v3390_v56 = vsel %vm991_vm4, %v5112_v51, 0.0 }
0x1b44   : > { %3391 = vadd.xlane.f32.xlu1 %v3390_v56 }
0x1b55   : > { %3456 = vrot.lane.b32.xlu1 %v6058_v32, %s6487_s18 }
0x1b56   : > { %3409 = vrot.lane.b32.xlu0 %v6060_v11, %s6487_s18 }
0x1b59   : > { %4906 = vrot.lane.b32.xlu1 %v4905_v36, %s6488_s23 }
0x1b5a   : > { %4916 = vrot.lane.b32.xlu0 %v4915_v14, %s6489_s0  ;;  %v4946_v14 = vld [vmem:[%s6425_s7 + $0x10] sm:$0xff]  }
0x1b5d   : > { %4911 = vrot.lane.b32.xlu1 %v4910_v0, %s6488_s23 }
0x1b61   : > { %4921 = vrot.lane.b32.xlu1 %v4920_v12, %s6489_s0  ;;  %s4370_s0 = sshll.u32 %s5542_s28, 5  ;;  %s5327_s28 = scalar_lea.vmem %s6379_s29, 32 }
0x1b62   : > { %p5328_p2 = scmp.ne.s32.totalorder %s6379_s29, %s5327_s28  ;;  %p5335_p13 = scmp.lt.s32.totalorder %s5333_s30, %s5327_s28 }
0x1b64   : > { %p5329_p7 = pnand %p5328_p2, %p6491_p4  ;;  %p5336_p10 = por %p5335_p13, %p5334_p6 }
0x1b66   : > { %p5330_p5 = pneg %p5329_p7 }
0x1b68   : > { %p5337_p9 = pnand %p5336_p10, %p5330_p5 }
0x1bc5   : > { %v3395_v8 = vpop.xlane.xlu0 %3394 }
0x1bc6   : > { %5113 = vrcp.f32 %v3395_v8 }
0x1bc9   : > { %v3389_v32 = vpop.xlane.xlu0 %3388  ;;  %v3398_v49 = vpop.xlane.xlu1 %3397 }
0x1bca   : > { %5115 = vrcp.f32 %v3398_v49  ;;  %v4337_v49 = vld [vmem:[#allocation11 + $0x1] ss:$0 sm:$0xff] }
0x1bcb   : > { %5117 = vrcp.f32 %v3389_v32 }
0x1bcd   : > { %v3410_v11 = vpop.permute.xlu0 %3409  ;;  %v3392_v21 = vpop.xlane.xlu1 %3391 }
0x1bce   : > { %5119 = vrcp.f32 %v3392_v21  ;;  %4703 = vmatpush3.bf16.msra.mxu0 %v3410_v11 }
0x1bcf   : > { %4714 = vmatprep.subr.bf16.mxu0 %v4945_v15 }
0x1bd1   : > { %v3457_v60 = vpop.permute.xlu1 %3456  ;;  %v4917_v50 = vpop.permute.xlu0 %4916 }
0x1bd2   : > { %4709 = vmatpush3.bf16.msra.mxu1 %v3457_v60  ;;  %v4919_v3 = vunpack.i.h.bf16 %v4917_v50  ;;  %v4918_v4 = vunpack.i.l.bf16 %v4917_v50 }
0x1bd3   : > { %v5114_v39 = vpop.eup %5113 }
0x1bd4   : > { %v3405_v27 = vmul.f32 %v5114_v39, %v5106_v19 }
0x1bd5   : > { %v4907_v37 = vpop.permute.xlu1 %4906 }
0x1bd6   : > { %v4909_v43 = vunpack.i.h.bf16 %v4907_v37  ;;  %v4908_v45 = vunpack.i.l.bf16 %v4907_v37 }
0x1bd7   : > { %v5116_v36 = vpop.eup %5115 }
0x1bd8   : > { %v5118_v22 = vpop.eup %5117  ;;  %v3406_v1 = vmul.f32 %v5116_v36, %v5110_v6  ;;  %v3552_v42 = vsel %vm665_vm1, %v6122_v55, %v4909_v43  ;;  %v3551_v2 = vsel %vm665_vm1, %v6118_v46, %v4908_v45 }
0x1bd9   : > { %v3403_v12 = vmul.f32 %v5118_v22, %v5108_v16  ;;  %v4912_v40 = vpop.permute.xlu1 %4911  ;;  %v3555_v46 = vsel %vm991_vm4, %v3551_v2, %v4918_v4 }
0x1bda   : > { %v3408_v0 = vpack.c.bf16 %v3406_v1, %v3405_v27  ;;  %v4914_v54 = vunpack.i.h.bf16 %v4912_v40  ;;  %v4913_v58 = vunpack.i.l.bf16 %v4912_v40 }
0x1bdb   : > { %v5120_v38 = vpop.eup %5119 }
0x1bdc   : > { %v3404_v33 = vmul.f32 %v5120_v38, %v5112_v51  ;;  %4711 = vmatmul.mubr.msk.bf16.vlgmr.msra.gmra.mxu1 %vm991_vm4, %v3408_v0  ;;  %v3554_v28 = vsel %vm665_vm1, %v6120_v47, %v4914_v54  ;;  %v3553_v5 = vsel %vm665_vm1, %v6116_v44, %v4913_v58  ;;  %v3556_v51 = vsel %vm991_vm4, %v3552_v42, %v4919_v3  ;;  %v4947_v54 = vld [vmem:[%s6429_s11 + $0x18] sm:$0xff]   ;;  %v4948_v58 = vld [vmem:[%s6429_s11 + $0x10] sm:$0xff]  }
0x1bdd   : > { %v4922_v41 = vpop.permute.xlu1 %4921  ;;  %4722 = vmatprep.subr.bf16.mxu1 %v4947_v54 }
0x1bde   : > { %v3407_v52 = vpack.c.bf16 %v3404_v33, %v3403_v12  ;;  %v4924_v59 = vunpack.i.h.bf16 %v4922_v41  ;;  %v4923_v61 = vunpack.i.l.bf16 %v4922_v41  ;;  %4723 = vmatpush3.bf16.msra.mxu1 %v4947_v54 }
0x1bdf   : > { %4724 = vmatprep.subr.bf16.mxu1 %v4948_v58 }
0x1be0   : > { %4705 = vmatmul.mubr.msk.bf16.vlgmr.msra.gmra.mxu0 %vm991_vm4, %v3407_v52  ;;  %v3557_v30 = vsel %vm991_vm4, %v3553_v5, %v4923_v61  ;;  %v3558_v16 = vsel %vm991_vm4, %v3554_v28, %v4924_v59 }
0x1be1   : > { %4715 = vmatpush3.bf16.msra.mxu0 %v4945_v15 }
0x1be2   : > { %4716 = vmatprep.subr.bf16.mxu0 %v4946_v14  ;;  %4725 = vmatpush3.bf16.msra.mxu1 %v4948_v58 }
0x1be3   : > { %4738 = vmatprep.subr.bf16.mxu1 %v5414_v17 }
0x1be5   : > { %4717 = vmatpush3.bf16.msra.mxu0 %v4946_v14 }
0x1c9c   : > { %v3496_v18 = vpop.f32.mrf.mxu1 }
0x1c9e   : > { %v4712_v20 = vpop.f32.mrf.mxu1 }
0x1ca0   : > { %v3449_v57 = vpop.f32.mrf.mxu0  ;;  %v3499_v25 = vpop.f32.mrf.mxu1 }
0x1ca1   : > { %v4930_v9 = vpack.i.bf16 %v3499_v25, %v3496_v18 }
0x1ca2   : > { %v4706_v29 = vpop.f32.mrf.mxu0  ;;  %v4713_v31 = vpop.f32.mrf.mxu1 }
0x1ca3   : > { %4931 = vrot.lane.b32.xlu1 %v4930_v9, %s6490_s19 }
0x1ca4   : > { %v3452_v10 = vpop.f32.mrf.mxu0 }
0x1ca5   : > { %v4925_v34 = vpack.i.bf16 %v3452_v10, %v3449_v57 }
0x1ca6   : > { %v4707_v35 = vpop.f32.mrf.mxu0 }
0x1ca7   : > { %4926 = vrot.lane.b32.xlu0 %v4925_v34, %s6490_s19  ;;  %s6377_s19 = scalar_lea.hbm %s6435_s17, %s4370_s0 }
0x1d15   : > { %v4932_v48 = vpop.permute.xlu1 %4931 }
0x1d16   : > { %v4934_v62 = vunpack.i.h.bf16 %v4932_v48  ;;  %v4933_v63 = vunpack.i.l.bf16 %v4932_v48 }
0x1d18   : > { %v3561_v55 = vsel %vm1926_vm5, %v3557_v30, %v4933_v63  ;;  %v3562_v7 = vsel %vm1926_vm5, %v3558_v16, %v4934_v62 }
0x1d19   : > { %v4927_v19 = vpop.permute.xlu0 %4926  ;;  %v3564_v8 = vpack.c.bf16 %v3562_v7, %v3561_v55 }
0x1d1a   : > { %v4929_v6 = vunpack.i.h.bf16 %v4927_v19  ;;  %v4928_v26 = vunpack.i.l.bf16 %v4927_v19 }
0x1d1c   : > { %v3560_v47 = vsel %vm1926_vm5, %v3556_v51, %v4929_v6  ;;  %v3559_v56 = vsel %vm1926_vm5, %v3555_v46, %v4928_v26  ;;  %v4343_v6 = vld [vmem:[#allocation13 + $0x1] ss:$0 sm:$0xff] }
0x1d1d   : > { %v3563_v44 = vpack.c.bf16 %v3560_v47, %v3559_v56  ;;  %v4344_v47 = vld [vmem:[%s6428_s10 + $0x1] ss:$0 sm:$0xff] }
0x1d1f   : > { %4718 = vmatprep.mubr.msk.bf16.mxu0 %vm731_vm2, %v3563_v44 }
0x1d20   : > { %4719 = vmatmul.mubr.msk.bf16.vlgmr.msra.gmra.mxu0 %vm731_vm2, %v3564_v8 }
0x1de0   : > { %v4720_v32 = vpop.f32.mrf.mxu0 }
0x1de1   : > { %v3639_v21 = vadd.f32 %v4720_v32, %v4337_v49 }
0x1de2   : > { %v3630_v11 = vpop.f32.mrf.mxu0 }
0x1de3   : > { %v3631_v60 = vadd.f32 %v4337_v49, %v3630_v11  ;;  %v6269_v27 = vadd.f32 %v3639_v21, %v6023_v13 }
0x1de4   : > { %v4721_v39 = vpop.f32.mrf.mxu0 }
0x1de5   : > { %v6266_v36 = vadd.f32 %v3631_v60, %v6020_v53  ;;  %v3642_v1 = vadd.f32 %v4721_v39, %v4337_v49  ;;  %v3659_v52 = vsel %vm731_vm2, %v6269_v27, 0.0 }
0x1de6   : > { %v3633_v22 = vpop.f32.mrf.mxu0 }
0x1de7   : > { %v3634_v38 = vadd.f32 %v4337_v49, %v3633_v22  ;;  %v3653_v0 = vsel %vm731_vm2, %v6266_v36, 0.0  ;;  %v6277_v33 = vadd.f32 %v3642_v1, %v6031_v24 }
0x1de8   : > { %3654 = vadd.xlane.f32.xlu0 %v3653_v0  ;;  %v4950_v0 = vld [vmem:[%s6431_s13 + $0x10] sm:$0xff]  }
0x1de9   : > { %v6274_v12 = vadd.f32 %v3634_v38, %v6028_v23  ;;  %v3662_v13 = vsel %vm731_vm2, %v6277_v33, 0.0  ;;  %v4949_v38 = vld [vmem:[%s6431_s13 + $0x18] sm:$0xff]  }
0x1dea   : > { %4730 = vmatprep.subr.bf16.mxu0 %v4949_v38 }
0x1deb   : > { %v3656_v53 = vsel %vm731_vm2, %v6274_v12, 0.0  ;;  %4731 = vmatpush3.bf16.msra.mxu0 %v4949_v38 }
0x1dec   : > { %3657 = vadd.xlane.f32.xlu1 %v3656_v53  ;;  %3660 = vadd.xlane.f32.xlu0 %v3659_v52  ;;  %v4350_v53 = vld [vmem:[%s6430_s12 + $0x1] ss:$0 sm:$0xff] }
0x1ded   : > { %4732 = vmatprep.subr.bf16.mxu0 %v4950_v0 }
0x1def   : > { %4733 = vmatpush3.bf16.msra.mxu0 %v4950_v0 }
0x1df0   : > { %3663 = vadd.xlane.f32.xlu0 %v3662_v13 }
0x1e71   : > { %v3655_v15 = vpop.xlane.xlu0 %3654 }
0x1e72   : > { %v3665_v14 = vmul.f32 0.03125, %v3655_v15 }
0x1e74   : > { %v3669_v23 = vsub.f32 %v6266_v36, %v3665_v14 }
0x1e75   : > { %v3658_v18 = vpop.xlane.xlu1 %3657  ;;  %v3661_v20 = vpop.xlane.xlu0 %3660 }
0x1e76   : > { %v3666_v24 = vmul.f32 0.03125, %v3658_v18  ;;  %v3667_v57 = vmul.f32 0.03125, %v3661_v20  ;;  %v3673_v25 = vmul.f32 %v3669_v23, %v3669_v23 }
0x1e78   : > { %v3670_v9 = vsub.f32 %v6274_v12, %v3666_v24  ;;  %v3671_v29 = vsub.f32 %v6269_v27, %v3667_v57  ;;  %v3677_v31 = vsel %vm731_vm2, %v3673_v25, 0.0 }
0x1e79   : > { %3678 = vadd.xlane.f32.xlu0 %v3677_v31  ;;  %v3664_v10 = vpop.xlane.xlu0 %3663 }
0x1e7a   : > { %v3668_v34 = vmul.f32 0.03125, %v3664_v10  ;;  %v3674_v35 = vmul.f32 %v3670_v9, %v3670_v9  ;;  %v3675_v37 = vmul.f32 %v3671_v29, %v3671_v29 }
0x1e7c   : > { %v3672_v40 = vsub.f32 %v6277_v33, %v3668_v34  ;;  %v3680_v41 = vsel %vm731_vm2, %v3674_v35, 0.0  ;;  %v3683_v43 = vsel %vm731_vm2, %v3675_v37, 0.0 }
0x1e7d   : > { %3681 = vadd.xlane.f32.xlu1 %v3680_v41  ;;  %3684 = vadd.xlane.f32.xlu0 %v3683_v43 }
0x1e7e   : > { %v3676_v45 = vmul.f32 %v3672_v40, %v3672_v40 }
0x1e80   : > { %v3686_v50 = vsel %vm731_vm2, %v3676_v45, 0.0 }
0x1e81   : > { %3687 = vadd.xlane.f32.xlu1 %v3686_v50 }
0x1f02   : > { %v3679_v59 = vpop.xlane.xlu0 %3678 }
0x1f03   : > { %v3689_v61 = vmul.f32 0.03125, %v3679_v59 }
0x1f05   : > { %v3693_v48 = vadd.f32 1e-05, %v3689_v61 }
0x1f06   : > { %v3682_v62 = vpop.xlane.xlu1 %3681  ;;  %v3685_v63 = vpop.xlane.xlu0 %3684 }
0x1f07   : > { %5121 = vrsqrt.f32 %v3693_v48  ;;  %v3690_v42 = vmul.f32 0.03125, %v3682_v62  ;;  %v3691_v2 = vmul.f32 0.03125, %v3685_v63 }
0x1f09   : > { %v3694_v3 = vadd.f32 1e-05, %v3690_v42  ;;  %v3695_v4 = vadd.f32 1e-05, %v3691_v2 }
0x1f0a   : > { %v3688_v28 = vpop.xlane.xlu1 %3687 }
0x1f0b   : > { %5123 = vrsqrt.f32 %v3694_v3  ;;  %v3692_v5 = vmul.f32 0.03125, %v3688_v28 }
0x1f0c   : > { %5125 = vrsqrt.f32 %v3695_v4 }
0x1f0d   : > { %v3696_v19 = vadd.f32 1e-05, %v3692_v5 }
0x1f0f   : > { %5127 = vrsqrt.f32 %v3696_v19 }
0x1f14   : > { %v5122_v30 = vpop.eup %5121 }
0x1f15   : > { %v3701_v16 = vmul.f32 %v5122_v30, %v3669_v23 }
0x1f17   : > { %v3711_v46 = vmul.f32 %v4343_v6, %v3701_v16 }
0x1f18   : > { %v5124_v26 = vpop.eup %5123 }
0x1f19   : > { %v5126_v55 = vpop.eup %5125  ;;  %v3702_v7 = vmul.f32 %v5124_v26, %v3670_v9  ;;  %v3721_v32 = vadd.f32 %v4344_v47, %v3711_v46 }
0x1f1a   : > { %v3703_v51 = vmul.f32 %v5126_v55, %v3671_v29 }
0x1f1b   : > { %v3712_v56 = vmul.f32 %v4343_v6, %v3702_v7 }
0x1f1c   : > { %v5128_v44 = vpop.eup %5127  ;;  %v3713_v11 = vmul.f32 %v4343_v6, %v3703_v51 }
0x1f1d   : > { %v3704_v8 = vmul.f32 %v5128_v44, %v3672_v40  ;;  %v3722_v49 = vadd.f32 %v4344_v47, %v3712_v56 }
0x1f1e   : > { %v3723_v39 = vadd.f32 %v4344_v47, %v3713_v11 }
0x1f1f   : > { %v3725_v21 = vpack.c.bf16 %v3722_v49, %v3721_v32  ;;  %v3714_v60 = vmul.f32 %v4343_v6, %v3704_v8 }
0x1f21   : > { %4726 = vmatprep.mubr.msk.bf16.mxu1 %vm731_vm2, %v3725_v21  ;;  %v3724_v22 = vadd.f32 %v4344_v47, %v3714_v60 }
0x1f23   : > { %v3726_v1 = vpack.c.bf16 %v3724_v22, %v3723_v39 }
0x1f25   : > { %4727 = vmatmul.mubr.msk.bf16.vlgmr.msra.gmra.mxu1 %vm731_vm2, %v3726_v1 }
0x1f26   : > { %4742 = vmatprep.mubr.msk.bf16.mxu1 %vm5415_vm3, %v5414_v17 }
0x1fe5   : > { %v4728_v52 = vpop.f32.mrf.mxu1 }
0x1fe6   : > { %v6316_v13 = vadd.f32 %v4728_v52, %v4350_v53 }
0x1fe7   : > { %v3792_v15 = vpop.f32.mrf.mxu1 }
0x1fe8   : > { %v6319_v14 = vmul.f32 0.70710677, %v6316_v13  ;;  %v6321_v23 = vadd.f32 %v4350_v53, %v3792_v15 }
0x1fe9   : > { %v4729_v18 = vpop.f32.mrf.mxu1 }
0x1fea   : > { %v3817_v20 = vand.u32 2147483647, %v6319_v14  ;;  %v6325_v24 = vmul.f32 0.70710677, %v6321_v23  ;;  %v6327_v57 = vadd.f32 %v4729_v18, %v4350_v53  ;;  %vm3897_vm11 = vcmp.ge.f32.partialorder %v6319_v14, 0.0 }
0x1feb   : > { %v3795_v25 = vpop.f32.mrf.mxu1 }
0x1fec   : > { %v3821_v9 = vmul.f32 0.3275911, %v3817_v20  ;;  %v3815_v29 = vand.u32 2147483647, %v6325_v24  ;;  %v6331_v31 = vmul.f32 0.70710677, %v6327_v57  ;;  %v6333_v10 = vadd.f32 %v4350_v53, %v3795_v25 }
0x1fed   : > { %v3873_v59 = vsub.f32 0.0, %v3817_v20  ;;  %vm3895_vm10 = vcmp.ge.f32.partialorder %v6325_v24, 0.0  ;;  %v3807_v24 = vmul.f32 0.5, %v6321_v23  ;;  %v4360_v23 = vld [vmem:[%s6432_s14 + $0x1] ss:$0 sm:$0xff] }
0x1fee   : > { %v3825_v34 = vadd.f32 1.0, %v3821_v9  ;;  %v3819_v35 = vmul.f32 0.3275911, %v3815_v29  ;;  %v3818_v37 = vand.u32 2147483647, %v6331_v31  ;;  %v3871_v61 = vsub.f32 0.0, %v3815_v29 }
0x1fef   : > { %v6337_v40 = vmul.f32 0.70710677, %v6333_v10  ;;  %v3877_v48 = vmul.f32 %v3873_v59, %v3817_v20  ;;  %vm3898_vm12 = vcmp.ge.f32.partialorder %v6331_v31, 0.0 }
0x1ff0   : > { %5129 = vrcp.f32 %v3825_v34  ;;  %v3823_v41 = vadd.f32 1.0, %v3819_v35  ;;  %v3822_v43 = vmul.f32 0.3275911, %v3818_v37  ;;  %v3874_v62 = vsub.f32 0.0, %v3818_v37 }
0x1ff1   : > { %v3816_v45 = vand.u32 2147483647, %v6337_v40  ;;  %v3875_v42 = vmul.f32 %v3871_v61, %v3815_v29  ;;  %v3883_v3 = vmul.f32 1.442695, %v3877_v48  ;;  %vm3896_vm13 = vcmp.ge.f32.partialorder %v6337_v40, 0.0 }
0x1ff2   : > { %5131 = vrcp.f32 %v3823_v41  ;;  %v3826_v50 = vadd.f32 1.0, %v3822_v43  ;;  %v3878_v28 = vmul.f32 %v3874_v62, %v3818_v37 }
0x1ff3   : > { %v3820_v54 = vmul.f32 0.3275911, %v3816_v45  ;;  %v3872_v4 = vsub.f32 0.0, %v3816_v45  ;;  %v3879_v16 = vmul.f32 1.442695, %v3875_v42 }
0x1ff4   : > { %5133 = vrcp.f32 %v3826_v50  ;;  %v3885_v51 = vmul.f32 1.442695, %v3878_v28 }
0x1ff5   : > { %v3824_v58 = vadd.f32 1.0, %v3820_v54  ;;  %v3876_v55 = vmul.f32 %v3872_v4, %v3816_v45 }
0x1ff7   : > { %5135 = vrcp.f32 %v3824_v58  ;;  %v3881_v11 = vmul.f32 1.442695, %v3876_v55 }
0x1ff8   : > { %5137 = vpow2.f32 %v3883_v3 }
0x1ff9   : > { %5139 = vpow2.f32 %v3879_v16 }
0x1ffa   : > { %5141 = vpow2.f32 %v3885_v51 }
0x1ffb   : > { %5143 = vpow2.f32 %v3881_v11  ;;  %v3809_v11 = vmul.f32 0.5, %v6316_v13  ;;  %v4952_v13 = vld [vmem:[%s6433_s15] sm:$0xff]  }
0x1ffd   : > { %v5130_v63 = vpop.eup %5129 }
0x1ffe   : > { %v3837_v2 = vmul.f32 1.0614054, %v5130_v63 }
0x1fff   : > { %v5132_v5 = vpop.eup %5131 }
0x2000   : > { %v3841_v19 = vadd.f32 -1.4531521, %v3837_v2  ;;  %v3835_v30 = vmul.f32 1.0614054, %v5132_v5 }
0x2001   : > { %v5134_v6 = vpop.eup %5133 }
0x2002   : > { %v3845_v26 = vmul.f32 %v5130_v63, %v3841_v19  ;;  %v3839_v7 = vadd.f32 -1.4531521, %v3835_v30  ;;  %v3838_v46 = vmul.f32 1.0614054, %v5134_v6 }
0x2004   : > { %v3849_v47 = vadd.f32 1.4214138, %v3845_v26  ;;  %v5136_v56 = vpop.eup %5135  ;;  %v3843_v44 = vmul.f32 %v5132_v5, %v3839_v7  ;;  %v3842_v8 = vadd.f32 -1.4531521, %v3838_v46 }
0x2005   : > { %v3836_v49 = vmul.f32 1.0614054, %v5136_v56  ;;  %v5138_v35 = vpop.eup %5137 }
0x2006   : > { %v3853_v32 = vmul.f32 %v5130_v63, %v3849_v47  ;;  %v3847_v21 = vadd.f32 1.4214138, %v3843_v44  ;;  %v3846_v60 = vmul.f32 %v5134_v6, %v3842_v8  ;;  %v5140_v58 = vpop.eup %5139  ;;  %v3810_v8 = vmul.f32 0.5, %v6327_v57  ;;  %v4951_v57 = vld [vmem:[%s6433_s15 + $0x8] sm:$0xff]  }
0x2007   : > { %v3840_v22 = vadd.f32 -1.4531521, %v3836_v49  ;;  %v5142_v42 = vpop.eup %5141  ;;  %v3808_v49 = vmul.f32 0.5, %v6333_v10  ;;  %4739 = vmatpush3.bf16.msra.mxu1 %v4951_v57 }
0x2008   : > { %v3857_v39 = vadd.f32 -0.28449672, %v3853_v32  ;;  %v3851_v1 = vmul.f32 %v5132_v5, %v3847_v21  ;;  %v3850_v38 = vadd.f32 1.4214138, %v3846_v60  ;;  %v5144_v19 = vpop.eup %5143  ;;  %4740 = vmatprep.subr.bf16.mxu1 %v5414_v17 }
0x2009   : > { %v3844_v53 = vmul.f32 %v5136_v56, %v3840_v22 }
0x200a   : > { %v3861_v0 = vmul.f32 %v5130_v63, %v3857_v39  ;;  %v3855_v52 = vadd.f32 -0.28449672, %v3851_v1  ;;  %v3854_v15 = vmul.f32 %v5134_v6, %v3850_v38 }
0x200b   : > { %v3848_v20 = vadd.f32 1.4214138, %v3844_v53  ;;  %4741 = vmatpush3.bf16.msra.mxu1 %v4952_v13 }
0x200c   : > { %v3865_v18 = vadd.f32 0.2548296, %v3861_v0  ;;  %v3859_v25 = vmul.f32 %v5132_v5, %v3855_v52  ;;  %v3858_v9 = vadd.f32 -0.28449672, %v3854_v15 }
0x200d   : > { %v3852_v34 = vmul.f32 %v5136_v56, %v3848_v20 }
0x200e   : > { %v3869_v29 = vmul.f32 %v5130_v63, %v3865_v18  ;;  %v3863_v37 = vadd.f32 0.2548296, %v3859_v25  ;;  %v3862_v41 = vmul.f32 %v5134_v6, %v3858_v9 }
0x200f   : > { %v3856_v45 = vadd.f32 -0.28449672, %v3852_v34 }
0x2010   : > { %v3889_v43 = vmul.f32 %v5138_v35, %v3869_v29  ;;  %v3867_v50 = vmul.f32 %v5132_v5, %v3863_v37  ;;  %v3866_v54 = vadd.f32 0.2548296, %v3862_v41 }
0x2011   : > { %v3860_v59 = vmul.f32 %v5136_v56, %v3856_v45 }
0x2012   : > { %v3893_v61 = vsub.f32 1.0, %v3889_v43  ;;  %v3887_v48 = vmul.f32 %v5140_v58, %v3867_v50  ;;  %v3870_v62 = vmul.f32 %v5134_v6, %v3866_v54 }
0x2013   : > { %v3864_v2 = vadd.f32 0.2548296, %v3860_v59 }
0x2014   : > { %v3891_v3 = vsub.f32 1.0, %v3887_v48  ;;  %v3890_v4 = vmul.f32 %v5142_v42, %v3870_v62  ;;  %v3901_v63 = vsub.f32 0.0, %v3893_v61 }
0x2015   : > { %v3868_v28 = vmul.f32 %v5136_v56, %v3864_v2 }
0x2016   : > { %v3899_v30 = vsub.f32 0.0, %v3891_v3  ;;  %v3894_v16 = vsub.f32 1.0, %v3890_v4  ;;  %v3905_v6 = vsel %vm3897_vm11, %v3893_v61, %v3901_v63 }
0x2017   : > { %v3888_v26 = vmul.f32 %v5144_v19, %v3868_v28  ;;  %v3909_v56 = vadd.f32 1.0, %v3905_v6 }
0x2018   : > { %v3902_v55 = vsub.f32 0.0, %v3894_v16  ;;  %v3903_v5 = vsel %vm3895_vm10, %v3891_v3, %v3899_v30 }
0x2019   : > { %v3892_v7 = vsub.f32 1.0, %v3888_v26  ;;  %v3907_v44 = vadd.f32 1.0, %v3903_v5  ;;  %v3913_v39 = vmul.f32 %v3909_v56, %v3809_v11 }
0x201a   : > { %v3906_v46 = vsel %vm3898_vm12, %v3894_v16, %v3902_v55  ;;  %v4365_v16 = vld [vmem:[%s6434_s16] ss:$0 sm:$0xff] }
0x201b   : > { %v3910_v51 = vadd.f32 1.0, %v3906_v46  ;;  %v3900_v47 = vsub.f32 0.0, %v3892_v7  ;;  %v3911_v21 = vmul.f32 %v3907_v44, %v3807_v24 }
0x201d   : > { %v3904_v32 = vsel %vm3896_vm13, %v3892_v7, %v3900_v47  ;;  %v3914_v31 = vmul.f32 %v3910_v51, %v3810_v8 }
0x201e   : > { %v3908_v14 = vadd.f32 1.0, %v3904_v32 }
0x201f   : > { %v3916_v1 = vpack.c.bf16 %v3914_v31, %v3913_v39 }
0x2020   : > { %v3912_v60 = vmul.f32 %v3908_v14, %v3808_v49 }
0x2022   : > { %v3915_v22 = vpack.c.bf16 %v3912_v60, %v3911_v21 }
0x2024   : > { %4734 = vmatprep.mubr.msk.bf16.mxu0 %vm731_vm2, %v3915_v22 }
0x2025   : > { %4735 = vmatmul.mubr.msk.bf16.vlgmr.msra.gmra.mxu0 %vm731_vm2, %v3916_v1 }
0x20e5   : > { %v4736_v10 = vpop.f32.mrf.mxu0 }
0x20e6   : > { %v3991_v40 = vadd.f32 %v4736_v10, %v4360_v23 }
0x20e7   : > { %v3982_v38 = vpop.f32.mrf.mxu0 }
0x20e8   : > { %v3983_v0 = vadd.f32 %v4360_v23, %v3982_v38  ;;  %v3999_v52 = vadd.f32 %v3991_v40, %v6269_v27 }
0x20e9   : > { %v4737_v53 = vpop.f32.mrf.mxu0 }
0x20ea   : > { %v3994_v15 = vadd.f32 %v4737_v53, %v4360_v23  ;;  %v3997_v17 = vadd.f32 %v3983_v0, %v6266_v36  ;;  %v4010_v9 = vsel %vm731_vm2, %v3999_v52, 0.0 }
0x20eb   : > { %v3985_v18 = vpop.f32.mrf.mxu0 }
0x20ec   : > { %v4000_v20 = vadd.f32 %v3994_v15, %v6277_v33  ;;  %v3986_v25 = vadd.f32 %v4360_v23, %v3985_v18  ;;  %v4001_v37 = vsel %vm731_vm2, %v3997_v17, 0.0 }
0x20ee   : > { %v4011_v29 = vsel %vm731_vm2, %v4000_v20, 0.0  ;;  %v3998_v34 = vadd.f32 %v3986_v25, %v6274_v12 }
0x20ef   : > { %v4012_v35 = vadd.f32 %v4011_v29, %v4010_v9 }
0x20f0   : > { %v4002_v41 = vsel %vm731_vm2, %v3998_v34, 0.0 }
0x20f1   : > { %v4013_v43 = vrot.slane %v4012_v35, 4  ;;  %v4003_v27 = vadd.f32 %v4002_v41, %v4001_v37 }
0x20f3   : > { %v4014_v45 = vadd.f32 %v4013_v43, %v4012_v35  ;;  %v4004_v50 = vrot.slane %v4003_v27, 4 }
0x20f5   : > { %v4015_v54 = vrot.slane %v4014_v45, 2  ;;  %v4005_v36 = vadd.f32 %v4004_v50, %v4003_v27 }
0x20f7   : > { %v4016_v58 = vadd.f32 %v4015_v54, %v4014_v45  ;;  %v4006_v33 = vrot.slane %v4005_v36, 2 }
0x20f9   : > { %v4017_v59 = vrot.slane %v4016_v58, 1  ;;  %v4007_v61 = vadd.f32 %v4006_v33, %v4005_v36 }
0x20fb   : > { %v4018_v48 = vadd.f32 %v4017_v59, %v4016_v58  ;;  %v4008_v62 = vrot.slane %v4007_v61, 1 }
0x20fd   : > { %v4021_v12 = vmul.f32 0.0625, %v4018_v48  ;;  %v4009_v42 = vadd.f32 %v4008_v62, %v4007_v61 }
0x20ff   : > { %v4023_v2 = vpack.c.bf16 %v4021_v12, %v4021_v12  ;;  %v4020_v3 = vmul.f32 0.0625, %v4009_v42 }
0x2101   : > { %v4022_v4 = vpack.c.bf16 %v4020_v3, %v4020_v3  ;;  %v4038_v28 = vunpack.c.l.b16 %v4023_v2 }
0x2103   : > { %v4037_v19 = vunpack.c.l.b16 %v4022_v4 }
0x2105   : > { %v4040_v63 = vsel %vm4039_vm14, %v4038_v28, %v4037_v19 }
0x2106   : > { %v4041_v30 = vpack.c.b16 %v4040_v63, %v4040_v63 }
0x2108   : > { %4743 = vmatmul.mubr.msk.bf16.vlgmr.msra.gmra.mxu1 %vm731_vm2, %v4041_v30 }
0x21c8   : > { %v4091_v26 = vpop.f32.mrf.mxu1 }
0x21c9   : > { %v4092_v55 = vadd.f32 %v4365_v16, %v4091_v26 }
0x21ca   : > { %v4744_v5 = vpop.f32.mrf.mxu1 }
0x21cb   : > { %4098 = vst.msk [vmem:[%s642_s21] sm:$0x3] %vm4097_vm15, %v4092_v55 }
0x21cc   : > { %v4094_v7 = vpop.f32.mrf.mxu1 }
0x21cd   : > { %5340 = shalt.err (!%p5337_p9)
}
0x21ce   : > { %s5341_s27 = scalar_lea.hbm %s6377_s19, 32  ;;  %s5345_s23 = scalar_lea.hbm %s6435_s17, 64 }
0x21cf   : > { %p5342_p8 = scmp.ne.s32.totalorder %s6377_s19, %s5341_s27  ;;  %p5346_p0 = scmp.lt.s32.totalorder %s6377_s19, %s6435_s17 }
0x21d0   : > { %p5347_p1 = scmp.lt.s32.totalorder %s5345_s23, %s5341_s27 }
0x21d1   : > { %p5343_p11 = pnand %p5342_p8, %p6491_p4 }
0x21d2   : > { %p5348_p3 = por %p5347_p1, %p5346_p0 }
0x21d3   : > { %p5344_p12 = pneg %p5343_p11 }
0x21d5   : > { %p5349_p2 = pnand %p5348_p3, %p5344_p12 }
0x21d7   : > { %5352 = shalt.err (!%p5349_p2)
}
0x21d8   : > { %4775 = dma.vmem_to_hbm [thread:$0]  (%p6491_p4), %s6379_s29, 32, %s6377_s19, %s4100_s26   ;;  %v4745_v6 = vpop.f32.mrf.mxu1 }
0x21d9 PF: > { %s6492_s20 = sld [smem:[#allocation22_spill]] }
0x21da   : > { %s6493_s22 = sld [smem:[#allocation20_spill]] }
0x21db   : > { %s6494_s28 = sld [smem:[#allocation25_spill]] }
0x21df   : > { %p4817_p7 = scmp.ge.s32.totalorder %s6492_s20, 2 }
0x21e0   : > { %s4125_s4 = sand.u32 1, %s6493_s22  }
0x21e1   : > { %p6495_p5 = scmp.ne.s32.totalorder %s6494_s28, 0  ;;  %s4126_s2 = scalar_lea.sflag [#allocation4], %s4125_s4 }
0x21e3   : > { %p4800_p6 = pnand %p4817_p7, %p6495_p5 }
0x21e5   : > { %p4801_p13 = pneg %p4800_p6 }
0x21e7   : > { %5386 = dma.done.wait (%p4801_p13), %s4126_s2, 32  }
0x21e8   : > { %5388 = vsyncadd (%p4801_p13), %s4126_s2, 4294967264  ;;  %s6496_s27 = sld [smem:[#allocation23_spill]]  ;;  %s6499_s24 = smov %s5395_s25 }
0x21e9   : > { %s6497_s30 = sld [smem:[#allocation21_spill]] }
0x21ea   : > { %s6498_s26 = sld [smem:[#allocation24_spill]] }
0x21ee   : > { %p31_p10 = scmp.ge.s32.totalorder %s6496_s27, 4  }
0x21ef   : > { %s6500_s25 = smov %s6497_s30 }
0x21f0   :  { %33 = sbr.rel (!%p31_p10) target bundleno = 12 (0xc), region = 164 }
0x21f5   :  { %4131 = vsyncpa [#allocation3], 1 }
0x21f6   :  { %4133 = vsyncpa [#allocation3 + $0x1], 1 }
0x21f7   :  { %4134 = vsyncpa [#allocation6], 1 }
0x21f8   :  { %4135 = vsyncpa [#allocation9], 1 }
0x21f9   :  { %4136 = vsyncpa [#allocation12], 1 }
0x21fa   :  { %4137 = vsyncpa [#allocation4], 1 }
0x21fb   :  { %4139 = vsyncpa [#allocation4 + $0x1], 1 }

</bundles_post_ra>
